<compile_context>
chip_gen: v7x
topology: tpu7x:2x2x1
jax: 0.10.0
libtpu: 0.0.40
codegen_flags: <defaults>
</compile_context>

<pallas_src>
import numpy as np
import jax
import jax.numpy as jnp
from jax.experimental import pallas as pl
from jax.experimental.pallas import tpu as pltpu

_BN_EPS = 1e-5


# --------------------------------------------------------------------------
# Kernels
# --------------------------------------------------------------------------
def _lowres_kernel(xt_ref, w1_ref, b1_ref, w3at_ref, b3a_ref, p_ref):
    """p = relu(xt @ W1_eff + b1) @ W3at_eff + b3a   (low resolution)."""
    t = jnp.dot(xt_ref[0], w1_ref[...], preferred_element_type=jnp.float32)
    t = jnp.maximum(t + b1_ref[...], 0.0).astype(w3at_ref.dtype)
    p = jnp.dot(t, w3at_ref[...], preferred_element_type=jnp.float32) + b3a_ref[...]
    p_ref[0] = p.astype(p_ref.dtype)


def _height_resize_kernel(ah_ref, p_ref, pm_ref):
    """pm = A_h @ p : height-direction bilinear resize at low width (tiny)."""
    pm = jnp.dot(ah_ref[...], p_ref[0], preferred_element_type=jnp.float32)
    pm_ref[0] = pm.astype(pm_ref.dtype)


def _decoder_kernel(pm_ref, bw_ref, xl_ref, w2_ref, b2_ref, w3al_ref,
                    w3b_ref, b3b_ref, w4_ref, b4_ref, seg_ref, x_ref):
    """Fused: width resize, conv2+BN+ReLU, conv3 (both stages), conv4."""
    # Width-direction bilinear resize of the low-res conv3a partial product:
    # kron(I_R, A_w) @ pm_tile -> (R*w, 256).  b3a is already folded into pm.
    u = jnp.dot(bw_ref[...], pm_ref[0], preferred_element_type=jnp.float32)
    # conv2 + BN + ReLU on the xl branch.
    v = jnp.dot(xl_ref[0], w2_ref[...], preferred_element_type=jnp.float32)
    v = jnp.maximum(v + b2_ref[...], 0.0).astype(w3al_ref.dtype)
    # conv3 stage 1 (concat realised as a sum of two partial matmuls) + ReLU.
    z1 = u + jnp.dot(v, w3al_ref[...], preferred_element_type=jnp.float32)
    z1 = jnp.maximum(z1, 0.0).astype(w3b_ref.dtype)
    # conv3 stage 2 + BN + ReLU.  Dropout2d(p=0) == identity.
    z2 = jnp.dot(z1, w3b_ref[...], preferred_element_type=jnp.float32) + b3b_ref[...]
    z2 = jnp.maximum(z2, 0.0)
    x_ref[0] = z2.astype(x_ref.dtype)
    # conv4 (1x1 with bias); output channels padded to 128 -> unmasked stores.
    seg = jnp.dot(z2.astype(w4_ref.dtype), w4_ref[...],
                  preferred_element_type=jnp.float32)
    seg_ref[0] = (seg + b4_ref[...]).astype(seg_ref.dtype)


# --------------------------------------------------------------------------
# Host-side helpers
# --------------------------------------------------------------------------
def _round_up(x, m):
    return -(-x // m) * m


def _fold_bn(w, bn):
    """Fold eval-mode BN (gamma, beta, mean, var) into an (in, out) 1x1 weight."""
    gamma, beta, mean, var = bn
    s = gamma / jnp.sqrt(var + _BN_EPS)
    return w * s[None, :], beta - mean * s


def _interp_matrix(n_out, n_in, n_out_pad=None):
    """1-D bilinear resize matrix, align_corners=True (PyTorch semantics).
    Padding rows (i >= n_out) reuse the last valid row's coefficients."""
    n_out_pad = n_out if n_out_pad is None else n_out_pad
    A = np.zeros((n_out_pad, n_in), dtype=np.float32)
    if n_in == 1:
        A[:, 0] = 1.0
        return A
    scale = 0.0 if n_out == 1 else (n_in - 1) / (n_out - 1)
    for i in range(n_out_pad):
        pos = min(i, n_out - 1) * scale
        lo = min(int(np.floor(pos)), n_in - 2)
        frac = pos - lo
        A[i, lo] += 1.0 - frac
        A[i, lo + 1] += frac
    return A


def _pick_row_tile(h, w, wt, *, target_pixels=512, max_resize_k=512):
    """High-res output rows per grid step.  Both (R*w) and (R*wt) must be
    8-aligned so the (8,128) BlockSpec rule holds for any h/w; prefer R | h."""
    base = 8
    for r in range(1, 9):
        if (r * w) % 8 == 0 and (r * wt) % 8 == 0:
            base = r
            break
    R = base
    while ((R + base) * w <= target_pixels and (R + base) * wt <= max_resize_k
           and R + base <= max(h, base)):
        R += base
    for cand in range(R, 0, -base):          # prefer no padding of h
        if h % cand == 0:
            return cand
    return R


def _pick_lowres_tile(L, target=256):
    """Low-res pixels per grid step (8-aligned; pads L up if needed)."""
    if L <= target:
        return _round_up(L, 8)
    for c in range(target, 7, -8):
        if L % c == 0:
            return c
    return target


# --------------------------------------------------------------------------
# Forward wrapper
# --------------------------------------------------------------------------
def ce2p_decoder_forward(xt, xl, params, *, compute_dtype=jnp.bfloat16,
                         target_tile_pixels=512):
    """Pallas forward.  xt: (N, C1, ht, wt), xl: (N, C2, h, w), NCHW like PyTorch.

    Returns (seg, x) in NCHW: seg (N, num_classes, h, w), x (N, 256, h, w).
    """
    N, C1, ht, wt = xt.shape
    Nl, C2, h, w = xl.shape
    assert N == Nl
    out_dtype = xl.dtype
    cdt = compute_dtype
    f32 = jnp.float32

    w1, w2, w3a, w3b = params["w1"], params["w2"], params["w3a"], params["w3b"]
    w4, b4 = params["w4"], params["b4"]
    C_T = w1.shape[1]            # 256
    C_L = w2.shape[1]            # 48
    C_M = w3b.shape[1]           # 256
    nc = w4.shape[1]
    assert w3a.shape[0] == C_T + C_L

    # ---- fold eval-mode BN into the 1x1 conv weights -----------------------
    w1e, b1 = _fold_bn(w1, params["bn1"])
    w2e, b2 = _fold_bn(w2, params["bn2"])
    w3ae, b3a = _fold_bn(w3a, params["bn3a"])
    w3at, w3al = w3ae[:C_T, :], w3ae[C_T:, :]
    w3be, b3b = _fold_bn(w3b, params["bn3b"])

    # Pad conv4 output channels to 128 -> lane-dense, unmasked seg stores.
    NCP = _round_up(max(nc, 128), 128)
    w4p = jnp.zeros((C_M, NCP), w4.dtype).at[:, :nc].set(w4)
    b4p = jnp.zeros((1, NCP), f32).at[0, :nc].set(b4.astype(f32))

    b1r, b2r = b1.reshape(1, C_T).astype(f32), b2.reshape(1, C_L).astype(f32)
    b3ar, b3br = b3a.reshape(1, C_T).astype(f32), b3b.reshape(1, C_M).astype(f32)
    w1c, w2c = w1e.astype(cdt), w2e.astype(cdt)
    w3atc, w3alc = w3at.astype(cdt), w3al.astype(cdt)
    w3bc, w4c = w3be.astype(cdt), w4p.astype(cdt)

    # ---- tiling -------------------------------------------------------------
    L_lo = ht * wt
    TLo = _pick_lowres_tile(L_lo)
    L_lo_pad = _round_up(L_lo, TLo)
    R = _pick_row_tile(h, w, wt, target_pixels=target_tile_pixels)
    h_pad = _round_up(h, R)
    TR = R * w                                  # high-res pixels per grid step
    n_row_tiles = h_pad // R

    # ---- inputs: NCHW -> channels-last, pixels flattened, bf16 --------------
    xt_nhwc = xt.transpose(0, 2, 3, 1).reshape(N, L_lo, C1)
    if L_lo_pad != L_lo:
        xt_nhwc = jnp.pad(xt_nhwc, ((0, 0), (0, L_lo_pad - L_lo), (0, 0)))
    xt_f = xt_nhwc.astype(cdt)

    xl_nhwc = xl.transpose(0, 2, 3, 1)
    if h_pad != h:
        xl_nhwc = jnp.pad(xl_nhwc, ((0, 0), (0, h_pad - h), (0, 0), (0, 0)))
    xl_f = xl_nhwc.reshape(N, h_pad * w, C2).astype(cdt)

    # Separable bilinear (align_corners=True) resize matrices.
    Ah = jnp.asarray(_interp_matrix(h, ht, n_out_pad=h_pad), dtype=cdt)     # (h_pad, ht)
    Aw = _interp_matrix(w, wt)                                              # (w, wt)
    Bw = jnp.asarray(np.kron(np.eye(R, dtype=np.float32), Aw), dtype=cdt)   # (TR, R*wt)

    vmem_cap = 32 * 1024 * 1024
    cparams2 = pltpu.CompilerParams(dimension_semantics=("parallel", "parallel"),
                                    vmem_limit_bytes=vmem_cap)
    cparams1 = pltpu.CompilerParams(dimension_semantics=("parallel",),
                                    vmem_limit_bytes=vmem_cap)

    # ---- kernel 1: low-res conv1+BN+ReLU and the xt-half of conv3a (+b3a) ---
    p_low = pl.pallas_call(
        _lowres_kernel,
        out_shape=jax.ShapeDtypeStruct((N, L_lo_pad, C_T), cdt),
        grid=(N, L_lo_pad // TLo),
        in_specs=[
            pl.BlockSpec((1, TLo, C1), lambda n, t: (n, t, 0)),
            pl.BlockSpec((C1, C_T), lambda n, t: (0, 0)),
            pl.BlockSpec((1, C_T), lambda n, t: (0, 0)),
            pl.BlockSpec((C_T, C_T), lambda n, t: (0, 0)),
            pl.BlockSpec((1, C_T), lambda n, t: (0, 0)),
        ],
        out_specs=pl.BlockSpec((1, TLo, C_T), lambda n, t: (n, t, 0)),
        compiler_params=cparams2,
    )(xt_f, w1c, b1r, w3atc, b3ar)
    if L_lo_pad != L_lo:
        p_low = p_low[:, :L_lo, :]

    # ---- kernel 2: height-direction resize (tiny) ---------------------------
    # (N, L_lo, C_T) -> (N, ht, wt*C_T) is a contiguity-preserving (free) reshape.
    p_rows = p_low.reshape(N, ht, wt * C_T)
    pm = pl.pallas_call(
        _height_resize_kernel,
        out_shape=jax.ShapeDtypeStruct((N, h_pad, wt * C_T), cdt),
        grid=(N,),
        in_specs=[
            pl.BlockSpec((h_pad, ht), lambda n: (0, 0)),
            pl.BlockSpec((1, ht, wt * C_T), lambda n: (n, 0, 0)),
        ],
        out_specs=pl.BlockSpec((1, h_pad, wt * C_T), lambda n: (n, 0, 0)),
        compiler_params=cparams1,
    )(Ah, p_rows)
    # (N, h_pad, wt*C_T) -> (N, h_pad*wt, C_T): free reshape back to (pixel, C).
    pm_f = pm.reshape(N, h_pad * wt, C_T)

    # ---- kernel 3: fused high-resolution decoder ----------------------------
    seg_f, x_f = pl.pallas_call(
        _decoder_kernel,
        out_shape=(
            jax.ShapeDtypeStruct((N, h_pad * w, NCP), out_dtype),
            jax.ShapeDtypeStruct((N, h_pad * w, C_M), out_dtype),
        ),
        grid=(N, n_row_tiles),
        in_specs=[
            pl.BlockSpec((1, R * wt, C_T), lambda n, t: (n, t, 0)),   # pm tile
            pl.BlockSpec((TR, R * wt), lambda n, t: (0, 0)),          # kron(I_R, A_w)
            pl.BlockSpec((1, TR, C2), lambda n, t: (n, t, 0)),        # xl pixels
            pl.BlockSpec((C2, C_L), lambda n, t: (0, 0)),             # w2 (folded BN)
            pl.BlockSpec((1, C_L), lambda n, t: (0, 0)),              # b2
            pl.BlockSpec((C_L, C_T), lambda n, t: (0, 0)),            # w3a (xl half)
            pl.BlockSpec((C_T, C_M), lambda n, t: (0, 0)),            # w3b
            pl.BlockSpec((1, C_M), lambda n, t: (0, 0)),              # b3b
            pl.BlockSpec((C_M, NCP), lambda n, t: (0, 0)),            # w4 (padded)
            pl.BlockSpec((1, NCP), lambda n, t: (0, 0)),              # b4 (padded)
        ],
        out_specs=(
            pl.BlockSpec((1, TR, NCP), lambda n, t: (n, t, 0)),
            pl.BlockSpec((1, TR, C_M), lambda n, t: (n, t, 0)),
        ),
        compiler_params=cparams2,
    )(pm_f, Bw, xl_f, w2c, b2r, w3alc, w3bc, b3br, w4c, b4p)

    # Back to NCHW (PyTorch layout); drop channel / row padding.
    L_hi = h * w
    seg = seg_f[:, :L_hi, :nc].reshape(N, h, w, nc).transpose(0, 3, 1, 2)
    xfeat = x_f[:, :L_hi, :].reshape(N, h, w, C_M).transpose(0, 3, 1, 2)
    return seg, xfeat


# --------------------------------------------------------------------------
# Pure-JAX reference (matches the PyTorch forward, eval mode, f32)
# --------------------------------------------------------------------------
def _resize_bilinear_align_corners(x, out_h, out_w):
    def axis_coords(n_out, n_in):
        if n_out == 1 or n_in == 1:
            z = jnp.zeros((n_out,), jnp.int32)
            return z, z, jnp.zeros((n_out,), jnp.float32)
        pos = jnp.arange(n_out, dtype=jnp.float32) * ((n_in - 1) / (n_out - 1))
        lo = jnp.clip(jnp.floor(pos).astype(jnp.int32), 0, n_in - 2)
        frac = pos - lo.astype(jnp.float32)
        return lo, lo + 1, frac

    hlo, hhi, hf = axis_coords(out_h, x.shape[2])
    wlo, whi, wf = axis_coords(out_w, x.shape[3])
    top = (x[:, :, hlo, :] * (1.0 - hf)[None, None, :, None]
           + x[:, :, hhi, :] * hf[None, None, :, None])
    return (top[:, :, :, wlo] * (1.0 - wf)[None, None, None, :]
            + top[:, :, :, whi] * wf[None, None, None, :])


def ce2p_decoder_reference(xt, xl, params):
    P = jax.lax.Precision.HIGHEST

    def conv1x1(x, wmat):
        return jnp.einsum("nihw,io->nohw", x, wmat, precision=P)

    def bn(x, bnp):
        gamma, beta, mean, var = bnp
        inv = gamma / jnp.sqrt(var + _BN_EPS)
        return ((x - mean[None, :, None, None]) * inv[None, :, None, None]
                + beta[None, :, None, None])

    relu = lambda v: jnp.maximum(v, 0.0)
    h, w = xl.shape[2], xl.shape[3]

    t = relu(bn(conv1x1(xt, params["w1"]), params["bn1"]))
    t_up = _resize_bilinear_align_corners(t, h, w)
    v = relu(bn(conv1x1(xl, params["w2"]), params["bn2"]))
    xcat = jnp.concatenate([t_up, v], axis=1)
    z = relu(bn(conv1x1(xcat, params["w3a"]), params["bn3a"]))
    z = relu(bn(conv1x1(z, params["w3b"]), params["bn3b"]))
    seg = conv1x1(z, params["w4"]) + params["b4"][None, :, None, None]
    return seg, z


# --------------------------------------------------------------------------
# Self-test
# --------------------------------------------------------------------------
def _bn_params(key, c):
    k1, k2, k3, k4 = jax.random.split(key, 4)
    gamma = jax.random.uniform(k1, (c,), minval=0.5, maxval=1.5, dtype=jnp.float32)
    beta = 0.1 * jax.random.normal(k2, (c,), dtype=jnp.float32)
    mean = 0.1 * jax.random.normal(k3, (c,), dtype=jnp.float32)
    var = jax.random.uniform(k4, (c,), minval=0.5, maxval=1.5, dtype=jnp.float32)
    return gamma, beta, mean, var


if __name__ == "__main__":
    # Small shapes consistent with CE2P_Decoder_Module(num_classes, inplane1, inplane2)
    N = 2
    C1, C2 = 64, 32            # inplane1, inplane2 (constructor args)
    ht, wt = 8, 8              # xt spatial (low res)
    h, w = 16, 16              # xl spatial (target res)
    nc = 8                     # num_classes
    C_T, C_L = 256, 48         # fixed internal widths of the module

    key = jax.random.PRNGKey(0)
    ks = jax.random.split(key, 12)

    xt = jax.random.normal(ks[0], (N, C1, ht, wt), dtype=jnp.float32)
    xl = jax.random.normal(ks[1], (N, C2, h, w), dtype=jnp.float32)

    params = {
        "w1": 0.05 * jax.random.normal(ks[2], (C1, C_T), dtype=jnp.float32),
        "bn1": _bn_params(ks[3], C_T),
        "w2": 0.05 * jax.random.normal(ks[4], (C2, C_L), dtype=jnp.float32),
        "bn2": _bn_params(ks[5], C_L),
        "w3a": 0.05 * jax.random.normal(ks[6], (C_T + C_L, C_T), dtype=jnp.float32),
        "bn3a": _bn_params(ks[7], C_T),
        "w3b": 0.05 * jax.random.normal(ks[8], (C_T, C_T), dtype=jnp.float32),
        "bn3b": _bn_params(ks[9], C_T),
        "w4": 0.05 * jax.random.normal(ks[10], (C_T, nc), dtype=jnp.float32),
        "b4": 0.1 * jax.random.normal(ks[11], (nc,), dtype=jnp.float32),
    }

    fwd = jax.jit(ce2p_decoder_forward)
    seg, xfeat = fwd(xt, xl, params)
    jax.block_until_ready(seg)
    jax.block_until_ready(xfeat)

    seg_ref, x_ref = ce2p_decoder_reference(xt, xl, params)

    assert seg.shape == (N, nc, h, w), seg.shape
    assert xfeat.shape == (N, C_T, h, w), xfeat.shape
    # bf16 compute (f32 accumulation) vs f32 reference -> loose-but-meaningful tol.
    seg_err = float(jnp.max(jnp.abs(seg - seg_ref)))
    x_err = float(jnp.max(jnp.abs(xfeat - x_ref)))
    assert jnp.allclose(seg, seg_ref, rtol=5e-2, atol=5e-2), f"seg mismatch {seg_err}"
    assert jnp.allclose(xfeat, x_ref, rtol=5e-2, atol=5e-2), f"x mismatch {x_err}"

    print("KERNEL_OK")
</pallas_src>

<mosaic_0001>
module attributes {stable_mosaic.version = 11 : i64} {
  func.func @_lowres_kernel(%arg0: i32, %arg1: i32, %arg2: memref<1x64x64xbf16, #tpu.memory_space<vmem>>, %arg3: memref<64x256xbf16, #tpu.memory_space<vmem>>, %arg4: memref<1x256xf32, #tpu.memory_space<vmem>>, %arg5: memref<256x256xbf16, #tpu.memory_space<vmem>>, %arg6: memref<1x256xf32, #tpu.memory_space<vmem>>, %arg7: memref<1x64x256xbf16, #tpu.memory_space<vmem>>) attributes {dimension_semantics = [#tpu.dimension_semantics<parallel>, #tpu.dimension_semantics<parallel>], iteration_bounds = array<i64: 2, 1>, scalar_prefetch = 0 : i64, scratch_operands = 0 : i64, tpu.core_type = #tpu.core_type<tc>, window_params = [{transform_indices = @transform_0, window_bounds = array<i64: 1, 64, 64>}, {pipeline_mode = #tpu.pipeline_mode<synchronous>, transform_indices = @transform_1, window_bounds = array<i64: 64, 256>}, {pipeline_mode = #tpu.pipeline_mode<synchronous>, transform_indices = @transform_2, window_bounds = array<i64: 1, 256>}, {pipeline_mode = #tpu.pipeline_mode<synchronous>, transform_indices = @transform_3, window_bounds = array<i64: 256, 256>}, {pipeline_mode = #tpu.pipeline_mode<synchronous>, transform_indices = @transform_4, window_bounds = array<i64: 1, 256>}, {transform_indices = @transform_5, window_bounds = array<i64: 1, 64, 256>}]} {
    %c0 = arith.constant 0 : index
    %c0_0 = arith.constant 0 : index
    %c0_1 = arith.constant 0 : index
    %0 = vector.load %arg2[%c0, %c0_0, %c0_1] : memref<1x64x64xbf16, #tpu.memory_space<vmem>>, vector<1x64x64xbf16>
    %1 = vector.shape_cast %0 : vector<1x64x64xbf16> to vector<64x64xbf16>
    %c0_2 = arith.constant 0 : index
    %c0_3 = arith.constant 0 : index
    %2 = vector.load %arg3[%c0_2, %c0_3] : memref<64x256xbf16, #tpu.memory_space<vmem>>, vector<64x256xbf16>
    %cst = arith.constant dense<0.000000e+00> : vector<64x256xf32>
    %3 = tpu.matmul %1, %2, %cst {dimension_numbers = #tpu.dot_dimension_numbers<[1], [0], [0], [1], [0, 0, 1, 1], [], []>} : vector<64x64xbf16>, vector<64x256xbf16>, vector<64x256xf32> -> vector<64x256xf32>
    %c0_4 = arith.constant 0 : index
    %c0_5 = arith.constant 0 : index
    %4 = vector.load %arg4[%c0_4, %c0_5] : memref<1x256xf32, #tpu.memory_space<vmem>>, vector<1x256xf32>
    %5 = vector.broadcast %4 : vector<1x256xf32> to vector<64x256xf32>
    %6 = arith.addf %3, %5 : vector<64x256xf32>
    %cst_6 = arith.constant 0.000000e+00 : f32
    %7 = vector.broadcast %cst_6 : f32 to vector<64x256xf32>
    %8 = arith.maximumf %6, %7 : vector<64x256xf32>
    %9 = arith.truncf %8 : vector<64x256xf32> to vector<64x256xbf16>
    %c0_7 = arith.constant 0 : index
    %c0_8 = arith.constant 0 : index
    %10 = vector.load %arg5[%c0_7, %c0_8] : memref<256x256xbf16, #tpu.memory_space<vmem>>, vector<256x256xbf16>
    %cst_9 = arith.constant dense<0.000000e+00> : vector<64x256xf32>
    %11 = tpu.matmul %9, %10, %cst_9 {dimension_numbers = #tpu.dot_dimension_numbers<[1], [0], [0], [1], [0, 0, 1, 1], [], []>} : vector<64x256xbf16>, vector<256x256xbf16>, vector<64x256xf32> -> vector<64x256xf32>
    %c0_10 = arith.constant 0 : index
    %c0_11 = arith.constant 0 : index
    %12 = vector.load %arg6[%c0_10, %c0_11] : memref<1x256xf32, #tpu.memory_space<vmem>>, vector<1x256xf32>
    %13 = vector.broadcast %12 : vector<1x256xf32> to vector<64x256xf32>
    %14 = arith.addf %11, %13 : vector<64x256xf32>
    %15 = arith.truncf %14 : vector<64x256xf32> to vector<64x256xbf16>
    %c0_12 = arith.constant 0 : index
    %c0_13 = arith.constant 0 : index
    %c0_14 = arith.constant 0 : index
    %16 = vector.load %arg7[%c0_12, %c0_13, %c0_14] : memref<1x64x256xbf16, #tpu.memory_space<vmem>>, vector<1x64x256xbf16>
    %17 = vector.shape_cast %16 : vector<1x64x256xbf16> to vector<64x256xbf16>
    %18 = vector.shape_cast %15 : vector<64x256xbf16> to vector<1x64x256xbf16>
    tpu.vector_store %arg7[%c0_12, %c0_13, %c0_14], %18 {strides = array<i32>} : memref<1x64x256xbf16, #tpu.memory_space<vmem>>, vector<1x64x256xbf16>,
    return
  }
  func.func @transform_0(%arg0: i32, %arg1: i32) -> (i32, i32, i32) {
    %c0_i32 = arith.constant 0 : i32
    %c0_i32_0 = arith.constant 0 : i32
    return %arg0, %arg1, %c0_i32 : i32, i32, i32
  }
  func.func @transform_1(%arg0: i32, %arg1: i32) -> (i32, i32) {
    %c0_i32 = arith.constant 0 : i32
    %c0_i32_0 = arith.constant 0 : i32
    %c0_i32_1 = arith.constant 0 : i32
    return %c0_i32, %c0_i32_0 : i32, i32
  }
  func.func @transform_2(%arg0: i32, %arg1: i32) -> (i32, i32) {
    %c0_i32 = arith.constant 0 : i32
    %c0_i32_0 = arith.constant 0 : i32
    %c0_i32_1 = arith.constant 0 : i32
    return %c0_i32, %c0_i32_0 : i32, i32
  }
  func.func @transform_3(%arg0: i32, %arg1: i32) -> (i32, i32) {
    %c0_i32 = arith.constant 0 : i32
    %c0_i32_0 = arith.constant 0 : i32
    %c0_i32_1 = arith.constant 0 : i32
    return %c0_i32, %c0_i32_0 : i32, i32
  }
  func.func @transform_4(%arg0: i32, %arg1: i32) -> (i32, i32) {
    %c0_i32 = arith.constant 0 : i32
    %c0_i32_0 = arith.constant 0 : i32
    %c0_i32_1 = arith.constant 0 : i32
    return %c0_i32, %c0_i32_0 : i32, i32
  }
  func.func @transform_5(%arg0: i32, %arg1: i32) -> (i32, i32, i32) {
    %c0_i32 = arith.constant 0 : i32
    %c0_i32_0 = arith.constant 0 : i32
    return %arg0, %arg1, %c0_i32 : i32, i32, i32
  }
}

module attributes {stable_mosaic.version = 11 : i64} {
  func.func @_height_resize_kernel(%arg0: i32, %arg1: memref<16x8xbf16, #tpu.memory_space<vmem>>, %arg2: memref<1x8x2048xbf16, #tpu.memory_space<vmem>>, %arg3: memref<1x16x2048xbf16, #tpu.memory_space<vmem>>) attributes {dimension_semantics = [#tpu.dimension_semantics<parallel>], iteration_bounds = array<i64: 2>, scalar_prefetch = 0 : i64, scratch_operands = 0 : i64, tpu.core_type = #tpu.core_type<tc>, window_params = [{pipeline_mode = #tpu.pipeline_mode<synchronous>, transform_indices = @transform_0, window_bounds = array<i64: 16, 8>}, {transform_indices = @transform_1, window_bounds = array<i64: 1, 8, 2048>}, {transform_indices = @transform_2, window_bounds = array<i64: 1, 16, 2048>}]} {
    %c0 = arith.constant 0 : index
    %c0_0 = arith.constant 0 : index
    %0 = vector.load %arg1[%c0, %c0_0] : memref<16x8xbf16, #tpu.memory_space<vmem>>, vector<16x8xbf16>
    %c0_1 = arith.constant 0 : index
    %c0_2 = arith.constant 0 : index
    %c0_3 = arith.constant 0 : index
    %1 = vector.load %arg2[%c0_1, %c0_2, %c0_3] : memref<1x8x2048xbf16, #tpu.memory_space<vmem>>, vector<1x8x2048xbf16>
    %2 = vector.shape_cast %1 : vector<1x8x2048xbf16> to vector<8x2048xbf16>
    %cst = arith.constant dense<0.000000e+00> : vector<16x2048xf32>
    %3 = tpu.matmul %0, %2, %cst {dimension_numbers = #tpu.dot_dimension_numbers<[1], [0], [0], [1], [0, 0, 1, 1], [], []>} : vector<16x8xbf16>, vector<8x2048xbf16>, vector<16x2048xf32> -> vector<16x2048xf32>
    %4 = arith.truncf %3 : vector<16x2048xf32> to vector<16x2048xbf16>
    %c0_4 = arith.constant 0 : index
    %c0_5 = arith.constant 0 : index
    %c0_6 = arith.constant 0 : index
    %5 = vector.load %arg3[%c0_4, %c0_5, %c0_6] : memref<1x16x2048xbf16, #tpu.memory_space<vmem>>, vector<1x16x2048xbf16>
    %6 = vector.shape_cast %5 : vector<1x16x2048xbf16> to vector<16x2048xbf16>
    %7 = vector.shape_cast %4 : vector<16x2048xbf16> to vector<1x16x2048xbf16>
    tpu.vector_store %arg3[%c0_4, %c0_5, %c0_6], %7 {strides = array<i32>} : memref<1x16x2048xbf16, #tpu.memory_space<vmem>>, vector<1x16x2048xbf16>,
    return
  }
  func.func @transform_0(%arg0: i32) -> (i32, i32) {
    %c0_i32 = arith.constant 0 : i32
    %c0_i32_0 = arith.constant 0 : i32
    %c0_i32_1 = arith.constant 0 : i32
    return %c0_i32, %c0_i32_0 : i32, i32
  }
  func.func @transform_1(%arg0: i32) -> (i32, i32, i32) {
    %c0_i32 = arith.constant 0 : i32
    %c0_i32_0 = arith.constant 0 : i32
    %c0_i32_1 = arith.constant 0 : i32
    return %arg0, %c0_i32, %c0_i32_0 : i32, i32, i32
  }
  func.func @transform_2(%arg0: i32) -> (i32, i32, i32) {
    %c0_i32 = arith.constant 0 : i32
    %c0_i32_0 = arith.constant 0 : i32
    %c0_i32_1 = arith.constant 0 : i32
    return %arg0, %c0_i32, %c0_i32_0 : i32, i32, i32
  }
}

module attributes {stable_mosaic.version = 11 : i64} {
  func.func @_decoder_kernel(%arg0: i32, %arg1: i32, %arg2: memref<1x128x256xbf16, #tpu.memory_space<vmem>>, %arg3: memref<256x128xbf16, #tpu.memory_space<vmem>>, %arg4: memref<1x256x32xbf16, #tpu.memory_space<vmem>>, %arg5: memref<32x48xbf16, #tpu.memory_space<vmem>>, %arg6: memref<1x48xf32, #tpu.memory_space<vmem>>, %arg7: memref<48x256xbf16, #tpu.memory_space<vmem>>, %arg8: memref<256x256xbf16, #tpu.memory_space<vmem>>, %arg9: memref<1x256xf32, #tpu.memory_space<vmem>>, %arg10: memref<256x128xbf16, #tpu.memory_space<vmem>>, %arg11: memref<1x128xf32, #tpu.memory_space<vmem>>, %arg12: memref<1x256x128xf32, #tpu.memory_space<vmem>>, %arg13: memref<1x256x256xf32, #tpu.memory_space<vmem>>) attributes {dimension_semantics = [#tpu.dimension_semantics<parallel>, #tpu.dimension_semantics<parallel>], iteration_bounds = array<i64: 2, 1>, scalar_prefetch = 0 : i64, scratch_operands = 0 : i64, tpu.core_type = #tpu.core_type<tc>, window_params = [{transform_indices = @transform_0, window_bounds = array<i64: 1, 128, 256>}, {pipeline_mode = #tpu.pipeline_mode<synchronous>, transform_indices = @transform_1, window_bounds = array<i64: 256, 128>}, {transform_indices = @transform_2, window_bounds = array<i64: 1, 256, 32>}, {pipeline_mode = #tpu.pipeline_mode<synchronous>, transform_indices = @transform_3, window_bounds = array<i64: 32, 48>}, {pipeline_mode = #tpu.pipeline_mode<synchronous>, transform_indices = @transform_4, window_bounds = array<i64: 1, 48>}, {pipeline_mode = #tpu.pipeline_mode<synchronous>, transform_indices = @transform_5, window_bounds = array<i64: 48, 256>}, {pipeline_mode = #tpu.pipeline_mode<synchronous>, transform_indices = @transform_6, window_bounds = array<i64: 256, 256>}, {pipeline_mode = #tpu.pipeline_mode<synchronous>, transform_indices = @transform_7, window_bounds = array<i64: 1, 256>}, {pipeline_mode = #tpu.pipeline_mode<synchronous>, transform_indices = @transform_8, window_bounds = array<i64: 256, 128>}, {pipeline_mode = #tpu.pipeline_mode<synchronous>, transform_indices = @transform_9, window_bounds = array<i64: 1, 128>}, {transform_indices = @transform_10, window_bounds = array<i64: 1, 256, 128>}, {transform_indices = @transform_11, window_bounds = array<i64: 1, 256, 256>}]} {
    %c0 = arith.constant 0 : index
    %c0_0 = arith.constant 0 : index
    %0 = vector.load %arg3[%c0, %c0_0] : memref<256x128xbf16, #tpu.memory_space<vmem>>, vector<256x128xbf16>
    %c0_1 = arith.constant 0 : index
    %c0_2 = arith.constant 0 : index
    %c0_3 = arith.constant 0 : index
    %1 = vector.load %arg2[%c0_1, %c0_2, %c0_3] : memref<1x128x256xbf16, #tpu.memory_space<vmem>>, vector<1x128x256xbf16>
    %2 = vector.shape_cast %1 : vector<1x128x256xbf16> to vector<128x256xbf16>
    %cst = arith.constant dense<0.000000e+00> : vector<256x256xf32>
    %3 = tpu.matmul %0, %2, %cst {dimension_numbers = #tpu.dot_dimension_numbers<[1], [0], [0], [1], [0, 0, 1, 1], [], []>} : vector<256x128xbf16>, vector<128x256xbf16>, vector<256x256xf32> -> vector<256x256xf32>
    %c0_4 = arith.constant 0 : index
    %c0_5 = arith.constant 0 : index
    %c0_6 = arith.constant 0 : index
    %4 = vector.load %arg4[%c0_4, %c0_5, %c0_6] : memref<1x256x32xbf16, #tpu.memory_space<vmem>>, vector<1x256x32xbf16>
    %5 = vector.shape_cast %4 : vector<1x256x32xbf16> to vector<256x32xbf16>
    %c0_7 = arith.constant 0 : index
    %c0_8 = arith.constant 0 : index
    %6 = vector.load %arg5[%c0_7, %c0_8] : memref<32x48xbf16, #tpu.memory_space<vmem>>, vector<32x48xbf16>
    %cst_9 = arith.constant dense<0.000000e+00> : vector<256x48xf32>
    %7 = tpu.matmul %5, %6, %cst_9 {dimension_numbers = #tpu.dot_dimension_numbers<[1], [0], [0], [1], [0, 0, 1, 1], [], []>} : vector<256x32xbf16>, vector<32x48xbf16>, vector<256x48xf32> -> vector<256x48xf32>
    %c0_10 = arith.constant 0 : index
    %c0_11 = arith.constant 0 : index
    %8 = vector.load %arg6[%c0_10, %c0_11] : memref<1x48xf32, #tpu.memory_space<vmem>>, vector<1x48xf32>
    %9 = vector.broadcast %8 : vector<1x48xf32> to vector<256x48xf32>
    %10 = arith.addf %7, %9 : vector<256x48xf32>
    %cst_12 = arith.constant 0.000000e+00 : f32
    %11 = vector.broadcast %cst_12 : f32 to vector<256x48xf32>
    %12 = arith.maximumf %10, %11 : vector<256x48xf32>
    %13 = arith.truncf %12 : vector<256x48xf32> to vector<256x48xbf16>
    %c0_13 = arith.constant 0 : index
    %c0_14 = arith.constant 0 : index
    %14 = vector.load %arg7[%c0_13, %c0_14] : memref<48x256xbf16, #tpu.memory_space<vmem>>, vector<48x256xbf16>
    %cst_15 = arith.constant dense<0.000000e+00> : vector<256x256xf32>
    %15 = tpu.matmul %13, %14, %cst_15 {dimension_numbers = #tpu.dot_dimension_numbers<[1], [0], [0], [1], [0, 0, 1, 1], [], []>} : vector<256x48xbf16>, vector<48x256xbf16>, vector<256x256xf32> -> vector<256x256xf32>
    %16 = arith.addf %3, %15 : vector<256x256xf32>
    %cst_16 = arith.constant 0.000000e+00 : f32
    %17 = vector.broadcast %cst_16 : f32 to vector<256x256xf32>
    %18 = arith.maximumf %16, %17 : vector<256x256xf32>
    %19 = arith.truncf %18 : vector<256x256xf32> to vector<256x256xbf16>
    %c0_17 = arith.constant 0 : index
    %c0_18 = arith.constant 0 : index
    %20 = vector.load %arg8[%c0_17, %c0_18] : memref<256x256xbf16, #tpu.memory_space<vmem>>, vector<256x256xbf16>
    %cst_19 = arith.constant dense<0.000000e+00> : vector<256x256xf32>
    %21 = tpu.matmul %19, %20, %cst_19 {dimension_numbers = #tpu.dot_dimension_numbers<[1], [0], [0], [1], [0, 0, 1, 1], [], []>} : vector<256x256xbf16>, vector<256x256xbf16>, vector<256x256xf32> -> vector<256x256xf32>
    %c0_20 = arith.constant 0 : index
    %c0_21 = arith.constant 0 : index
    %22 = vector.load %arg9[%c0_20, %c0_21] : memref<1x256xf32, #tpu.memory_space<vmem>>, vector<1x256xf32>
    %23 = vector.broadcast %22 : vector<1x256xf32> to vector<256x256xf32>
    %24 = arith.addf %21, %23 : vector<256x256xf32>
    %cst_22 = arith.constant 0.000000e+00 : f32
    %25 = vector.broadcast %cst_22 : f32 to vector<256x256xf32>
    %26 = arith.maximumf %24, %25 : vector<256x256xf32>
    %c0_23 = arith.constant 0 : index
    %c0_24 = arith.constant 0 : index
    %c0_25 = arith.constant 0 : index
    %27 = vector.load %arg13[%c0_23, %c0_24, %c0_25] : memref<1x256x256xf32, #tpu.memory_space<vmem>>, vector<1x256x256xf32>
    %28 = vector.shape_cast %27 : vector<1x256x256xf32> to vector<256x256xf32>
    %29 = vector.shape_cast %26 : vector<256x256xf32> to vector<1x256x256xf32>
    tpu.vector_store %arg13[%c0_23, %c0_24, %c0_25], %29 {strides = array<i32>} : memref<1x256x256xf32, #tpu.memory_space<vmem>>, vector<1x256x256xf32>,
    %30 = arith.truncf %26 : vector<256x256xf32> to vector<256x256xbf16>
    %c0_26 = arith.constant 0 : index
    %c0_27 = arith.constant 0 : index
    %31 = vector.load %arg10[%c0_26, %c0_27] : memref<256x128xbf16, #tpu.memory_space<vmem>>, vector<256x128xbf16>
    %cst_28 = arith.constant dense<0.000000e+00> : vector<256x128xf32>
    %32 = tpu.matmul %30, %31, %cst_28 {dimension_numbers = #tpu.dot_dimension_numbers<[1], [0], [0], [1], [0, 0, 1, 1], [], []>} : vector<256x256xbf16>, vector<256x128xbf16>, vector<256x128xf32> -> vector<256x128xf32>
    %c0_29 = arith.constant 0 : index
    %c0_30 = arith.constant 0 : index
    %33 = vector.load %arg11[%c0_29, %c0_30] : memref<1x128xf32, #tpu.memory_space<vmem>>, vector<1x128xf32>
    %34 = vector.broadcast %33 : vector<1x128xf32> to vector<256x128xf32>
    %35 = arith.addf %32, %34 : vector<256x128xf32>
    %c0_31 = arith.constant 0 : index
    %c0_32 = arith.constant 0 : index
    %c0_33 = arith.constant 0 : index
    %36 = vector.load %arg12[%c0_31, %c0_32, %c0_33] : memref<1x256x128xf32, #tpu.memory_space<vmem>>, vector<1x256x128xf32>
    %37 = vector.shape_cast %36 : vector<1x256x128xf32> to vector<256x128xf32>
    %38 = vector.shape_cast %35 : vector<256x128xf32> to vector<1x256x128xf32>
    tpu.vector_store %arg12[%c0_31, %c0_32, %c0_33], %38 {strides = array<i32>} : memref<1x256x128xf32, #tpu.memory_space<vmem>>, vector<1x256x128xf32>,
    return
  }
  func.func @transform_0(%arg0: i32, %arg1: i32) -> (i32, i32, i32) {
    %c0_i32 = arith.constant 0 : i32
    %c0_i32_0 = arith.constant 0 : i32
    return %arg0, %arg1, %c0_i32 : i32, i32, i32
  }
  func.func @transform_1(%arg0: i32, %arg1: i32) -> (i32, i32) {
    %c0_i32 = arith.constant 0 : i32
    %c0_i32_0 = arith.constant 0 : i32
    %c0_i32_1 = arith.constant 0 : i32
    return %c0_i32, %c0_i32_0 : i32, i32
  }
  func.func @transform_2(%arg0: i32, %arg1: i32) -> (i32, i32, i32) {
    %c0_i32 = arith.constant 0 : i32
    %c0_i32_0 = arith.constant 0 : i32
    return %arg0, %arg1, %c0_i32 : i32, i32, i32
  }
  func.func @transform_3(%arg0: i32, %arg1: i32) -> (i32, i32) {
    %c0_i32 = arith.constant 0 : i32
    %c0_i32_0 = arith.constant 0 : i32
    %c0_i32_1 = arith.constant 0 : i32
    return %c0_i32, %c0_i32_0 : i32, i32
  }
  func.func @transform_4(%arg0: i32, %arg1: i32) -> (i32, i32) {
    %c0_i32 = arith.constant 0 : i32
    %c0_i32_0 = arith.constant 0 : i32
    %c0_i32_1 = arith.constant 0 : i32
    return %c0_i32, %c0_i32_0 : i32, i32
  }
  func.func @transform_5(%arg0: i32, %arg1: i32) -> (i32, i32) {
    %c0_i32 = arith.constant 0 : i32
    %c0_i32_0 = arith.constant 0 : i32
    %c0_i32_1 = arith.constant 0 : i32
    return %c0_i32, %c0_i32_0 : i32, i32
  }
  func.func @transform_6(%arg0: i32, %arg1: i32) -> (i32, i32) {
    %c0_i32 = arith.constant 0 : i32
    %c0_i32_0 = arith.constant 0 : i32
    %c0_i32_1 = arith.constant 0 : i32
    return %c0_i32, %c0_i32_0 : i32, i32
  }
  func.func @transform_7(%arg0: i32, %arg1: i32) -> (i32, i32) {
    %c0_i32 = arith.constant 0 : i32
    %c0_i32_0 = arith.constant 0 : i32
    %c0_i32_1 = arith.constant 0 : i32
    return %c0_i32, %c0_i32_0 : i32, i32
  }
  func.func @transform_8(%arg0: i32, %arg1: i32) -> (i32, i32) {
    %c0_i32 = arith.constant 0 : i32
    %c0_i32_0 = arith.constant 0 : i32
    %c0_i32_1 = arith.constant 0 : i32
    return %c0_i32, %c0_i32_0 : i32, i32
  }
  func.func @transform_9(%arg0: i32, %arg1: i32) -> (i32, i32) {
    %c0_i32 = arith.constant 0 : i32
    %c0_i32_0 = arith.constant 0 : i32
    %c0_i32_1 = arith.constant 0 : i32
    return %c0_i32, %c0_i32_0 : i32, i32
  }
  func.func @transform_10(%arg0: i32, %arg1: i32) -> (i32, i32, i32) {
    %c0_i32 = arith.constant 0 : i32
    %c0_i32_0 = arith.constant 0 : i32
    return %arg0, %arg1, %c0_i32 : i32, i32, i32
  }
  func.func @transform_11(%arg0: i32, %arg1: i32) -> (i32, i32, i32) {
    %c0_i32 = arith.constant 0 : i32
    %c0_i32_0 = arith.constant 0 : i32
    return %arg0, %arg1, %c0_i32 : i32, i32, i32
  }
}

</mosaic_0001>

<bundles_post_ra>
// kernel: ce2p_decoder_forward.3
= control target key start
LH: loop header
LB: loop body
LE: loop exit
PB: predicated region body
PF: predicated region fallthrough
CT: control target
= control target key end

     0   :  { %s1144_s18 = smov 0   ;;  %s1146_s19 = smov 0   ;;  %s1339_s0 = inlined_call_operand.vmem [shape: bf16[2,64,64], index: 0, kind: input, shape index: {}]   ;;  %s1340_s1 = inlined_call_operand.vmem [shape: bf16[64,256], index: 1, kind: input, shape index: {}]   ;;  %s1341_s2 = inlined_call_operand.vmem [shape: f32[1,256], index: 2, kind: input, shape index: {}]   ;;  %s1342_s3 = inlined_call_operand.vmem [shape: bf16[256,256], index: 3, kind: input, shape index: {}]   ;;  %s1343_s4 = inlined_call_operand.vmem [shape: f32[1,256], index: 4, kind: input, shape index: {}]   ;;  %s1344_s5 = inlined_call_operand.vmem [shape: bf16[2,64,256], index: 5, kind: output, shape index: {}]  }
   0x1   :  { %s1148_s20 = smov 0  }
   0x2 LB: > { %s27_s21 = sadd.s32 1, %s1107_s19  ;;  %p895_p0 = scmp.ge.s32.totalorder %s1111_s20, 1  ;;  %s1111_s20 = sphi %s1148_s20, %s15_s20   ;;  %s1107_s19 = sphi %s1146_s19, %s1346_s19   ;;  %s1103_s18 = sphi %s1144_s18, %s1345_s18  }
   0x3   : > { %p29_p1 = scmp.ge.s32.totalorder %s27_s21, 2  ;;  %p208_p2 = scmp.lt.s32.totalorder %s1111_s20, 3 }
   0x5   : > { %s1348_s21 = smov (%p29_p1, %s27_s21), 0  ;;  %p209_p3 = pnand %p895_p0, %p208_p2 }
   0x6   : > { %v1025_v0 = vld [vmem:[%s1340_s1 + $0x4] ss:$8 sps:$4 sm:$0xff] (!%p209_p3)   ;;  %p246_p4 = scmp.lt.s32.totalorder (!%p209_p3), %s1103_s18, 1  ;;  %v1027_v1 = vld [vmem:[%s1340_s1] ss:$8 sps:$4 sm:$0xff] (!%p209_p3)   ;;  %v1113_v2 = vmov (!%p209_p3), 0   ;;  %v285_v45 = vlaneseq (!%p209_p3) }
   0x7   : > { %212 = sbr.rel (%p209_p3) target bundleno = 489 (0x1e9), region = 40  ;;  %400 = vmatprep.mubr.bf16.mxu0 (!%p209_p3), %v1113_v2  ;;  %368 = vmatprep.subr.bf16.mxu0 (!%p209_p3), %v1025_v0  ;;  %v1028_v3 = vld [vmem:[%s1340_s1 + $0x14] ss:$8 sps:$4 sm:$0xff] (!%p209_p3)   ;;  %v1030_v4 = vld [vmem:[%s1340_s1 + $0x10] ss:$8 sps:$4 sm:$0xff] (!%p209_p3)   ;;  %vm355_vm0 = vcmask (!%p209_p3), 523264  }
   0x8   : > { %369 = vmatpush1.bf16.msra.mxu0 (!%p209_p3), %v1027_v1  ;;  %v1031_v5 = vld [vmem:[%s1340_s1 + $0x24] ss:$8 sps:$4 sm:$0xff] (!%p209_p3)   ;;  %v1033_v6 = vld [vmem:[%s1340_s1 + $0x20] ss:$8 sps:$4 sm:$0xff] (!%p209_p3)   ;;  %v1034_v7 = vld [vmem:[%s1340_s1 + $0x34] ss:$8 sps:$4 sm:$0xff] (!%p209_p3)  }
   0x9   : > { %370 = vmatprep.subr.bf16.mxu0 (!%p209_p3), %v1028_v3  ;;  %v1043_v8 = vld [vmem:[%s1342_s3 + $0x4] ss:$8 sps:$4 sm:$0xff] (!%p209_p3)   ;;  %v1036_v9 = vld [vmem:[%s1340_s1 + $0x30] ss:$8 sps:$4 sm:$0xff] (!%p209_p3)   ;;  %v1041_v10 = vld [vmem:[%s1342_s3] ss:$8 sps:$4 sm:$0xff] (!%p209_p3)  }
   0xa   : > { %v1046_v11 = vld [vmem:[%s1342_s3 + $0x14] ss:$8 sps:$4 sm:$0xff] (!%p209_p3)   ;;  %968 = vmatprep.subr.bf16.mxu1 (!%p209_p3), %v1043_v8  ;;  %v1044_v13 = vld [vmem:[%s1342_s3 + $0x10] ss:$8 sps:$4 sm:$0xff] (!%p209_p3)   ;;  %v1049_v14 = vld [vmem:[%s1342_s3 + $0x24] ss:$8 sps:$4 sm:$0xff] (!%p209_p3)  }
   0xb   : > { %984 = vmatpush1.bf16.msra.mxu1 (!%p209_p3), %v1041_v10  ;;  %v1047_v15 = vld [vmem:[%s1342_s3 + $0x20] ss:$8 sps:$4 sm:$0xff] (!%p209_p3)   ;;  %v1052_v16 = vld [vmem:[%s1342_s3 + $0x34] ss:$8 sps:$4 sm:$0xff] (!%p209_p3)   ;;  %v1050_v18 = vld [vmem:[%s1342_s3 + $0x30] ss:$8 sps:$4 sm:$0xff] (!%p209_p3)  }
   0xc   : > { %371 = vmatpush1.bf16.msra.mxu0 (!%p209_p3), %v1030_v4  ;;  %969 = vmatprep.subr.bf16.mxu1 (!%p209_p3), %v1046_v11  ;;  %v1055_v19 = vld [vmem:[%s1342_s3 + $0x44] ss:$8 sps:$4 sm:$0xff] (!%p209_p3)   ;;  %v1053_v20 = vld [vmem:[%s1342_s3 + $0x40] ss:$8 sps:$4 sm:$0xff] (!%p209_p3)   ;;  %v1058_v21 = vld [vmem:[%s1342_s3 + $0x54] ss:$8 sps:$4 sm:$0xff] (!%p209_p3)  }
   0xd   : > { %372 = vmatprep.subr.bf16.mxu0 (!%p209_p3), %v1031_v5  ;;  %v1056_v23 = vld [vmem:[%s1342_s3 + $0x50] ss:$8 sps:$4 sm:$0xff] (!%p209_p3)   ;;  %v1061_v24 = vld [vmem:[%s1342_s3 + $0x64] ss:$8 sps:$4 sm:$0xff] (!%p209_p3)   ;;  %v1059_v25 = vld [vmem:[%s1342_s3 + $0x60] ss:$8 sps:$4 sm:$0xff] (!%p209_p3)  }
   0xe   : > { %s1350_s18 = smov (!%p246_p4, %s1103_s18), 1  ;;  %v1064_v26 = vld [vmem:[%s1342_s3 + $0x74] ss:$8 sps:$4 sm:$0xff]   ;;  %v1062_v28 = vld [vmem:[%s1342_s3 + $0x70] ss:$8 sps:$4 sm:$0xff]   ;;  %v1298_v46 = vshrl.u32 %v285_v45, 7 }
   0xf   : > { %s958_s7 = sshll.u32 %s1350_s18, 5  ;;  %985 = vmatpush1.bf16.msra.mxu1 %v1044_v13  ;;  %v1067_v29 = vld [vmem:[%s1342_s3 + $0x84] ss:$8 sps:$4 sm:$0xff]   ;;  %v1065_v30 = vld [vmem:[%s1342_s3 + $0x80] ss:$8 sps:$4 sm:$0xff]   ;;  %s959_s27 = sshll.u32 %s1350_s18, 6 }
  0x10   : > { %s1183_s10 = scalar_lea.vmem %s1339_s0, %s958_s7  ;;  %373 = vmatpush1.bf16.msra.mxu0 %v1033_v6  ;;  %970 = vmatprep.subr.bf16.mxu1 %v1049_v14  ;;  %v1070_v31 = vld [vmem:[%s1342_s3 + $0x94] ss:$8 sps:$4 sm:$0xff]   ;;  %v1068_v32 = vld [vmem:[%s1342_s3 + $0x90] ss:$8 sps:$4 sm:$0xff]   ;;  %v1073_v33 = vld [vmem:[%s1342_s3 + $0xa4] ss:$8 sps:$4 sm:$0xff]   ;;  %s1320_s30 = scalar_lea.vmem %s1344_s5, %s959_s27 }
  0x11   : > { %374 = vmatprep.subr.bf16.mxu0 %v1034_v7  ;;  %v1037_v12 = vld [vmem:[%s1183_s10] sm:$0xff]   ;;  %v1038_v17 = vld [vmem:[%s1183_s10 + $0x8] sm:$0xff]   ;;  %v1039_v22 = vld [vmem:[%s1183_s10 + $0x10] sm:$0xff]   ;;  %v287_v47 = vsub.s32 0, %v1298_v46  ;;  %v291_v49 = vsub.s32 1, %v1298_v46 }
  0x12   : > { %v1040_v27 = vld [vmem:[%s1183_s10 + $0x18] sm:$0xff]   ;;  %v1071_v34 = vld [vmem:[%s1342_s3 + $0xa0] ss:$8 sps:$4 sm:$0xff]   ;;  %v1079_v37 = vld [vmem:[%s1342_s3 + $0xc4] ss:$8 sps:$4 sm:$0xff]  }
  0x13   : > { %986 = vmatpush1.bf16.msra.mxu1 %v1047_v15  ;;  %v1076_v35 = vld [vmem:[%s1342_s3 + $0xb4] ss:$8 sps:$4 sm:$0xff]   ;;  %v1074_v36 = vld [vmem:[%s1342_s3 + $0xb0] ss:$8 sps:$4 sm:$0xff]   ;;  %v1077_v38 = vld [vmem:[%s1342_s3 + $0xc0] ss:$8 sps:$4 sm:$0xff]  }
  0x14   : > { %375 = vmatpush1.bf16.msra.mxu0 %v1036_v9  ;;  %971 = vmatprep.subr.bf16.mxu1 %v1052_v16  ;;  %v1082_v39 = vld [vmem:[%s1342_s3 + $0xd4] ss:$8 sps:$4 sm:$0xff]   ;;  %v1080_v40 = vld [vmem:[%s1342_s3 + $0xd0] ss:$8 sps:$4 sm:$0xff]   ;;  %v1085_v41 = vld [vmem:[%s1342_s3 + $0xe4] ss:$8 sps:$4 sm:$0xff]  }
  0x15   : > { %669 = vmatprep.subr.bf16.mxu0 %v1043_v8  ;;  %v1083_v42 = vld [vmem:[%s1342_s3 + $0xe0] ss:$8 sps:$4 sm:$0xff]   ;;  %v1088_v43 = vld [vmem:[%s1342_s3 + $0xf4] ss:$8 sps:$4 sm:$0xff]   ;;  %v1086_v44 = vld [vmem:[%s1342_s3 + $0xf0] ss:$8 sps:$4 sm:$0xff]  }
  0x16   : > { %v283_v48 = vld [vmem:[%s1341_s2] sm:$0x3] }
  0x17   : > { %912 = vmatmul.mubr.msk.bf16.vlgmr.msra.gmra.mrb[0].mxu0 %vm355_vm0, %v1037_v12  ;;  %987 = vmatpush1.bf16.msra.mxu1 %v1050_v18  ;;  %v288_v50 = vrot.slane %v283_v48, %v287_v47  ;;  %v292_v51 = vrot.slane %v283_v48, %v291_v49 }
  0x18   : > { %410 = vmatprep.mubr.bf16.mxu0 %v1113_v2  ;;  %670 = vmatpush1.bf16.msra.mxu0 %v1041_v10 }
  0x19   : > { %671 = vmatprep.subr.bf16.mxu0 %v1046_v11  ;;  %972 = vmatprep.subr.bf16.mxu1 %v1055_v19 }
  0x1b   : > { %988 = vmatpush1.bf16.msra.mxu1 %v1053_v20 }
  0x1c   : > { %672 = vmatpush1.bf16.msra.mxu0 %v1044_v13  ;;  %973 = vmatprep.subr.bf16.mxu1 %v1058_v21 }
  0x1d   : > { %673 = vmatprep.subr.bf16.mxu0 %v1049_v14 }
  0x1f   : > { %913 = vmatmul.mubr.msk.bf16.gmra.mrb[4].mxu0 %vm355_vm0, %v1038_v17  ;;  %989 = vmatpush1.bf16.msra.mxu1 %v1056_v23 }
  0x20   : > { %420 = vmatprep.mubr.bf16.mxu0 %v1113_v2  ;;  %674 = vmatpush1.bf16.msra.mxu0 %v1047_v15 }
  0x21   : > { %675 = vmatprep.subr.bf16.mxu0 %v1052_v16  ;;  %974 = vmatprep.subr.bf16.mxu1 %v1061_v24 }
  0x23   : > { %990 = vmatpush1.bf16.msra.mxu1 %v1059_v25 }
  0x24   : > { %676 = vmatpush1.bf16.msra.mxu0 %v1050_v18  ;;  %975 = vmatprep.subr.bf16.mxu1 %v1064_v26 }
  0x25   : > { %677 = vmatprep.subr.bf16.mxu0 %v1055_v19 }
  0x27   : > { %914 = vmatmul.mubr.msk.bf16.gmra.mrb[8].mxu0 %vm355_vm0, %v1039_v22  ;;  %991 = vmatpush1.bf16.msra.mxu1 %v1062_v28 }
  0x28   : > { %430 = vmatprep.mubr.bf16.mxu0 %v1113_v2  ;;  %678 = vmatpush1.bf16.msra.mxu0 %v1053_v20 }
  0x29   : > { %679 = vmatprep.subr.bf16.mxu0 %v1058_v21  ;;  %976 = vmatprep.subr.bf16.mxu1 %v1067_v29 }
  0x2b   : > { %992 = vmatpush1.bf16.msra.mxu1 %v1065_v30 }
  0x2c   : > { %680 = vmatpush1.bf16.msra.mxu0 %v1056_v23  ;;  %977 = vmatprep.subr.bf16.mxu1 %v1070_v31 }
  0x2d   : > { %681 = vmatprep.subr.bf16.mxu0 %v1061_v24 }
  0x2f   : > { %915 = vmatmul.mubr.msk.bf16.gmra.mrb[12].mxu0 %vm355_vm0, %v1040_v27  ;;  %993 = vmatpush1.bf16.msra.mxu1 %v1068_v32 }
  0x30   : > { %682 = vmatpush1.bf16.msra.mxu0 %v1059_v25  ;;  %978 = vmatprep.subr.bf16.mxu1 %v1073_v33 }
  0x31   : > { %683 = vmatprep.subr.bf16.mxu0 %v1064_v26 }
  0x33   : > { %994 = vmatpush1.bf16.msra.mxu1 %v1071_v34 }
  0x34   : > { %684 = vmatpush1.bf16.msra.mxu0 %v1062_v28  ;;  %979 = vmatprep.subr.bf16.mxu1 %v1076_v35 }
  0x35   : > { %685 = vmatprep.subr.bf16.mxu0 %v1067_v29 }
  0x37   : > { %995 = vmatpush1.bf16.msra.mxu1 %v1074_v36 }
  0x38   : > { %686 = vmatpush1.bf16.msra.mxu0 %v1065_v30  ;;  %980 = vmatprep.subr.bf16.mxu1 %v1079_v37 }
  0x39   : > { %687 = vmatprep.subr.bf16.mxu0 %v1070_v31 }
  0x3b   : > { %996 = vmatpush1.bf16.msra.mxu1 %v1077_v38 }
  0x3c   : > { %688 = vmatpush1.bf16.msra.mxu0 %v1068_v32  ;;  %981 = vmatprep.subr.bf16.mxu1 %v1082_v39 }
  0x3d   : > { %689 = vmatprep.subr.bf16.mxu0 %v1073_v33 }
  0x3f   : > { %997 = vmatpush1.bf16.msra.mxu1 %v1080_v40 }
  0x40   : > { %690 = vmatpush1.bf16.msra.mxu0 %v1071_v34  ;;  %982 = vmatprep.subr.bf16.mxu1 %v1085_v41 }
  0x41   : > { %691 = vmatprep.subr.bf16.mxu0 %v1076_v35 }
  0x43   : > { %998 = vmatpush1.bf16.msra.mxu1 %v1083_v42 }
  0x44   : > { %692 = vmatpush1.bf16.msra.mxu0 %v1074_v36  ;;  %983 = vmatprep.subr.bf16.mxu1 %v1088_v43 }
  0x45   : > { %693 = vmatprep.subr.bf16.mxu0 %v1079_v37 }
  0x47   : > { %999 = vmatpush1.bf16.msra.mxu1 %v1086_v44 }
  0x48   : > { %694 = vmatpush1.bf16.msra.mxu0 %v1077_v38 }
  0x49   : > { %695 = vmatprep.subr.bf16.mxu0 %v1082_v39 }
  0x4c   : > { %696 = vmatpush1.bf16.msra.mxu0 %v1080_v40 }
  0x4d   : > { %697 = vmatprep.subr.bf16.mxu0 %v1085_v41 }
  0x50   : > { %698 = vmatpush1.bf16.msra.mxu0 %v1083_v42 }
  0x51   : > { %699 = vmatprep.subr.bf16.mxu0 %v1088_v43 }
  0x54   : > { %700 = vmatpush1.bf16.msra.mxu0 %v1086_v44  ;;  %v497_v44 = vld [vmem:[%s1343_s4] sm:$0x3] }
  0x55   : > { %v502_v45 = vrot.slane %v497_v44, %v287_v47  ;;  %v506_v48 = vrot.slane %v497_v44, %v291_v49 }
  0xea   : > { %v402_v52 = vpop.f32.mrb[0].mxu0 }
  0xeb   : > { %v403_v53 = vadd.f32 %v402_v52, %v288_v50  ;;  %v404_v54 = vpop.f32.mrb[1].mxu0 }
  0xec   : > { %v405_v55 = vadd.f32 %v404_v54, %v292_v51  ;;  %v406_v56 = vpop.f32.mrb[2].mxu0 }
  0xed   : > { %v407_v57 = vadd.f32 %v406_v56, %v288_v50  ;;  %v408_v58 = vpop.f32.mrb[3].mxu0  ;;  %v441_v60 = vmax.f32 %v403_v53, 0.0 }
  0xee   : > { %v409_v59 = vadd.f32 %v408_v58, %v292_v51  ;;  %v442_v62 = vmax.f32 %v405_v55, 0.0 }
  0xef   : > { %v443_v61 = vmax.f32 %v407_v57, 0.0 }
  0xf0   : > { %v444_v63 = vmax.f32 %v409_v59, 0.0 }
  0xf1   : > { %v457_v0 = vpack.c.bf16 %v443_v61, %v441_v60 }
  0xf2   : > { %v458_v1 = vpack.c.bf16 %v444_v63, %v442_v62  ;;  %v412_v2 = vpop.f32.mrb[4].mxu0 }
  0xf3   : > { %v413_v3 = vadd.f32 %v412_v2, %v288_v50  ;;  %v414_v4 = vpop.f32.mrb[5].mxu0 }
  0xf4   : > { %v415_v5 = vadd.f32 %v414_v4, %v292_v51  ;;  %v416_v6 = vpop.f32.mrb[6].mxu0  ;;  %701 = vmatprep.mubr.bf16.mxu0 %v458_v1 }
  0xf5   : > { %v417_v7 = vadd.f32 %v416_v6, %v288_v50  ;;  %v418_v8 = vpop.f32.mrb[7].mxu0  ;;  %702 = vmatmul.mubr.bf16.vlgmr.msra.gmra.mrb[16].mxu0 %v457_v0  ;;  %v445_v10 = vmax.f32 %v413_v3, 0.0 }
  0xf6   : > { %v419_v9 = vadd.f32 %v418_v8, %v292_v51  ;;  %v446_v12 = vmax.f32 %v415_v5, 0.0 }
  0xf7   : > { %v447_v11 = vmax.f32 %v417_v7, 0.0 }
  0xf8   : > { %v448_v13 = vmax.f32 %v419_v9, 0.0 }
  0xf9   : > { %v459_v14 = vpack.c.bf16 %v447_v11, %v445_v10 }
  0xfa   : > { %v422_v15 = vpop.f32.mrb[8].mxu0  ;;  %v460_v16 = vpack.c.bf16 %v448_v13, %v446_v12 }
  0xfb   : > { %v423_v17 = vadd.f32 %v422_v15, %v288_v50  ;;  %v424_v18 = vpop.f32.mrb[9].mxu0 }
  0xfc   : > { %v425_v19 = vadd.f32 %v424_v18, %v292_v51  ;;  %v426_v20 = vpop.f32.mrb[10].mxu0  ;;  %711 = vmatprep.mubr.bf16.mxu1 %v460_v16 }
  0xfd   : > { %v427_v21 = vadd.f32 %v426_v20, %v288_v50  ;;  %v428_v22 = vpop.f32.mrb[11].mxu0  ;;  %712 = vmatmul.mubr.bf16.vlgmr.msra.gmra.mrb[0].mxu1 %v459_v14  ;;  %v449_v24 = vmax.f32 %v423_v17, 0.0 }
  0xfe   : > { %v429_v23 = vadd.f32 %v428_v22, %v292_v51  ;;  %v450_v26 = vmax.f32 %v425_v19, 0.0 }
  0xff   : > { %v451_v25 = vmax.f32 %v427_v21, 0.0 }
 0x100   : > { %v452_v27 = vmax.f32 %v429_v23, 0.0 }
 0x101   : > { %v461_v28 = vpack.c.bf16 %v451_v25, %v449_v24 }
 0x102   : > { %v462_v29 = vpack.c.bf16 %v452_v27, %v450_v26  ;;  %v432_v30 = vpop.f32.mrb[12].mxu0 }
 0x103   : > { %v433_v31 = vadd.f32 %v432_v30, %v288_v50  ;;  %v434_v32 = vpop.f32.mrb[13].mxu0 }
 0x104   : > { %v435_v33 = vadd.f32 %v434_v32, %v292_v51  ;;  %v436_v34 = vpop.f32.mrb[14].mxu0  ;;  %721 = vmatprep.mubr.bf16.mxu1 %v462_v29 }
 0x105   : > { %v437_v35 = vadd.f32 %v436_v34, %v288_v50  ;;  %v438_v36 = vpop.f32.mrb[15].mxu0  ;;  %722 = vmatmul.mubr.bf16.gmra.mrb[4].mxu1 %v461_v28  ;;  %v453_v38 = vmax.f32 %v433_v31, 0.0 }
 0x106   : > { %v439_v37 = vadd.f32 %v438_v36, %v292_v51  ;;  %v454_v40 = vmax.f32 %v435_v33, 0.0 }
 0x107   : > { %v455_v39 = vmax.f32 %v437_v35, 0.0 }
 0x108   : > { %v456_v41 = vmax.f32 %v439_v37, 0.0 }
 0x109   : > { %v463_v42 = vpack.c.bf16 %v455_v39, %v453_v38 }
 0x10a   : > { %v464_v43 = vpack.c.bf16 %v456_v41, %v454_v40 }
 0x10c   : > { %731 = vmatprep.mubr.bf16.mxu1 %v464_v43 }
 0x10d   : > { %732 = vmatmul.mubr.bf16.gmra.mrb[8].mxu1 %v463_v42 }
 0x1c8   : > { %v703_v50 = vpop.f32.mrb[16].mxu0 }
 0x1c9   : > { %v704_v51 = vadd.f32 %v703_v50, %v502_v45  ;;  %v705_v52 = vpop.f32.mrb[17].mxu0 }
 0x1ca   : > { %v706_v53 = vadd.f32 %v705_v52, %v506_v48  ;;  %v707_v54 = vpop.f32.mrb[18].mxu0 }
 0x1cb   : > { %v708_v55 = vadd.f32 %v707_v54, %v502_v45  ;;  %v709_v56 = vpop.f32.mrb[19].mxu0 }
 0x1cc   : > { %v960_v47 = vpack.c.bf16 %v706_v53, %v704_v51  ;;  %v710_v46 = vadd.f32 %v709_v56, %v506_v48 }
 0x1ce   : > { %790 = vst [vmem:[%s1320_s30] sm:$0xff] %v960_v47  ;;  %v961_v49 = vpack.c.bf16 %v710_v46, %v708_v55 }
 0x1d0   : > { %791 = vst [vmem:[%s1320_s30 + $0x8] sm:$0xff] %v961_v49  ;;  %v713_v57 = vpop.f32.mrb[0].mxu1 }
 0x1d1   : > { %v714_v58 = vadd.f32 %v713_v57, %v502_v45  ;;  %v715_v59 = vpop.f32.mrb[1].mxu1 }
 0x1d2   : > { %v716_v60 = vadd.f32 %v715_v59, %v506_v48  ;;  %v717_v61 = vpop.f32.mrb[2].mxu1 }
 0x1d3   : > { %v718_v62 = vadd.f32 %v717_v61, %v502_v45  ;;  %v719_v63 = vpop.f32.mrb[3].mxu1 }
 0x1d4   : > { %v962_v0 = vpack.c.bf16 %v716_v60, %v714_v58  ;;  %v720_v1 = vadd.f32 %v719_v63, %v506_v48 }
 0x1d6   : > { %792 = vst [vmem:[%s1320_s30 + $0x10] sm:$0xff] %v962_v0  ;;  %v963_v2 = vpack.c.bf16 %v720_v1, %v718_v62 }
 0x1d8   : > { %793 = vst [vmem:[%s1320_s30 + $0x18] sm:$0xff] %v963_v2  ;;  %v723_v3 = vpop.f32.mrb[4].mxu1 }
 0x1d9   : > { %v724_v4 = vadd.f32 %v723_v3, %v502_v45  ;;  %v725_v5 = vpop.f32.mrb[5].mxu1 }
 0x1da   : > { %v726_v6 = vadd.f32 %v725_v5, %v506_v48  ;;  %v727_v7 = vpop.f32.mrb[6].mxu1 }
 0x1db   : > { %v728_v8 = vadd.f32 %v727_v7, %v502_v45  ;;  %v729_v9 = vpop.f32.mrb[7].mxu1 }
 0x1dc   : > { %v964_v10 = vpack.c.bf16 %v726_v6, %v724_v4  ;;  %v730_v11 = vadd.f32 %v729_v9, %v506_v48 }
 0x1de   : > { %794 = vst [vmem:[%s1320_s30 + $0x20] sm:$0xff] %v964_v10  ;;  %v965_v12 = vpack.c.bf16 %v730_v11, %v728_v8 }
 0x1e0   : > { %795 = vst [vmem:[%s1320_s30 + $0x28] sm:$0xff] %v965_v12  ;;  %v733_v13 = vpop.f32.mrb[8].mxu1 }
 0x1e1   : > { %v734_v14 = vadd.f32 %v733_v13, %v502_v45  ;;  %v735_v15 = vpop.f32.mrb[9].mxu1 }
 0x1e2   : > { %v736_v16 = vadd.f32 %v735_v15, %v506_v48  ;;  %v737_v17 = vpop.f32.mrb[10].mxu1 }
 0x1e3   : > { %v738_v18 = vadd.f32 %v737_v17, %v502_v45  ;;  %v739_v19 = vpop.f32.mrb[11].mxu1 }
 0x1e4   : > { %v966_v20 = vpack.c.bf16 %v736_v16, %v734_v14  ;;  %v740_v21 = vadd.f32 %v739_v19, %v506_v48 }
 0x1e6   : > { %796 = vst [vmem:[%s1320_s30 + $0x30] sm:$0xff] %v966_v20  ;;  %v967_v22 = vpack.c.bf16 %v740_v21, %v738_v18 }
 0x1e8   : > { %797 = vst [vmem:[%s1320_s30 + $0x38] sm:$0xff] %v967_v22 }
 0x1e9 PF: > { %s15_s20 = sadd.s32 1, %s1111_s20   ;;  %s1345_s18 = smov %s1107_s19 }
 0x1ea   : > { %p12_p5 = scmp.ge.s32.totalorder %s15_s20, 4   ;;  %s1346_s19 = smov %s1348_s21 }
 0x1ec   :  { %14 = sbr.rel (!%p12_p5) target bundleno = 2 (0x2), region = 70 }

// kernel: ce2p_decoder_forward.4
= control target key start
LH: loop header
LB: loop body
LE: loop exit
PB: predicated region body
PF: predicated region fallthrough
CT: control target
= control target key end

     0   :  { %s892_s9 = smov 0   ;;  %s976_s0 = inlined_call_operand.vmem [shape: bf16[16,8], index: 0, kind: input, shape index: {}]   ;;  %s977_s1 = inlined_call_operand.vmem [shape: bf16[2,8,2048], index: 1, kind: input, shape index: {}]   ;;  %s978_s2 = inlined_call_operand.vmem [shape: bf16[2,16,2048], index: 2, kind: output, shape index: {}]  }
   0x1 LB: > { %s764_s10 = sadd.s32 4294967295, %s874_s9   ;;  %p768_p0 = scmp.ge.s32.totalorder %s874_s9, 1  ;;  %s874_s9 = sphi %s892_s9, %s12_s9  }
   0x2   : > { %p112_p1 = scmp.lt.s32.totalorder %s874_s9, 3 }
   0x4   : > { %p113_p2 = pnand %p768_p0, %p112_p1 }
   0x5   : > { %p134_p3 = scmp.lt.s32.totalorder (!%p113_p2), %s764_s10, 1  ;;  %v876_v0 = vmov (!%p113_p2), 0   ;;  %vm204_vm0 = vcmask (!%p113_p2), 1043456   ;;  %v855_v15 = vld [vmem:[%s976_s0] sm:$0xff] (!%p113_p2)   ;;  %vm200_vm1 = vcmask (!%p113_p2), 64512  }
   0x6   : > { %116 = sbr.rel (%p113_p2) target bundleno = 265 (0x109), region = 28  ;;  %285 = vmatprep.mubr.bf16.mxu0 (!%p113_p2), %v876_v0  ;;  %328 = vmatprep.mubr.bf16.mxu1 (!%p113_p2), %v876_v0 }
   0xd   : > { %s980_s10 = smov (!%p134_p3, %s764_s10), 1 }
   0xe   : > { %s824_s11 = sshll.u32 %s980_s10, 6  ;;  %s825_s17 = sshll.u32 %s980_s10, 7 }
   0xf   : > { %s908_s14 = scalar_lea.vmem %s977_s1, %s824_s11  ;;  %s955_s20 = scalar_lea.vmem %s978_s2, %s825_s17 }
  0x10   : > { %v147_v1 = vld [vmem:[%s908_s14] sm:$0xff]  ;;  %v148_v2 = vld [vmem:[%s908_s14 + $0x8] sm:$0xff]  ;;  %v149_v3 = vld [vmem:[%s908_s14 + $0x10] sm:$0xff] }
  0x11   : > { %v775_v4 = vcombine.high %v147_v1, %v147_v1  ;;  %v777_v5 = vcombine.high %v148_v2, %v148_v2  ;;  %v774_v6 = vcombine.low %v147_v1, %v147_v1  ;;  %v776_v7 = vcombine.low %v148_v2, %v148_v2  ;;  %v150_v8 = vld [vmem:[%s908_s14 + $0x18] sm:$0xff]  ;;  %v151_v16 = vld [vmem:[%s908_s14 + $0x20] sm:$0xff]  ;;  %v152_v17 = vld [vmem:[%s908_s14 + $0x28] sm:$0xff] }
  0x12   : > { %v779_v9 = vcombine.high %v149_v3, %v149_v3  ;;  %v781_v10 = vcombine.high %v150_v8, %v150_v8  ;;  %v778_v11 = vcombine.low %v149_v3, %v149_v3  ;;  %v780_v12 = vcombine.low %v150_v8, %v150_v8  ;;  %v153_v24 = vld [vmem:[%s908_s14 + $0x30] sm:$0xff]  ;;  %v154_v25 = vld [vmem:[%s908_s14 + $0x38] sm:$0xff] }
  0x13   : > { %790 = vmatprep.subr.msk.bf16.mxu0 %vm204_vm0, %v775_v4  ;;  %792 = vmatprep.subr.msk.bf16.mxu1 %vm204_vm0, %v777_v5  ;;  %v206_v13 = vsel %vm204_vm0, %v774_v6, 0  ;;  %v212_v14 = vsel %vm204_vm0, %v776_v7, 0  ;;  %v783_v20 = vcombine.high %v151_v16, %v151_v16  ;;  %v785_v21 = vcombine.high %v152_v17, %v152_v17 }
  0x14   : > { %254 = vmatpush1.bf16.msra.mxu0 %v206_v13  ;;  %297 = vmatpush1.bf16.msra.mxu1 %v212_v14  ;;  %v218_v18 = vsel %vm204_vm0, %v778_v11, 0  ;;  %v224_v19 = vsel %vm204_vm0, %v780_v12, 0  ;;  %v782_v22 = vcombine.low %v151_v16, %v151_v16  ;;  %v784_v23 = vcombine.low %v152_v17, %v152_v17 }
  0x15   : > { %794 = vmatprep.subr.msk.bf16.mxu0 %vm204_vm0, %v779_v9  ;;  %796 = vmatprep.subr.msk.bf16.mxu1 %vm204_vm0, %v781_v10  ;;  %v787_v28 = vcombine.high %v153_v24, %v153_v24  ;;  %v789_v29 = vcombine.high %v154_v25, %v154_v25  ;;  %v786_v30 = vcombine.low %v153_v24, %v153_v24 }
  0x16   : > { %v230_v26 = vsel %vm204_vm0, %v782_v22, 0  ;;  %v236_v27 = vsel %vm204_vm0, %v784_v23, 0  ;;  %v788_v31 = vcombine.low %v154_v25, %v154_v25 }
  0x17   : > { %791 = vmatmul.mubr.msk.bf16.vlgmr.msra.gmra.mrb[0].mxu0 %vm200_vm1, %v855_v15  ;;  %793 = vmatmul.mubr.msk.bf16.vlgmr.msra.gmra.mrb[0].mxu1 %vm200_vm1, %v855_v15  ;;  %v242_v32 = vsel %vm204_vm0, %v786_v30, 0 }
  0x18   : > { %340 = vmatpush1.bf16.msra.mxu0 %v218_v18  ;;  %383 = vmatpush1.bf16.msra.mxu1 %v224_v19  ;;  %v248_v33 = vsel %vm204_vm0, %v788_v31, 0 }
  0x19   : > { %371 = vmatprep.mubr.bf16.mxu0 %v876_v0  ;;  %414 = vmatprep.mubr.bf16.mxu1 %v876_v0 }
  0x1a   : > { %798 = vmatprep.subr.msk.bf16.mxu0 %vm204_vm0, %v783_v20  ;;  %800 = vmatprep.subr.msk.bf16.mxu1 %vm204_vm0, %v785_v21 }
  0x1f   : > { %795 = vmatmul.mubr.msk.bf16.vlgmr.msra.gmra.mrb[4].mxu0 %vm200_vm1, %v855_v15  ;;  %797 = vmatmul.mubr.msk.bf16.vlgmr.msra.gmra.mrb[4].mxu1 %vm200_vm1, %v855_v15 }
  0x20   : > { %426 = vmatpush1.bf16.msra.mxu0 %v230_v26  ;;  %469 = vmatpush1.bf16.msra.mxu1 %v236_v27 }
  0x21   : > { %457 = vmatprep.mubr.bf16.mxu0 %v876_v0  ;;  %500 = vmatprep.mubr.bf16.mxu1 %v876_v0 }
  0x22   : > { %802 = vmatprep.subr.msk.bf16.mxu0 %vm204_vm0, %v787_v28  ;;  %804 = vmatprep.subr.msk.bf16.mxu1 %vm204_vm0, %v789_v29 }
  0x27   : > { %799 = vmatmul.mubr.msk.bf16.vlgmr.msra.gmra.mrb[8].mxu0 %vm200_vm1, %v855_v15  ;;  %801 = vmatmul.mubr.msk.bf16.vlgmr.msra.gmra.mrb[8].mxu1 %vm200_vm1, %v855_v15 }
  0x28   : > { %512 = vmatpush1.bf16.msra.mxu0 %v242_v32  ;;  %555 = vmatpush1.bf16.msra.mxu1 %v248_v33 }
  0x29   : > { %543 = vmatprep.mubr.bf16.mxu0 %v876_v0  ;;  %586 = vmatprep.mubr.bf16.mxu1 %v876_v0 }
  0x2f   : > { %803 = vmatmul.mubr.msk.bf16.vlgmr.msra.gmra.mrb[12].mxu0 %vm200_vm1, %v855_v15  ;;  %805 = vmatmul.mubr.msk.bf16.vlgmr.msra.gmra.mrb[12].mxu1 %vm200_vm1, %v855_v15 }
  0xea   : > { %v287_v34 = vpop.f32.mrb[0].mxu0  ;;  %v330_v35 = vpop.f32.mrb[0].mxu1 }
  0xeb   : > { %v289_v36 = vpop.f32.mrb[1].mxu0  ;;  %v332_v37 = vpop.f32.mrb[1].mxu1 }
  0xec   : > { %v826_v38 = vpack.c.bf16 %v289_v36, %v287_v34  ;;  %v827_v39 = vpack.c.bf16 %v332_v37, %v330_v35  ;;  %v291_v40 = vpop.f32.mrb[2].mxu0  ;;  %v334_v41 = vpop.f32.mrb[2].mxu1 }
  0xed   : > { %v293_v42 = vpop.f32.mrb[3].mxu0  ;;  %v336_v43 = vpop.f32.mrb[3].mxu1 }
  0xee   : > { %693 = vst [vmem:[%s955_s20] sm:$0xff] %v826_v38  ;;  %694 = vst [vmem:[%s955_s20 + $0x8] sm:$0xff] %v827_v39  ;;  %v834_v44 = vpack.c.bf16 %v293_v42, %v291_v40  ;;  %v835_v45 = vpack.c.bf16 %v336_v43, %v334_v41 }
  0xf0   : > { %701 = vst [vmem:[%s955_s20 + $0x40] sm:$0xff] %v834_v44  ;;  %702 = vst [vmem:[%s955_s20 + $0x48] sm:$0xff] %v835_v45 }
  0xf2   : > { %v373_v46 = vpop.f32.mrb[4].mxu0  ;;  %v416_v47 = vpop.f32.mrb[4].mxu1 }
  0xf3   : > { %v375_v48 = vpop.f32.mrb[5].mxu0  ;;  %v418_v49 = vpop.f32.mrb[5].mxu1 }
  0xf4   : > { %v828_v50 = vpack.c.bf16 %v375_v48, %v373_v46  ;;  %v829_v51 = vpack.c.bf16 %v418_v49, %v416_v47  ;;  %v377_v52 = vpop.f32.mrb[6].mxu0  ;;  %v420_v53 = vpop.f32.mrb[6].mxu1 }
  0xf5   : > { %v379_v54 = vpop.f32.mrb[7].mxu0  ;;  %v422_v55 = vpop.f32.mrb[7].mxu1 }
  0xf6   : > { %695 = vst [vmem:[%s955_s20 + $0x10] sm:$0xff] %v828_v50  ;;  %696 = vst [vmem:[%s955_s20 + $0x18] sm:$0xff] %v829_v51  ;;  %v836_v56 = vpack.c.bf16 %v379_v54, %v377_v52  ;;  %v837_v57 = vpack.c.bf16 %v422_v55, %v420_v53 }
  0xf8   : > { %703 = vst [vmem:[%s955_s20 + $0x50] sm:$0xff] %v836_v56  ;;  %704 = vst [vmem:[%s955_s20 + $0x58] sm:$0xff] %v837_v57 }
  0xfa   : > { %v459_v58 = vpop.f32.mrb[8].mxu0  ;;  %v502_v59 = vpop.f32.mrb[8].mxu1 }
  0xfb   : > { %v461_v60 = vpop.f32.mrb[9].mxu0  ;;  %v504_v61 = vpop.f32.mrb[9].mxu1 }
  0xfc   : > { %v830_v62 = vpack.c.bf16 %v461_v60, %v459_v58  ;;  %v831_v63 = vpack.c.bf16 %v504_v61, %v502_v59  ;;  %v463_v0 = vpop.f32.mrb[10].mxu0  ;;  %v506_v1 = vpop.f32.mrb[10].mxu1 }
  0xfd   : > { %v465_v2 = vpop.f32.mrb[11].mxu0  ;;  %v508_v3 = vpop.f32.mrb[11].mxu1 }
  0xfe   : > { %697 = vst [vmem:[%s955_s20 + $0x20] sm:$0xff] %v830_v62  ;;  %698 = vst [vmem:[%s955_s20 + $0x28] sm:$0xff] %v831_v63  ;;  %v838_v4 = vpack.c.bf16 %v465_v2, %v463_v0  ;;  %v839_v5 = vpack.c.bf16 %v508_v3, %v506_v1 }
 0x100   : > { %705 = vst [vmem:[%s955_s20 + $0x60] sm:$0xff] %v838_v4  ;;  %706 = vst [vmem:[%s955_s20 + $0x68] sm:$0xff] %v839_v5 }
 0x102   : > { %v545_v6 = vpop.f32.mrb[12].mxu0  ;;  %v588_v7 = vpop.f32.mrb[12].mxu1 }
 0x103   : > { %v547_v8 = vpop.f32.mrb[13].mxu0  ;;  %v590_v9 = vpop.f32.mrb[13].mxu1 }
 0x104   : > { %v832_v10 = vpack.c.bf16 %v547_v8, %v545_v6  ;;  %v833_v11 = vpack.c.bf16 %v590_v9, %v588_v7  ;;  %v549_v12 = vpop.f32.mrb[14].mxu0  ;;  %v592_v13 = vpop.f32.mrb[14].mxu1 }
 0x105   : > { %v551_v14 = vpop.f32.mrb[15].mxu0  ;;  %v594_v15 = vpop.f32.mrb[15].mxu1 }
 0x106   : > { %699 = vst [vmem:[%s955_s20 + $0x30] sm:$0xff] %v832_v10  ;;  %700 = vst [vmem:[%s955_s20 + $0x38] sm:$0xff] %v833_v11  ;;  %v840_v16 = vpack.c.bf16 %v551_v14, %v549_v12  ;;  %v841_v17 = vpack.c.bf16 %v594_v15, %v592_v13 }
 0x108   : > { %707 = vst [vmem:[%s955_s20 + $0x70] sm:$0xff] %v840_v16  ;;  %708 = vst [vmem:[%s955_s20 + $0x78] sm:$0xff] %v841_v17 }
 0x109 PF: > { %s12_s9 = sadd.s32 1, %s874_s9  }
 0x10a   : > { %p9_p4 = scmp.ge.s32.totalorder %s12_s9, 4  }
 0x10c   :  { %11 = sbr.rel (!%p9_p4) target bundleno = 1 (0x1), region = 58 }

// kernel: ce2p_decoder_forward.5
= control target key start
LH: loop header
LB: loop body
LE: loop exit
PB: predicated region body
PF: predicated region fallthrough
CT: control target
= control target key end

     0   :  { %s4173_s0 = inlined_call_operand.vmem [shape: bf16[2,128,256], index: 0, kind: input, shape index: {}]   ;;  %s4174_s1 = inlined_call_operand.vmem [shape: bf16[256,128], index: 1, kind: input, shape index: {}]   ;;  %s4175_s2 = inlined_call_operand.vmem [shape: bf16[2,256,32], index: 2, kind: input, shape index: {}]   ;;  %s4176_s3 = inlined_call_operand.vmem [shape: bf16[32,48], index: 3, kind: input, shape index: {}]   ;;  %s4177_s4 = inlined_call_operand.vmem [shape: f32[1,48], index: 4, kind: input, shape index: {}]   ;;  %s4178_s5 = inlined_call_operand.vmem [shape: bf16[48,256], index: 5, kind: input, shape index: {}]   ;;  %s4179_s6 = inlined_call_operand.vmem [shape: bf16[256,256], index: 6, kind: input, shape index: {}]   ;;  %s4180_s7 = inlined_call_operand.vmem [shape: f32[1,256], index: 7, kind: input, shape index: {}]   ;;  %s4181_s8 = inlined_call_operand.vmem [shape: bf16[256,128], index: 8, kind: input, shape index: {}]   ;;  %s4182_s9 = inlined_call_operand.vmem [shape: f32[1,128], index: 9, kind: input, shape index: {}]   ;;  %s4183_s10 = inlined_call_operand.vmem [shape: f32[2,256,128], index: 10, kind: output, shape index: {0}]   ;;  %s4184_s11 = inlined_call_operand.hbm [shape: f32[2,256,256], index: 11, kind: output, shape index: {1}]  }
   0x1   :  { %4186 = sst [smem:[#allocation5_spill]] %s4173_s0 }
   0x2   :  { %4187 = sst [smem:[#allocation6_spill]] %s4175_s2 }
   0x3   :  { %4188 = sst [smem:[#allocation7_spill]] %s4176_s3 }
   0x4   :  { %17 = vsyncpa [#allocation3], 0 }
   0x5   :  { %19 = vsyncpa [#allocation3 + $0x1], 0  ;;  %s3470_s17 = smov 0   ;;  %s3472_s18 = smov 0  }
   0x6   :  { %s3474_s19 = smov 0   ;;  %s3476_s20 = smov 0  }
   0x7   :  { %s3478_s21 = smov 0   ;;  %s3480_s22 = smov 0  }
   0x8 LB: > { %s2716_s23 = sadd.s32 4294967295, %s3404_s22   ;;  %s2717_s24 = sadd.s32 4294967294, %s3404_s22   ;;  %s3404_s22 = sphi %s3480_s22, %s25_s22   ;;  %s3400_s21 = sphi %s3478_s21, %s4200_s21   ;;  %s3396_s20 = sphi %s3476_s20, %s4199_s20   ;;  %s3392_s19 = sphi %s3474_s19, %s4198_s19   ;;  %s3388_s18 = sphi %s3472_s18, %s4197_s18   ;;  %s3384_s17 = sphi %s3470_s17, %s4196_s17  }
   0x9   : > { %s37_s25 = sadd.s32 1, %s3400_s21  ;;  %s298_s26 = sadd.s32 1, %s3392_s19 }
   0xa   : > { %p39_p0 = scmp.ge.s32.totalorder %s37_s25, 2  ;;  %p308_p1 = scmp.ne.s32.totalorder %s3392_s19, %s3388_s18 }
   0xb   : > { %p309_p2 = scmp.eq.s32.totalorder %s2716_s23, 1  ;;  %p314_p3 = scmp.ne.s32.totalorder %s3388_s18, %s3384_s17 }
   0xc   : > { %s4202_s25 = smov (%p39_p0, %s37_s25), 0  ;;  %p315_p5 = scmp.eq.s32.totalorder %s2717_s24, 1 }
   0xd   : > { %p3510_p4 = por %p309_p2, %p308_p1  ;;  %s293_s28 = ssub.s32 %s3400_s21, %s4202_s25 }
   0xe   : > { %p2720_p6 = scmp.ge.s32.totalorder %s3404_s22, 1  ;;  %p296_p7 = scmp.eq.s32.totalorder %s293_s28, 0 }
   0xf   : > { %p3517_p8 = por %p315_p5, %p314_p3  ;;  %p384_p9 = scmp.lt.s32.totalorder %s3404_s22, 3 }
  0x10   : > { %s3523_s30 = scalar_select %p296_p7, %s3392_s19, %s298_s26  }
  0x11   : > { %p385_p10 = pnand %p2720_p6, %p384_p9 }
  0x12   : > { %s4191_s3 = sld [smem:[#allocation7_spill]] (!%p385_p10)  ;;  %p448_p11 = scmp.lt.s32.totalorder (!%p385_p10), %s3396_s20, 1  ;;  %v3213_v2 = vld [vmem:[%s4178_s5 + $0x4] ss:$8 sps:$4 sm:$0xff] (!%p385_p10)   ;;  %v3215_v3 = vld [vmem:[%s4178_s5] ss:$8 sps:$4 sm:$0xff] (!%p385_p10)  }
  0x13   : > { %388 = sbr.rel (%p385_p10) target bundleno = 1164 (0x48c), region = 60  ;;  %vm663_vm0 = vcmask (!%p385_p10), 261120   ;;  %1006 = vmatprep.subr.bf16.mxu1 (!%p385_p10), %v3213_v2  ;;  %s4192_s2 = sld [smem:[#allocation6_spill]] (!%p385_p10)  ;;  %v3216_v20 = vld [vmem:[%s4178_s5 + $0x14] ss:$8 sps:$4 sm:$0xff] (!%p385_p10)   ;;  %v3406_v24 = vmov (!%p385_p10), 0  }
  0x14   : > { %1007 = vmatpush1.bf16.msra.mxu1 (!%p385_p10), %v3215_v3  ;;  %v3218_v21 = vld [vmem:[%s4178_s5 + $0x10] ss:$8 sps:$4 sm:$0xff] (!%p385_p10)   ;;  %v3219_v22 = vld [vmem:[%s4178_s5 + $0x24] ss:$8 sps:$4 sm:$0xff] (!%p385_p10)   ;;  %v3221_v23 = vld [vmem:[%s4178_s5 + $0x20] ss:$8 sps:$4 sm:$0xff] (!%p385_p10)   ;;  %1038 = vmatprep.mubr.bf16.mxu1 (!%p385_p10), %v3406_v24 }
  0x15   : > { %1008 = vmatprep.subr.bf16.mxu1 (!%p385_p10), %v3216_v20  ;;  %s4194_s0 = sld [smem:[#allocation5_spill]] (!%p385_p10)  ;;  %v3605_v26 = vld [vmem:[%s4177_s4] ss:$0 sm:$0xff] (!%p385_p10)  ;;  %vm957_vm1 = vcmask (!%p385_p10), 392192   ;;  %s2874_s14 = sshll.u32 (!%p385_p10), %s3396_s20, 13 }
  0x16   : > { %s4045_s26 = scalar_lea.hbm (!%p385_p10), %s4184_s11, %s2874_s14  ;;  %s3407_s14 = smov (!%p385_p10), [#allocation2]  }
  0x17   : > { %s3330_s23 = sshll.u32 (!%p385_p10), %s3407_s14, 4  ;;  %s3331_s23 = int_to_ptr.vmem [resolvable:$false] %s3330_s23 }
  0x18   : > { %v3195_v0 = vld [vmem:[%s4191_s3] sm:$0xff] (!%p385_p10)   ;;  %v3196_v1 = vld [vmem:[%s4191_s3 + $0x8] sm:$0xff] (!%p385_p10)   ;;  %1009 = vmatpush1.bf16.msra.mxu1 (!%p385_p10), %v3218_v21 }
  0x19   : > { %3005 = vmatprep.subr.bf16.mxu0 (!%p385_p10), %v3195_v0  ;;  %1010 = vmatprep.subr.bf16.mxu1 (!%p385_p10), %v3219_v22 }
  0x1a   : > { %s3533_s16 = scalar_select %p448_p11, %s3396_s20, 1  ;;  %3006 = vmatpush3.bf16.msra.mxu0 %v3195_v0 }
  0x1b   : > { %3007 = vmatprep.subr.bf16.mxu0 %v3196_v1 }
  0x1c   : > { %s4185_s12 = sshll.u32 %s3533_s16, 7  ;;  %1011 = vmatpush1.bf16.msra.mxu1 %v3221_v23 }
  0x1d   : > { %s3547_s15 = scalar_lea.vmem %s4192_s2, %s4185_s12  ;;  %s444_s2 = sand.u32 1, %s3388_s18  }
  0x1e   : > { %v3197_v4 = vld [vmem:[%s3547_s15] sm:$0xff]   ;;  %3008 = vmatpush3.bf16.msra.mxu0 %v3196_v1  ;;  %v3198_v5 = vld [vmem:[%s3547_s15 + $0x8] sm:$0xff]   ;;  %v3199_v6 = vld [vmem:[%s3547_s15 + $0x10] sm:$0xff]   ;;  %s2721_s3 = sshll.u32 %s444_s2, 9  ;;  %s4056_s20 = scalar_lea.sflag [#allocation3], %s444_s2 }
  0x1f   : > { %3009 = vmatprep.mubr.msk.bf16.mxu0 %vm663_vm0, %v3197_v4  ;;  %v3200_v7 = vld [vmem:[%s3547_s15 + $0x18] sm:$0xff]   ;;  %v3201_v8 = vld [vmem:[%s3547_s15 + $0x20] sm:$0xff]   ;;  %v3202_v9 = vld [vmem:[%s3547_s15 + $0x28] sm:$0xff]   ;;  %s3913_s12 = scalar_lea.vmem [#allocation2], %s2721_s3 }
  0x20   : > { %v3203_v10 = vld [vmem:[%s3547_s15 + $0x30] sm:$0xff]   ;;  %v3204_v11 = vld [vmem:[%s3547_s15 + $0x38] sm:$0xff]   ;;  %v3205_v12 = vld [vmem:[%s3547_s15 + $0x40] sm:$0xff]  }
  0x21   : > { %3010 = vmatmul.mubr.msk.bf16.vlgmr.msra.gmra.mrb[0].mxu0 %vm663_vm0, %v3198_v5  ;;  %v3206_v13 = vld [vmem:[%s3547_s15 + $0x48] sm:$0xff]   ;;  %v3207_v14 = vld [vmem:[%s3547_s15 + $0x50] sm:$0xff]   ;;  %v3208_v15 = vld [vmem:[%s3547_s15 + $0x58] sm:$0xff]  }
  0x22   : > { %3013 = vmatprep.mubr.msk.bf16.mxu0 %vm663_vm0, %v3199_v6  ;;  %v3209_v16 = vld [vmem:[%s3547_s15 + $0x60] sm:$0xff]   ;;  %v3210_v17 = vld [vmem:[%s3547_s15 + $0x68] sm:$0xff]   ;;  %v3211_v18 = vld [vmem:[%s3547_s15 + $0x70] sm:$0xff]  }
  0x23   : > { %v3212_v19 = vld [vmem:[%s3547_s15 + $0x78] sm:$0xff]   ;;  %s4193_s15 = sshll.u32 %s3533_s16, 7 }
  0x24   : > { %s3598_s24 = scalar_lea.vmem %s4194_s0, %s4193_s15  ;;  %s2579_s15 = sshll.u32 %s3913_s12, 4  ;;  %s4047_s15 = int_to_ptr.vmem [resolvable:$true] %s2579_s15 }
  0x25   : > { %v3224_v25 = vld [vmem:[%s3598_s24 + $0x4] ss:$8 sps:$4 sm:$0xff]   ;;  %v3222_v40 = vld [vmem:[%s3598_s24] ss:$8 sps:$4 sm:$0xff]   ;;  %v3227_v43 = vld [vmem:[%s3598_s24 + $0x14] ss:$8 sps:$4 sm:$0xff]   ;;  %p3333_p1 = scmp.lt.s32.totalorder %s4047_s15, %s3331_s23 }
  0x26   : > { %1375 = vmatprep.subr.bf16.mxu1 %v3224_v25  ;;  %v3225_v51 = vld [vmem:[%s3598_s24 + $0x10] ss:$8 sps:$4 sm:$0xff]   ;;  %v3230_v54 = vld [vmem:[%s3598_s24 + $0x24] ss:$8 sps:$4 sm:$0xff]   ;;  %v3228_v58 = vld [vmem:[%s3598_s24 + $0x20] ss:$8 sps:$4 sm:$0xff]  }
  0x27   : > { %v3233_v61 = vld [vmem:[%s3598_s24 + $0x34] ss:$8 sps:$4 sm:$0xff]   ;;  %v3231_v5 = vld [vmem:[%s3598_s24 + $0x30] ss:$8 sps:$4 sm:$0xff]  }
  0x28   : > { %v3237_v23 = vld [vmem:[%s3598_s24 + $0x50] ss:$8 sps:$4 sm:$0xff]  }
  0x29   : > { %3014 = vmatmul.mubr.msk.bf16.gmra.mrb[4].mxu0 %vm663_vm0, %v3200_v7 }
  0x2a   : > { %3017 = vmatprep.mubr.msk.bf16.mxu0 %vm663_vm0, %v3201_v8  ;;  %v3236_v8 = vld [vmem:[%s3598_s24 + $0x44] ss:$8 sps:$4 sm:$0xff]  }
  0x31   : > { %3018 = vmatmul.mubr.msk.bf16.gmra.mrb[8].mxu0 %vm663_vm0, %v3202_v9 }
  0x32   : > { %3021 = vmatprep.mubr.msk.bf16.mxu0 %vm663_vm0, %v3203_v10 }
  0x39   : > { %3022 = vmatmul.mubr.msk.bf16.gmra.mrb[12].mxu0 %vm663_vm0, %v3204_v11 }
  0x3a   : > { %3025 = vmatprep.mubr.msk.bf16.mxu0 %vm663_vm0, %v3205_v12  ;;  %v3234_v12 = vld [vmem:[%s3598_s24 + $0x40] ss:$8 sps:$4 sm:$0xff]  }
  0x41   : > { %3026 = vmatmul.mubr.msk.bf16.gmra.mrb[16].mxu0 %vm663_vm0, %v3206_v13 }
  0x42   : > { %3029 = vmatprep.mubr.msk.bf16.mxu0 %vm663_vm0, %v3207_v14 }
  0x49   : > { %3030 = vmatmul.mubr.msk.bf16.gmra.mrb[20].mxu0 %vm663_vm0, %v3208_v15  ;;  %v3239_v15 = vld [vmem:[%s3598_s24 + $0x54] ss:$8 sps:$4 sm:$0xff]  }
  0x4a   : > { %3033 = vmatprep.mubr.msk.bf16.mxu0 %vm663_vm0, %v3209_v16 }
  0x51   : > { %3034 = vmatmul.mubr.msk.bf16.gmra.mrb[24].mxu0 %vm663_vm0, %v3210_v17 }
  0x52   : > { %3037 = vmatprep.mubr.msk.bf16.mxu0 %vm663_vm0, %v3211_v18 }
  0x59   : > { %3038 = vmatmul.mubr.msk.bf16.gmra.mrb[28].mxu0 %vm663_vm0, %v3212_v19 }
  0xf4   : > { %v3011_v27 = vpop.f32.mrb[0].mxu0 }
  0xf5   : > { %v755_v28 = vadd.f32 %v3011_v27, %v3605_v26  ;;  %v746_v29 = vpop.f32.mrb[1].mxu0 }
  0xf6   : > { %v747_v30 = vadd.f32 %v3605_v26, %v746_v29  ;;  %v3012_v31 = vpop.f32.mrb[2].mxu0 }
  0xf7   : > { %v758_v32 = vadd.f32 %v3012_v31, %v3605_v26  ;;  %v749_v33 = vpop.f32.mrb[3].mxu0  ;;  %v875_v35 = vmax.f32 %v755_v28, 0.0  ;;  %v3242_v28 = vld [vmem:[%s3598_s24 + $0x64] ss:$8 sps:$4 sm:$0xff]  }
  0xf8   : > { %v750_v34 = vadd.f32 %v3605_v26, %v749_v33  ;;  %v873_v37 = vmax.f32 %v747_v30, 0.0 }
  0xf9   : > { %v876_v36 = vmax.f32 %v758_v32, 0.0  ;;  %v3240_v32 = vld [vmem:[%s3598_s24 + $0x60] ss:$8 sps:$4 sm:$0xff]  }
  0xfa   : > { %v874_v38 = vmax.f32 %v750_v34, 0.0 }
  0xfb   : > { %v906_v39 = vpack.c.bf16 %v876_v36, %v875_v35  ;;  %v3245_v35 = vld [vmem:[%s3598_s24 + $0x74] ss:$8 sps:$4 sm:$0xff]  }
  0xfc   : > { %v905_v41 = vpack.c.bf16 %v874_v38, %v873_v37  ;;  %v3015_v42 = vpop.f32.mrb[4].mxu0 }
  0xfd   : > { %v771_v44 = vadd.f32 %v3015_v42, %v3605_v26  ;;  %v762_v45 = vpop.f32.mrb[5].mxu0 }
  0xfe   : > { %2769 = vmatmul.mubr.msk.bf16.vlgmr.msra.gmra.mrb[0].mxu1 %vm957_vm1, %v905_v41  ;;  %v763_v46 = vadd.f32 %v3605_v26, %v762_v45  ;;  %v3016_v47 = vpop.f32.mrb[6].mxu0 }
  0xff   : > { %1376 = vmatpush1.bf16.msra.mxu1 %v3222_v40  ;;  %v879_v48 = vmax.f32 %v771_v44, 0.0  ;;  %v774_v49 = vadd.f32 %v3016_v47, %v3605_v26  ;;  %v765_v50 = vpop.f32.mrb[7].mxu0  ;;  %1048 = vmatprep.mubr.bf16.mxu1 %v3406_v24 }
 0x100   : > { %v877_v52 = vmax.f32 %v763_v46, 0.0  ;;  %v766_v53 = vadd.f32 %v3605_v26, %v765_v50  ;;  %1377 = vmatprep.subr.bf16.mxu1 %v3227_v43  ;;  %v3243_v43 = vld [vmem:[%s3598_s24 + $0x70] ss:$8 sps:$4 sm:$0xff]   ;;  %s3332_s24 = scalar_lea.vmem %s3331_s23, 16384 }
 0x101   : > { %v880_v55 = vmax.f32 %v774_v49, 0.0 }
 0x102   : > { %v878_v56 = vmax.f32 %v766_v53, 0.0 }
 0x103   : > { %v908_v57 = vpack.c.bf16 %v880_v55, %v879_v48  ;;  %1378 = vmatpush1.bf16.msra.mxu1 %v3225_v51 }
 0x104   : > { %v907_v59 = vpack.c.bf16 %v878_v56, %v877_v52  ;;  %v3019_v60 = vpop.f32.mrb[8].mxu0  ;;  %1379 = vmatprep.subr.bf16.mxu1 %v3230_v54 }
 0x105   : > { %v787_v62 = vadd.f32 %v3019_v60, %v3605_v26  ;;  %v778_v63 = vpop.f32.mrb[9].mxu0 }
 0x106   : > { %2770 = vmatmul.mubr.msk.bf16.gmra.mrb[4].mxu1 %vm957_vm1, %v906_v39  ;;  %v779_v0 = vadd.f32 %v3605_v26, %v778_v63  ;;  %v3020_v1 = vpop.f32.mrb[10].mxu0 }
 0x107   : > { %1058 = vmatprep.mubr.bf16.mxu1 %v3406_v24  ;;  %v883_v2 = vmax.f32 %v787_v62, 0.0  ;;  %v790_v3 = vadd.f32 %v3020_v1, %v3605_v26  ;;  %v781_v4 = vpop.f32.mrb[11].mxu0  ;;  %1380 = vmatpush1.bf16.msra.mxu1 %v3228_v58 }
 0x108   : > { %v881_v6 = vmax.f32 %v779_v0, 0.0  ;;  %v782_v7 = vadd.f32 %v3605_v26, %v781_v4  ;;  %1381 = vmatprep.subr.bf16.mxu1 %v3233_v61 }
 0x109   : > { %v884_v9 = vmax.f32 %v790_v3, 0.0 }
 0x10a   : > { %v882_v10 = vmax.f32 %v782_v7, 0.0 }
 0x10b   : > { %v3631_v11 = vpack.c.bf16 %v884_v9, %v883_v2  ;;  %1382 = vmatpush1.bf16.msra.mxu1 %v3231_v5 }
 0x10c   : > { %v909_v13 = vpack.c.bf16 %v882_v10, %v881_v6  ;;  %v3023_v14 = vpop.f32.mrb[12].mxu0  ;;  %1383 = vmatprep.subr.bf16.mxu1 %v3236_v8 }
 0x10d   : > { %v803_v16 = vadd.f32 %v3023_v14, %v3605_v26  ;;  %v794_v17 = vpop.f32.mrb[13].mxu0 }
 0x10e   : > { %2771 = vmatmul.mubr.msk.bf16.gmra.mrb[8].mxu1 %vm957_vm1, %v907_v59  ;;  %v795_v18 = vadd.f32 %v3605_v26, %v794_v17  ;;  %v3024_v19 = vpop.f32.mrb[14].mxu0 }
 0x10f   : > { %1068 = vmatprep.mubr.bf16.mxu1 %v3406_v24  ;;  %v887_v20 = vmax.f32 %v803_v16, 0.0  ;;  %v806_v21 = vadd.f32 %v3024_v19, %v3605_v26  ;;  %v797_v22 = vpop.f32.mrb[15].mxu0  ;;  %1384 = vmatpush1.bf16.msra.mxu1 %v3234_v12 }
 0x110   : > { %v885_v25 = vmax.f32 %v795_v18, 0.0  ;;  %v798_v27 = vadd.f32 %v3605_v26, %v797_v22  ;;  %1385 = vmatprep.subr.bf16.mxu1 %v3239_v15 }
 0x111   : > { %v888_v29 = vmax.f32 %v806_v21, 0.0 }
 0x112   : > { %v886_v30 = vmax.f32 %v798_v27, 0.0 }
 0x113   : > { %v3643_v31 = vpack.c.bf16 %v888_v29, %v887_v20  ;;  %1386 = vmatpush1.bf16.msra.mxu1 %v3237_v23 }
 0x114   : > { %v911_v33 = vpack.c.bf16 %v886_v30, %v885_v25  ;;  %v3027_v34 = vpop.f32.mrb[16].mxu0  ;;  %1387 = vmatprep.subr.bf16.mxu1 %v3242_v28  ;;  %v3264_v30 = vld [vmem:[%s4179_s6 + $0x4] ss:$8 sps:$4 sm:$0xff]  }
 0x115   : > { %v819_v36 = vadd.f32 %v3027_v34, %v3605_v26  ;;  %v810_v37 = vpop.f32.mrb[17].mxu0  ;;  %1868 = vmatprep.subr.bf16.mxu0 %v3264_v30  ;;  %v3270_v34 = vld [vmem:[%s4179_s6 + $0x24] ss:$8 sps:$4 sm:$0xff]  }
 0x116   : > { %2772 = vmatmul.mubr.msk.bf16.gmra.mrb[12].mxu1 %vm957_vm1, %v908_v57  ;;  %v811_v38 = vadd.f32 %v3605_v26, %v810_v37  ;;  %v3028_v39 = vpop.f32.mrb[18].mxu0  ;;  %v3271_v37 = vld [vmem:[%s4179_s6 + $0x30] ss:$8 sps:$4 sm:$0xff]  }
 0x117   : > { %1078 = vmatprep.mubr.bf16.mxu1 %v3406_v24  ;;  %v891_v40 = vmax.f32 %v819_v36, 0.0  ;;  %v822_v41 = vadd.f32 %v3028_v39, %v3605_v26  ;;  %v813_v42 = vpop.f32.mrb[19].mxu0  ;;  %1388 = vmatpush1.bf16.msra.mxu1 %v3240_v32  ;;  %v3265_v32 = vld [vmem:[%s4179_s6 + $0x10] ss:$8 sps:$4 sm:$0xff]   ;;  %v3273_v36 = vld [vmem:[%s4179_s6 + $0x34] ss:$8 sps:$4 sm:$0xff]  }
 0x118   : > { %v889_v44 = vmax.f32 %v811_v38, 0.0  ;;  %v814_v45 = vadd.f32 %v3605_v26, %v813_v42  ;;  %1389 = vmatprep.subr.bf16.mxu1 %v3245_v35  ;;  %v3268_v35 = vld [vmem:[%s4179_s6 + $0x20] ss:$8 sps:$4 sm:$0xff]   ;;  %v3276_v39 = vld [vmem:[%s4179_s6 + $0x44] ss:$8 sps:$4 sm:$0xff]  }
 0x119   : > { %v892_v46 = vmax.f32 %v822_v41, 0.0  ;;  %v3247_v38 = vld [vmem:[%s4174_s1 + $0x8] sm:$0xff]   ;;  %v3279_v41 = vld [vmem:[%s4179_s6 + $0x54] ss:$8 sps:$4 sm:$0xff]   ;;  %v3277_v42 = vld [vmem:[%s4179_s6 + $0x50] ss:$8 sps:$4 sm:$0xff]  }
 0x11a   : > { %v890_v47 = vmax.f32 %v814_v45, 0.0  ;;  %v3280_v45 = vld [vmem:[%s4179_s6 + $0x60] ss:$8 sps:$4 sm:$0xff]  }
 0x11b   : > { %v914_v48 = vpack.c.bf16 %v892_v46, %v891_v40  ;;  %1390 = vmatpush1.bf16.msra.mxu1 %v3243_v43  ;;  %v3274_v40 = vld [vmem:[%s4179_s6 + $0x40] ss:$8 sps:$4 sm:$0xff]   ;;  %v3248_v43 = vld [vmem:[%s4174_s1 + $0x10] sm:$0xff]  }
 0x11c   : > { %v913_v49 = vpack.c.bf16 %v890_v47, %v889_v44  ;;  %v3031_v50 = vpop.f32.mrb[20].mxu0  ;;  %3041 = vmatprep.subr.bf16.mxu1 %v3264_v30  ;;  %v3282_v44 = vld [vmem:[%s4179_s6 + $0x64] ss:$8 sps:$4 sm:$0xff]   ;;  %v3285_v46 = vld [vmem:[%s4179_s6 + $0x74] ss:$8 sps:$4 sm:$0xff]  }
 0x11d   : > { %v835_v51 = vadd.f32 %v3031_v50, %v3605_v26  ;;  %v826_v52 = vpop.f32.mrb[21].mxu0  ;;  %v3283_v47 = vld [vmem:[%s4179_s6 + $0x70] ss:$8 sps:$4 sm:$0xff]   ;;  %v3286_v50 = vld [vmem:[%s4179_s6 + $0x80] ss:$8 sps:$4 sm:$0xff]  }
 0x11e   : > { %2773 = vmatmul.mubr.msk.bf16.gmra.mrb[16].mxu1 %vm957_vm1, %v909_v13  ;;  %v827_v53 = vadd.f32 %v3605_v26, %v826_v52  ;;  %v3032_v54 = vpop.f32.mrb[22].mxu0  ;;  %v3289_v52 = vld [vmem:[%s4179_s6 + $0x90] ss:$8 sps:$4 sm:$0xff]  }
 0x11f   : > { %1088 = vmatprep.mubr.bf16.mxu1 %v3406_v24  ;;  %v895_v55 = vmax.f32 %v835_v51, 0.0  ;;  %v838_v56 = vadd.f32 %v3032_v54, %v3605_v26  ;;  %v829_v57 = vpop.f32.mrb[23].mxu0  ;;  %v3291_v51 = vld [vmem:[%s4179_s6 + $0x94] ss:$8 sps:$4 sm:$0xff]   ;;  %v3294_v54 = vld [vmem:[%s4179_s6 + $0xa4] ss:$8 sps:$4 sm:$0xff]  }
 0x120   : > { %v893_v58 = vmax.f32 %v827_v53, 0.0  ;;  %v830_v59 = vadd.f32 %v3605_v26, %v829_v57  ;;  %v3250_v53 = vld [vmem:[%s4174_s1 + $0x20] sm:$0xff]   ;;  %v3295_v57 = vld [vmem:[%s4179_s6 + $0xb0] ss:$8 sps:$4 sm:$0xff]  }
 0x121   : > { %v896_v60 = vmax.f32 %v838_v56, 0.0  ;;  %v3297_v56 = vld [vmem:[%s4179_s6 + $0xb4] ss:$8 sps:$4 sm:$0xff]  }
 0x122   : > { %v894_v61 = vmax.f32 %v830_v59, 0.0  ;;  %v3300_v59 = vld [vmem:[%s4179_s6 + $0xc4] ss:$8 sps:$4 sm:$0xff]  }
 0x123   : > { %v916_v62 = vpack.c.bf16 %v896_v60, %v895_v55  ;;  %v3292_v55 = vld [vmem:[%s4179_s6 + $0xa0] ss:$8 sps:$4 sm:$0xff]  }
 0x124   : > { %v915_v63 = vpack.c.bf16 %v894_v61, %v893_v58  ;;  %v3035_v0 = vpop.f32.mrb[24].mxu0  ;;  %v3251_v58 = vld [vmem:[%s4174_s1 + $0x28] sm:$0xff]   ;;  %v3303_v61 = vld [vmem:[%s4179_s6 + $0xd4] ss:$8 sps:$4 sm:$0xff]  }
 0x125   : > { %v851_v1 = vadd.f32 %v3035_v0, %v3605_v26  ;;  %v842_v2 = vpop.f32.mrb[25].mxu0  ;;  %v3298_v60 = vld [vmem:[%s4179_s6 + $0xc0] ss:$8 sps:$4 sm:$0xff]   ;;  %v3253_v0 = vld [vmem:[%s4174_s1 + $0x38] sm:$0xff]  }
 0x126   : > { %2774 = vmatmul.mubr.msk.bf16.gmra.mrb[20].mxu1 %vm957_vm1, %v3631_v11  ;;  %v843_v3 = vadd.f32 %v3605_v26, %v842_v2  ;;  %v3036_v4 = vpop.f32.mrb[26].mxu0  ;;  %v3255_v2 = vld [vmem:[%s4174_s1 + $0x48] sm:$0xff]  }
 0x127   : > { %1098 = vmatprep.mubr.bf16.mxu1 %v3406_v24  ;;  %v899_v5 = vmax.f32 %v851_v1, 0.0  ;;  %v854_v6 = vadd.f32 %v3036_v4, %v3605_v26  ;;  %v845_v7 = vpop.f32.mrb[27].mxu0  ;;  %v3254_v1 = vld [vmem:[%s4174_s1 + $0x40] sm:$0xff]  }
 0x128   : > { %v897_v8 = vmax.f32 %v843_v3, 0.0  ;;  %v846_v9 = vadd.f32 %v3605_v26, %v845_v7  ;;  %v3256_v3 = vld [vmem:[%s4174_s1 + $0x50] sm:$0xff]   ;;  %v3306_v4 = vld [vmem:[%s4179_s6 + $0xe4] ss:$8 sps:$4 sm:$0xff]  }
 0x129   : > { %v900_v10 = vmax.f32 %v854_v6, 0.0  ;;  %v3257_v6 = vld [vmem:[%s4174_s1 + $0x58] sm:$0xff]  }
 0x12a   : > { %v898_v12 = vmax.f32 %v846_v9, 0.0  ;;  %v3309_v7 = vld [vmem:[%s4179_s6 + $0xf4] ss:$8 sps:$4 sm:$0xff]   ;;  %v3258_v9 = vld [vmem:[%s4174_s1 + $0x60] sm:$0xff]  }
 0x12b   : > { %v918_v13 = vpack.c.bf16 %v900_v10, %v899_v5  ;;  %v3304_v5 = vld [vmem:[%s4179_s6 + $0xe0] ss:$8 sps:$4 sm:$0xff]  }
 0x12c   : > { %v917_v14 = vpack.c.bf16 %v898_v12, %v897_v8  ;;  %v3039_v15 = vpop.f32.mrb[28].mxu0  ;;  %v3307_v8 = vld [vmem:[%s4179_s6 + $0xf0] ss:$8 sps:$4 sm:$0xff]   ;;  %v3259_v10 = vld [vmem:[%s4174_s1 + $0x68] sm:$0xff]  }
 0x12d   : > { %v867_v16 = vadd.f32 %v3039_v15, %v3605_v26  ;;  %v858_v11 = vpop.f32.mrb[29].mxu0  ;;  %v3260_v12 = vld [vmem:[%s4174_s1 + $0x70] sm:$0xff]  }
 0x12e   : > { %2775 = vmatmul.mubr.msk.bf16.gmra.mrb[24].mxu1 %vm957_vm1, %v911_v33  ;;  %v859_v17 = vadd.f32 %v3605_v26, %v858_v11  ;;  %v3040_v18 = vpop.f32.mrb[30].mxu0  ;;  %v3246_v33 = vld [vmem:[%s4174_s1] sm:$0xff]  }
 0x12f   : > { %1108 = vmatprep.mubr.bf16.mxu1 %v3406_v24  ;;  %v903_v19 = vmax.f32 %v867_v16, 0.0  ;;  %v870_v20 = vadd.f32 %v3040_v18, %v3605_v26  ;;  %v861_v21 = vpop.f32.mrb[31].mxu0 }
 0x130   : > { %v901_v22 = vmax.f32 %v859_v17, 0.0  ;;  %v862_v23 = vadd.f32 %v3605_v26, %v861_v21  ;;  %v3262_v26 = vld [vmem:[%s4179_s6] ss:$8 sps:$4 sm:$0xff]  }
 0x131   : > { %v904_v25 = vmax.f32 %v870_v20, 0.0  ;;  %1869 = vmatpush1.bf16.msra.mxu0 %v3262_v26 }
 0x132   : > { %v902_v27 = vmax.f32 %v862_v23, 0.0  ;;  %v3311_v23 = vld [vmem:[%s4181_s8] sm:$0xff]  }
 0x133   : > { %v920_v28 = vpack.c.bf16 %v904_v25, %v903_v19  ;;  %v3312_v25 = vld [vmem:[%s4181_s8 + $0x48] sm:$0xff]  }
 0x134   : > { %v919_v29 = vpack.c.bf16 %v902_v27, %v901_v22 }
 0x136   : > { %2776 = vmatmul.mubr.msk.bf16.gmra.mrb[28].mxu1 %vm957_vm1, %v3643_v31  ;;  %v3267_v31 = vld [vmem:[%s4179_s6 + $0x14] ss:$8 sps:$4 sm:$0xff]  }
 0x137   : > { %1118 = vmatprep.mubr.bf16.mxu1 %v3406_v24  ;;  %1870 = vmatprep.subr.bf16.mxu0 %v3267_v31 }
 0x138   : > { %1871 = vmatpush1.bf16.msra.mxu0 %v3265_v32 }
 0x139   : > { %1872 = vmatprep.subr.bf16.mxu0 %v3270_v34 }
 0x13c   : > { %1873 = vmatpush1.bf16.msra.mxu0 %v3268_v35 }
 0x13d   : > { %1874 = vmatprep.subr.bf16.mxu0 %v3273_v36 }
 0x13e   : > { %2777 = vmatmul.mubr.msk.bf16.gmra.mrb[32].mxu1 %vm957_vm1, %v913_v49  ;;  %v3288_v49 = vld [vmem:[%s4179_s6 + $0x84] ss:$8 sps:$4 sm:$0xff]  }
 0x13f   : > { %1128 = vmatprep.mubr.bf16.mxu1 %v3406_v24 }
 0x140   : > { %1875 = vmatpush1.bf16.msra.mxu0 %v3271_v37 }
 0x141   : > { %1876 = vmatprep.subr.bf16.mxu0 %v3276_v39 }
 0x144   : > { %1877 = vmatpush1.bf16.msra.mxu0 %v3274_v40 }
 0x145   : > { %1878 = vmatprep.subr.bf16.mxu0 %v3279_v41 }
 0x146   : > { %2778 = vmatmul.mubr.msk.bf16.gmra.mrb[36].mxu1 %vm957_vm1, %v914_v48  ;;  %v3249_v48 = vld [vmem:[%s4174_s1 + $0x18] sm:$0xff]  }
 0x147   : > { %1138 = vmatprep.mubr.bf16.mxu1 %v3406_v24 }
 0x148   : > { %1879 = vmatpush1.bf16.msra.mxu0 %v3277_v42 }
 0x149   : > { %1880 = vmatprep.subr.bf16.mxu0 %v3282_v44 }
 0x14c   : > { %1881 = vmatpush1.bf16.msra.mxu0 %v3280_v45 }
 0x14d   : > { %1882 = vmatprep.subr.bf16.mxu0 %v3285_v46 }
 0x14e   : > { %2779 = vmatmul.mubr.msk.bf16.gmra.mrb[40].mxu1 %vm957_vm1, %v915_v63  ;;  %v3252_v63 = vld [vmem:[%s4174_s1 + $0x30] sm:$0xff]  }
 0x14f   : > { %1148 = vmatprep.mubr.bf16.mxu1 %v3406_v24 }
 0x150   : > { %1883 = vmatpush1.bf16.msra.mxu0 %v3283_v47 }
 0x151   : > { %1884 = vmatprep.subr.bf16.mxu0 %v3288_v49 }
 0x154   : > { %1885 = vmatpush1.bf16.msra.mxu0 %v3286_v50 }
 0x155   : > { %1886 = vmatprep.subr.bf16.mxu0 %v3291_v51 }
 0x156   : > { %2780 = vmatmul.mubr.msk.bf16.gmra.mrb[44].mxu1 %vm957_vm1, %v916_v62  ;;  %v3301_v62 = vld [vmem:[%s4179_s6 + $0xd0] ss:$8 sps:$4 sm:$0xff]  }
 0x157   : > { %1158 = vmatprep.mubr.bf16.mxu1 %v3406_v24 }
 0x158   : > { %1887 = vmatpush1.bf16.msra.mxu0 %v3289_v52 }
 0x159   : > { %1888 = vmatprep.subr.bf16.mxu0 %v3294_v54 }
 0x15c   : > { %1889 = vmatpush1.bf16.msra.mxu0 %v3292_v55 }
 0x15d   : > { %1890 = vmatprep.subr.bf16.mxu0 %v3297_v56 }
 0x15e   : > { %2781 = vmatmul.mubr.msk.bf16.gmra.mrb[48].mxu1 %vm957_vm1, %v917_v14  ;;  %v3310_v14 = vld [vmem:[%s4181_s8 + $0x40] sm:$0xff]  }
 0x15f   : > { %1168 = vmatprep.mubr.bf16.mxu1 %v3406_v24 }
 0x160   : > { %1891 = vmatpush1.bf16.msra.mxu0 %v3295_v57 }
 0x161   : > { %1892 = vmatprep.subr.bf16.mxu0 %v3300_v59 }
 0x164   : > { %1893 = vmatpush1.bf16.msra.mxu0 %v3298_v60 }
 0x165   : > { %1894 = vmatprep.subr.bf16.mxu0 %v3303_v61 }
 0x166   : > { %2782 = vmatmul.mubr.msk.bf16.gmra.mrb[52].mxu1 %vm957_vm1, %v918_v13  ;;  %v3261_v13 = vld [vmem:[%s4174_s1 + $0x78] sm:$0xff]  }
 0x167   : > { %1178 = vmatprep.mubr.bf16.mxu1 %v3406_v24 }
 0x168   : > { %1895 = vmatpush1.bf16.msra.mxu0 %v3301_v62 }
 0x169   : > { %1896 = vmatprep.subr.bf16.mxu0 %v3306_v4 }
 0x16c   : > { %1897 = vmatpush1.bf16.msra.mxu0 %v3304_v5 }
 0x16d   : > { %1898 = vmatprep.subr.bf16.mxu0 %v3309_v7 }
 0x16e   : > { %2783 = vmatmul.mubr.msk.bf16.gmra.mrb[56].mxu1 %vm957_vm1, %v919_v29 }
 0x16f   : > { %1188 = vmatprep.mubr.bf16.mxu1 %v3406_v24 }
 0x170   : > { %1899 = vmatpush1.bf16.msra.mxu0 %v3307_v8 }
 0x171   : > { %2893 = vmatprep.subr.bf16.mxu0 %v3310_v14 }
 0x176   : > { %2784 = vmatmul.mubr.msk.bf16.gmra.mrb[60].mxu1 %vm957_vm1, %v920_v28 }
 0x177   : > { %1407 = vmatprep.mubr.bf16.mxu1 %v3406_v24 }
 0x17e   : > { %1408 = vmatmul.mubr.bf16.vlgmr.msra.gmra.mrb[0].mxu1 %v3246_v33  ;;  %v3314_v33 = vld [vmem:[%s4181_s8 + $0x50] sm:$0xff]  }
 0x17f   : > { %1417 = vmatprep.mubr.bf16.mxu1 %v3406_v24  ;;  %3057 = vmatpush1.bf16.msra.mxu1 %v3262_v26  ;;  %v3313_v26 = vld [vmem:[%s4181_s8 + $0x8] sm:$0xff]  }
 0x180   : > { %3042 = vmatprep.subr.bf16.mxu1 %v3267_v31 }
 0x183   : > { %3058 = vmatpush1.bf16.msra.mxu1 %v3265_v32 }
 0x184   : > { %3043 = vmatprep.subr.bf16.mxu1 %v3270_v34 }
 0x186   : > { %1418 = vmatmul.mubr.bf16.gmra.mrb[4].mxu1 %v3247_v38  ;;  %v3315_v38 = vld [vmem:[%s4181_s8 + $0x10] sm:$0xff]  }
 0x187   : > { %1427 = vmatprep.mubr.bf16.mxu1 %v3406_v24  ;;  %3059 = vmatpush1.bf16.msra.mxu1 %v3268_v35 }
 0x188   : > { %3044 = vmatprep.subr.bf16.mxu1 %v3273_v36 }
 0x18b   : > { %3060 = vmatpush1.bf16.msra.mxu1 %v3271_v37 }
 0x18c   : > { %3045 = vmatprep.subr.bf16.mxu1 %v3276_v39  ;;  %v3316_v39 = vld [vmem:[%s4181_s8 + $0x58] sm:$0xff]  }
 0x18e   : > { %1428 = vmatmul.mubr.bf16.gmra.mrb[8].mxu1 %v3248_v43  ;;  %v3317_v43 = vld [vmem:[%s4181_s8 + $0x18] sm:$0xff]  }
 0x18f   : > { %1437 = vmatprep.mubr.bf16.mxu1 %v3406_v24  ;;  %3061 = vmatpush1.bf16.msra.mxu1 %v3274_v40 }
 0x190   : > { %3046 = vmatprep.subr.bf16.mxu1 %v3279_v41 }
 0x193   : > { %3062 = vmatpush1.bf16.msra.mxu1 %v3277_v42 }
 0x194   : > { %3047 = vmatprep.subr.bf16.mxu1 %v3282_v44 }
 0x196   : > { %1438 = vmatmul.mubr.bf16.gmra.mrb[12].mxu1 %v3249_v48 }
 0x197   : > { %1447 = vmatprep.mubr.bf16.mxu1 %v3406_v24  ;;  %3063 = vmatpush1.bf16.msra.mxu1 %v3280_v45 }
 0x198   : > { %3048 = vmatprep.subr.bf16.mxu1 %v3285_v46 }
 0x19b   : > { %3064 = vmatpush1.bf16.msra.mxu1 %v3283_v47  ;;  %v3318_v47 = vld [vmem:[%s4181_s8 + $0x60] sm:$0xff]  }
 0x19c   : > { %3049 = vmatprep.subr.bf16.mxu1 %v3288_v49 }
 0x19e   : > { %1448 = vmatmul.mubr.bf16.gmra.mrb[16].mxu1 %v3250_v53  ;;  %v3320_v53 = vld [vmem:[%s4181_s8 + $0x68] sm:$0xff]  }
 0x19f   : > { %1457 = vmatprep.mubr.bf16.mxu1 %v3406_v24  ;;  %3065 = vmatpush1.bf16.msra.mxu1 %v3286_v50 }
 0x1a0   : > { %3050 = vmatprep.subr.bf16.mxu1 %v3291_v51 }
 0x1a3   : > { %3066 = vmatpush1.bf16.msra.mxu1 %v3289_v52  ;;  %v3319_v52 = vld [vmem:[%s4181_s8 + $0x20] sm:$0xff]  }
 0x1a4   : > { %3051 = vmatprep.subr.bf16.mxu1 %v3294_v54 }
 0x1a6   : > { %1458 = vmatmul.mubr.bf16.gmra.mrb[20].mxu1 %v3251_v58 }
 0x1a7   : > { %1467 = vmatprep.mubr.bf16.mxu1 %v3406_v24  ;;  %3067 = vmatpush1.bf16.msra.mxu1 %v3292_v55 }
 0x1a8   : > { %3052 = vmatprep.subr.bf16.mxu1 %v3297_v56 }
 0x1ab   : > { %3068 = vmatpush1.bf16.msra.mxu1 %v3295_v57  ;;  %v3321_v57 = vld [vmem:[%s4181_s8 + $0x28] sm:$0xff]  }
 0x1ac   : > { %3053 = vmatprep.subr.bf16.mxu1 %v3300_v59 }
 0x1ae   : > { %1468 = vmatmul.mubr.bf16.gmra.mrb[24].mxu1 %v3252_v63 }
 0x1af   : > { %1477 = vmatprep.mubr.bf16.mxu1 %v3406_v24  ;;  %3069 = vmatpush1.bf16.msra.mxu1 %v3298_v60 }
 0x1b0   : > { %3054 = vmatprep.subr.bf16.mxu1 %v3303_v61  ;;  %v3322_v61 = vld [vmem:[%s4181_s8 + $0x70] sm:$0xff]  }
 0x1b3   : > { %3070 = vmatpush1.bf16.msra.mxu1 %v3301_v62 }
 0x1b4   : > { %3055 = vmatprep.subr.bf16.mxu1 %v3306_v4 }
 0x1b6   : > { %1478 = vmatmul.mubr.bf16.gmra.mrb[28].mxu1 %v3253_v0 }
 0x1b7   : > { %1487 = vmatprep.mubr.bf16.mxu1 %v3406_v24  ;;  %3071 = vmatpush1.bf16.msra.mxu1 %v3304_v5 }
 0x1b8   : > { %3056 = vmatprep.subr.bf16.mxu1 %v3309_v7  ;;  %v3325_v7 = vld [vmem:[%s4181_s8 + $0x38] sm:$0xff]  }
 0x1bb   : > { %3072 = vmatpush1.bf16.msra.mxu1 %v3307_v8 }
 0x1be   : > { %1488 = vmatmul.mubr.bf16.gmra.mrb[32].mxu1 %v3254_v1 }
 0x1bf   : > { %1497 = vmatprep.mubr.bf16.mxu1 %v3406_v24 }
 0x1c6   : > { %1498 = vmatmul.mubr.bf16.gmra.mrb[36].mxu1 %v3255_v2  ;;  %v3323_v2 = vld [vmem:[%s4181_s8 + $0x30] sm:$0xff]  }
 0x1c7   : > { %1507 = vmatprep.mubr.bf16.mxu1 %v3406_v24 }
 0x1ce   : > { %1508 = vmatmul.mubr.bf16.gmra.mrb[40].mxu1 %v3256_v3  ;;  %v3324_v3 = vld [vmem:[%s4181_s8 + $0x78] sm:$0xff]  }
 0x1cf   : > { %1517 = vmatprep.mubr.bf16.mxu1 %v3406_v24 }
 0x1d6   : > { %1518 = vmatmul.mubr.bf16.gmra.mrb[44].mxu1 %v3257_v6 }
 0x1d7   : > { %1527 = vmatprep.mubr.bf16.mxu1 %v3406_v24 }
 0x1de   : > { %1528 = vmatmul.mubr.bf16.gmra.mrb[48].mxu1 %v3258_v9 }
 0x1df   : > { %1537 = vmatprep.mubr.bf16.mxu1 %v3406_v24 }
 0x1e6   : > { %1538 = vmatmul.mubr.bf16.gmra.mrb[52].mxu1 %v3259_v10 }
 0x1e7   : > { %1547 = vmatprep.mubr.bf16.mxu1 %v3406_v24 }
 0x1ee   : > { %1548 = vmatmul.mubr.bf16.gmra.mrb[56].mxu1 %v3260_v12 }
 0x1ef   : > { %1557 = vmatprep.mubr.bf16.mxu1 %v3406_v24 }
 0x1f6   : > { %1558 = vmatmul.mubr.bf16.gmra.mrb[60].mxu1 %v3261_v13 }
 0x251   : > { %v1409_v15 = vpop.f32.mrb[0].mxu1 }
 0x252   : > { %v1411_v16 = vpop.f32.mrb[1].mxu1  ;;  %v1568_v17 = vmax.f32 %v1409_v15, 0.0 }
 0x253   : > { %v1413_v11 = vpop.f32.mrb[2].mxu1  ;;  %v1569_v20 = vmax.f32 %v1411_v16, 0.0 }
 0x254   : > { %v1570_v18 = vmax.f32 %v1413_v11, 0.0  ;;  %v1415_v19 = vpop.f32.mrb[3].mxu1 }
 0x255   : > { %v1571_v21 = vmax.f32 %v1415_v19, 0.0 }
 0x256   : > { %v1632_v22 = vpack.c.bf16 %v1570_v18, %v1568_v17 }
 0x257   : > { %v1633_v24 = vpack.c.bf16 %v1571_v21, %v1569_v20 }
 0x259   : > { %v1419_v27 = vpop.f32.mrb[4].mxu1  ;;  %1900 = vmatprep.mubr.bf16.mxu0 %v1633_v24 }
 0x25a   : > { %v1421_v28 = vpop.f32.mrb[5].mxu1  ;;  %1901 = vmatmul.mubr.bf16.vlgmr.msra.gmra.mrb[32].mxu0 %v1632_v22  ;;  %v1572_v30 = vmax.f32 %v1419_v27, 0.0 }
 0x25b   : > { %v1423_v29 = vpop.f32.mrb[6].mxu1  ;;  %2894 = vmatpush3.bf16.msra.mxu0 %v3311_v23  ;;  %v1573_v34 = vmax.f32 %v1421_v28, 0.0 }
 0x25c   : > { %v1574_v31 = vmax.f32 %v1423_v29, 0.0  ;;  %v1425_v32 = vpop.f32.mrb[7].mxu1  ;;  %2895 = vmatprep.subr.bf16.mxu0 %v3312_v25 }
 0x25d   : > { %v1575_v35 = vmax.f32 %v1425_v32, 0.0 }
 0x25e   : > { %v1634_v36 = vpack.c.bf16 %v1574_v31, %v1572_v30 }
 0x25f   : > { %v1635_v37 = vpack.c.bf16 %v1575_v35, %v1573_v34  ;;  %2896 = vmatpush3.bf16.msra.mxu0 %v3313_v26 }
 0x260   : > { %2897 = vmatprep.subr.bf16.mxu0 %v3314_v33 }
 0x261   : > { %v1429_v40 = vpop.f32.mrb[8].mxu1  ;;  %1910 = vmatprep.mubr.bf16.mxu0 %v1635_v37 }
 0x262   : > { %v1431_v41 = vpop.f32.mrb[9].mxu1  ;;  %1911 = vmatmul.mubr.bf16.gmra.mrb[36].mxu0 %v1634_v36  ;;  %v1576_v44 = vmax.f32 %v1429_v40, 0.0 }
 0x263   : > { %v1433_v42 = vpop.f32.mrb[10].mxu1  ;;  %2898 = vmatpush3.bf16.msra.mxu0 %v3315_v38  ;;  %v1577_v48 = vmax.f32 %v1431_v41, 0.0 }
 0x264   : > { %v1578_v45 = vmax.f32 %v1433_v42, 0.0  ;;  %v1435_v46 = vpop.f32.mrb[11].mxu1  ;;  %2899 = vmatprep.subr.bf16.mxu0 %v3316_v39 }
 0x265   : > { %v1579_v49 = vmax.f32 %v1435_v46, 0.0 }
 0x266   : > { %v1636_v50 = vpack.c.bf16 %v1578_v45, %v1576_v44 }
 0x267   : > { %v1637_v51 = vpack.c.bf16 %v1579_v49, %v1577_v48  ;;  %2900 = vmatpush3.bf16.msra.mxu0 %v3317_v43 }
 0x268   : > { %2901 = vmatprep.subr.bf16.mxu0 %v3318_v47 }
 0x269   : > { %v1439_v54 = vpop.f32.mrb[12].mxu1  ;;  %1920 = vmatprep.mubr.bf16.mxu0 %v1637_v51 }
 0x26a   : > { %v1441_v55 = vpop.f32.mrb[13].mxu1  ;;  %1921 = vmatmul.mubr.bf16.gmra.mrb[40].mxu0 %v1636_v50  ;;  %v1580_v58 = vmax.f32 %v1439_v54, 0.0 }
 0x26b   : > { %v1443_v56 = vpop.f32.mrb[14].mxu1  ;;  %2902 = vmatpush3.bf16.msra.mxu0 %v3319_v52  ;;  %v1581_v62 = vmax.f32 %v1441_v55, 0.0 }
 0x26c   : > { %v1582_v59 = vmax.f32 %v1443_v56, 0.0  ;;  %v1445_v60 = vpop.f32.mrb[15].mxu1  ;;  %2903 = vmatprep.subr.bf16.mxu0 %v3320_v53 }
 0x26d   : > { %v1583_v63 = vmax.f32 %v1445_v60, 0.0 }
 0x26e   : > { %v1638_v0 = vpack.c.bf16 %v1582_v59, %v1580_v58 }
 0x26f   : > { %v1639_v1 = vpack.c.bf16 %v1583_v63, %v1581_v62  ;;  %2904 = vmatpush3.bf16.msra.mxu0 %v3321_v57 }
 0x270   : > { %2905 = vmatprep.subr.bf16.mxu0 %v3322_v61 }
 0x271   : > { %v1449_v4 = vpop.f32.mrb[16].mxu1  ;;  %1930 = vmatprep.mubr.bf16.mxu0 %v1639_v1 }
 0x272   : > { %v1451_v5 = vpop.f32.mrb[17].mxu1  ;;  %1931 = vmatmul.mubr.bf16.gmra.mrb[44].mxu0 %v1638_v0  ;;  %v1584_v8 = vmax.f32 %v1449_v4, 0.0 }
 0x273   : > { %v1453_v6 = vpop.f32.mrb[18].mxu1  ;;  %2906 = vmatpush3.bf16.msra.mxu0 %v3323_v2  ;;  %v1585_v12 = vmax.f32 %v1451_v5, 0.0 }
 0x274   : > { %v1586_v9 = vmax.f32 %v1453_v6, 0.0  ;;  %v1455_v10 = vpop.f32.mrb[19].mxu1  ;;  %2907 = vmatprep.subr.bf16.mxu0 %v3324_v3 }
 0x275   : > { %v1587_v13 = vmax.f32 %v1455_v10, 0.0 }
 0x276   : > { %v1640_v14 = vpack.c.bf16 %v1586_v9, %v1584_v8 }
 0x277   : > { %v1641_v15 = vpack.c.bf16 %v1587_v13, %v1585_v12  ;;  %2908 = vmatpush3.bf16.msra.mxu0 %v3325_v7 }
 0x279   : > { %v1459_v16 = vpop.f32.mrb[20].mxu1  ;;  %1940 = vmatprep.mubr.bf16.mxu0 %v1641_v15 }
 0x27a   : > { %v1461_v11 = vpop.f32.mrb[21].mxu1  ;;  %1941 = vmatmul.mubr.bf16.gmra.mrb[48].mxu0 %v1640_v14  ;;  %v1588_v18 = vmax.f32 %v1459_v16, 0.0 }
 0x27b   : > { %v1463_v17 = vpop.f32.mrb[22].mxu1  ;;  %v1589_v21 = vmax.f32 %v1461_v11, 0.0 }
 0x27c   : > { %v1590_v19 = vmax.f32 %v1463_v17, 0.0  ;;  %v1465_v20 = vpop.f32.mrb[23].mxu1 }
 0x27d   : > { %v1591_v22 = vmax.f32 %v1465_v20, 0.0 }
 0x27e   : > { %v1642_v24 = vpack.c.bf16 %v1590_v19, %v1588_v18 }
 0x27f   : > { %v1643_v23 = vpack.c.bf16 %v1591_v22, %v1589_v21 }
 0x281   : > { %v1469_v25 = vpop.f32.mrb[24].mxu1  ;;  %1950 = vmatprep.mubr.bf16.mxu0 %v1643_v23 }
 0x282   : > { %v1471_v27 = vpop.f32.mrb[25].mxu1  ;;  %1951 = vmatmul.mubr.bf16.gmra.mrb[52].mxu0 %v1642_v24  ;;  %v1592_v29 = vmax.f32 %v1469_v25, 0.0 }
 0x283   : > { %v1473_v28 = vpop.f32.mrb[26].mxu1  ;;  %v1593_v31 = vmax.f32 %v1471_v27, 0.0 }
 0x284   : > { %v1594_v26 = vmax.f32 %v1473_v28, 0.0  ;;  %v1475_v30 = vpop.f32.mrb[27].mxu1 }
 0x285   : > { %v1595_v32 = vmax.f32 %v1475_v30, 0.0 }
 0x286   : > { %v1644_v33 = vpack.c.bf16 %v1594_v26, %v1592_v29 }
 0x287   : > { %v1645_v34 = vpack.c.bf16 %v1595_v32, %v1593_v31 }
 0x289   : > { %v1479_v35 = vpop.f32.mrb[28].mxu1  ;;  %1960 = vmatprep.mubr.bf16.mxu0 %v1645_v34 }
 0x28a   : > { %v1481_v36 = vpop.f32.mrb[29].mxu1  ;;  %1961 = vmatmul.mubr.bf16.gmra.mrb[56].mxu0 %v1644_v33  ;;  %v1596_v38 = vmax.f32 %v1479_v35, 0.0 }
 0x28b   : > { %v1483_v37 = vpop.f32.mrb[30].mxu1  ;;  %v1597_v41 = vmax.f32 %v1481_v36, 0.0 }
 0x28c   : > { %v1598_v39 = vmax.f32 %v1483_v37, 0.0  ;;  %v1485_v40 = vpop.f32.mrb[31].mxu1 }
 0x28d   : > { %v1599_v42 = vmax.f32 %v1485_v40, 0.0 }
 0x28e   : > { %v1646_v43 = vpack.c.bf16 %v1598_v39, %v1596_v38 }
 0x28f   : > { %v1647_v44 = vpack.c.bf16 %v1599_v42, %v1597_v41 }
 0x291   : > { %v1489_v45 = vpop.f32.mrb[32].mxu1  ;;  %1970 = vmatprep.mubr.bf16.mxu0 %v1647_v44 }
 0x292   : > { %v1491_v46 = vpop.f32.mrb[33].mxu1  ;;  %1971 = vmatmul.mubr.bf16.gmra.mrb[60].mxu0 %v1646_v43  ;;  %v1600_v48 = vmax.f32 %v1489_v45, 0.0 }
 0x293   : > { %v1493_v47 = vpop.f32.mrb[34].mxu1  ;;  %v1601_v51 = vmax.f32 %v1491_v46, 0.0 }
 0x294   : > { %v1602_v49 = vmax.f32 %v1493_v47, 0.0  ;;  %v1495_v50 = vpop.f32.mrb[35].mxu1 }
 0x295   : > { %v1603_v52 = vmax.f32 %v1495_v50, 0.0 }
 0x296   : > { %v1648_v53 = vpack.c.bf16 %v1602_v49, %v1600_v48 }
 0x297   : > { %v1649_v54 = vpack.c.bf16 %v1603_v52, %v1601_v51 }
 0x299   : > { %v1499_v55 = vpop.f32.mrb[36].mxu1  ;;  %1980 = vmatprep.mubr.bf16.mxu0 %v1649_v54 }
 0x29a   : > { %v1501_v56 = vpop.f32.mrb[37].mxu1  ;;  %1981 = vmatmul.mubr.bf16.gmra.mrb[64].mxu0 %v1648_v53  ;;  %v1604_v58 = vmax.f32 %v1499_v55, 0.0 }
 0x29b   : > { %v1503_v57 = vpop.f32.mrb[38].mxu1  ;;  %v1605_v61 = vmax.f32 %v1501_v56, 0.0 }
 0x29c   : > { %v1606_v59 = vmax.f32 %v1503_v57, 0.0  ;;  %v1505_v60 = vpop.f32.mrb[39].mxu1 }
 0x29d   : > { %v1607_v62 = vmax.f32 %v1505_v60, 0.0 }
 0x29e   : > { %v1650_v63 = vpack.c.bf16 %v1606_v59, %v1604_v58 }
 0x29f   : > { %v1651_v0 = vpack.c.bf16 %v1607_v62, %v1605_v61  ;;  %v1698_v61 = vlaneseq }
 0x2a1   : > { %v1509_v1 = vpop.f32.mrb[40].mxu1  ;;  %1990 = vmatprep.mubr.bf16.mxu0 %v1651_v0  ;;  %v1699_v62 = vshrl.u32 %v1698_v61, 7  ;;  %v1696_v0 = vld [vmem:[%s4180_s7] sm:$0x3] }
 0x2a2   : > { %v1511_v2 = vpop.f32.mrb[41].mxu1  ;;  %1991 = vmatmul.mubr.bf16.gmra.mrb[68].mxu0 %v1650_v63  ;;  %v1608_v4 = vmax.f32 %v1509_v1, 0.0 }
 0x2a3   : > { %v1513_v3 = vpop.f32.mrb[42].mxu1  ;;  %v1609_v7 = vmax.f32 %v1511_v2, 0.0  ;;  %v1700_v63 = vsub.s32 0, %v1699_v62  ;;  %v1704_v1 = vsub.s32 1, %v1699_v62 }
 0x2a4   : > { %v1610_v5 = vmax.f32 %v1513_v3, 0.0  ;;  %v1515_v6 = vpop.f32.mrb[43].mxu1 }
 0x2a5   : > { %v1611_v8 = vmax.f32 %v1515_v6, 0.0  ;;  %v3903_v2 = vrot.slane %v1696_v0, %v1700_v63  ;;  %v3905_v3 = vrot.slane %v1696_v0, %v1704_v1 }
 0x2a6   : > { %v1652_v9 = vpack.c.bf16 %v1610_v5, %v1608_v4 }
 0x2a7   : > { %v1653_v10 = vpack.c.bf16 %v1611_v8, %v1609_v7 }
 0x2a9   : > { %v1519_v12 = vpop.f32.mrb[44].mxu1  ;;  %2000 = vmatprep.mubr.bf16.mxu0 %v1653_v10 }
 0x2aa   : > { %v1521_v13 = vpop.f32.mrb[45].mxu1  ;;  %2001 = vmatmul.mubr.bf16.gmra.mrb[72].mxu0 %v1652_v9  ;;  %v1612_v15 = vmax.f32 %v1519_v12, 0.0 }
 0x2ab   : > { %v1523_v14 = vpop.f32.mrb[46].mxu1  ;;  %v1613_v17 = vmax.f32 %v1521_v13, 0.0 }
 0x2ac   : > { %v1614_v16 = vmax.f32 %v1523_v14, 0.0  ;;  %v1525_v11 = vpop.f32.mrb[47].mxu1 }
 0x2ad   : > { %v1615_v18 = vmax.f32 %v1525_v11, 0.0 }
 0x2ae   : > { %v1654_v19 = vpack.c.bf16 %v1614_v16, %v1612_v15 }
 0x2af   : > { %v1655_v20 = vpack.c.bf16 %v1615_v18, %v1613_v17 }
 0x2b1   : > { %v1529_v21 = vpop.f32.mrb[48].mxu1  ;;  %2010 = vmatprep.mubr.bf16.mxu0 %v1655_v20 }
 0x2b2   : > { %v1531_v22 = vpop.f32.mrb[49].mxu1  ;;  %2011 = vmatmul.mubr.bf16.gmra.mrb[76].mxu0 %v1654_v19  ;;  %v1616_v23 = vmax.f32 %v1529_v21, 0.0 }
 0x2b3   : > { %v1533_v24 = vpop.f32.mrb[50].mxu1  ;;  %v1617_v28 = vmax.f32 %v1531_v22, 0.0 }
 0x2b4   : > { %v1618_v25 = vmax.f32 %v1533_v24, 0.0  ;;  %v1535_v27 = vpop.f32.mrb[51].mxu1 }
 0x2b5   : > { %v1619_v29 = vmax.f32 %v1535_v27, 0.0 }
 0x2b6   : > { %v1656_v26 = vpack.c.bf16 %v1618_v25, %v1616_v23 }
 0x2b7   : > { %v1657_v30 = vpack.c.bf16 %v1619_v29, %v1617_v28 }
 0x2b9   : > { %v1539_v31 = vpop.f32.mrb[52].mxu1  ;;  %2020 = vmatprep.mubr.bf16.mxu0 %v1657_v30 }
 0x2ba   : > { %v1541_v32 = vpop.f32.mrb[53].mxu1  ;;  %2021 = vmatmul.mubr.bf16.gmra.mrb[80].mxu0 %v1656_v26  ;;  %v1620_v34 = vmax.f32 %v1539_v31, 0.0 }
 0x2bb   : > { %v1543_v33 = vpop.f32.mrb[54].mxu1  ;;  %v1621_v37 = vmax.f32 %v1541_v32, 0.0 }
 0x2bc   : > { %v1622_v35 = vmax.f32 %v1543_v33, 0.0  ;;  %v1545_v36 = vpop.f32.mrb[55].mxu1 }
 0x2bd   : > { %v1623_v38 = vmax.f32 %v1545_v36, 0.0 }
 0x2be   : > { %v1658_v39 = vpack.c.bf16 %v1622_v35, %v1620_v34 }
 0x2bf   : > { %v1659_v40 = vpack.c.bf16 %v1623_v38, %v1621_v37 }
 0x2c1   : > { %v1549_v41 = vpop.f32.mrb[56].mxu1  ;;  %2030 = vmatprep.mubr.bf16.mxu1 %v1659_v40 }
 0x2c2   : > { %v1551_v42 = vpop.f32.mrb[57].mxu1  ;;  %2031 = vmatmul.mubr.bf16.vlgmr.msra.gmra.mrb[64].mxu1 %v1658_v39  ;;  %v1624_v44 = vmax.f32 %v1549_v41, 0.0 }
 0x2c3   : > { %v1553_v43 = vpop.f32.mrb[58].mxu1  ;;  %v1625_v47 = vmax.f32 %v1551_v42, 0.0 }
 0x2c4   : > { %v1626_v45 = vmax.f32 %v1553_v43, 0.0  ;;  %v1555_v46 = vpop.f32.mrb[59].mxu1 }
 0x2c5   : > { %v1627_v48 = vmax.f32 %v1555_v46, 0.0 }
 0x2c6   : > { %v1660_v49 = vpack.c.bf16 %v1626_v45, %v1624_v44 }
 0x2c7   : > { %v1661_v50 = vpack.c.bf16 %v1627_v48, %v1625_v47 }
 0x2c9   : > { %v1559_v51 = vpop.f32.mrb[60].mxu1  ;;  %2040 = vmatprep.mubr.bf16.mxu1 %v1661_v50 }
 0x2ca   : > { %v1561_v52 = vpop.f32.mrb[61].mxu1  ;;  %2041 = vmatmul.mubr.bf16.gmra.mrb[68].mxu1 %v1660_v49  ;;  %v1628_v54 = vmax.f32 %v1559_v51, 0.0 }
 0x2cb   : > { %v1563_v53 = vpop.f32.mrb[62].mxu1  ;;  %v1629_v57 = vmax.f32 %v1561_v52, 0.0 }
 0x2cc   : > { %v1630_v55 = vmax.f32 %v1563_v53, 0.0  ;;  %v1565_v56 = vpop.f32.mrb[63].mxu1 }
 0x2cd   : > { %v1631_v58 = vmax.f32 %v1565_v56, 0.0 }
 0x2ce   : > { %v1662_v59 = vpack.c.bf16 %v1630_v55, %v1628_v54 }
 0x2cf   : > { %v1663_v60 = vpack.c.bf16 %v1631_v58, %v1629_v57 }
 0x2d1   : > { %2050 = vmatprep.mubr.bf16.mxu1 %v1663_v60 }
 0x2d2   : > { %2051 = vmatmul.mubr.bf16.gmra.mrb[72].mxu1 %v1662_v59 }
 0x32d   : > { %v1902_v4 = vpop.f32.mrb[32].mxu0 }
 0x32e   : > { %v1903_v5 = vadd.f32 %v1902_v4, %v3903_v2  ;;  %v1904_v6 = vpop.f32.mrb[33].mxu0 }
 0x32f   : > { %v1905_v7 = vadd.f32 %v1904_v6, %v3905_v3  ;;  %v1906_v8 = vpop.f32.mrb[34].mxu0 }
 0x330   : > { %v2061_v9 = vmax.f32 %v1903_v5, 0.0  ;;  %v1907_v10 = vadd.f32 %v1906_v8, %v3903_v2  ;;  %v1908_v12 = vpop.f32.mrb[35].mxu0 }
 0x331   : > { %v2062_v13 = vmax.f32 %v1905_v7, 0.0  ;;  %v1909_v14 = vadd.f32 %v1908_v12, %v3905_v3 }
 0x332   : > { %2125 = vst [vmem:[%s3913_s12] sm:$0xff] %v2061_v9  ;;  %v2063_v15 = vmax.f32 %v1907_v10, 0.0 }
 0x333   : > { %2126 = vst [vmem:[%s3913_s12 + $0x8] sm:$0xff] %v2062_v13  ;;  %v2064_v16 = vmax.f32 %v1909_v14, 0.0 }
 0x334   : > { %2127 = vst [vmem:[%s3913_s12 + $0x10] sm:$0xff] %v2063_v15  ;;  %v2189_v11 = vpack.c.bf16 %v2063_v15, %v2061_v9 }
 0x335   : > { %2128 = vst [vmem:[%s3913_s12 + $0x18] sm:$0xff] %v2064_v16  ;;  %v2190_v17 = vpack.c.bf16 %v2064_v16, %v2062_v13  ;;  %v1912_v18 = vpop.f32.mrb[36].mxu0 }
 0x336   : > { %v1913_v19 = vadd.f32 %v1912_v18, %v3903_v2  ;;  %v1914_v20 = vpop.f32.mrb[37].mxu0 }
 0x337   : > { %v1915_v21 = vadd.f32 %v1914_v20, %v3905_v3  ;;  %v1916_v22 = vpop.f32.mrb[38].mxu0  ;;  %2388 = vmatprep.mubr.bf16.mxu0 %v2190_v17 }
 0x338   : > { %v2065_v24 = vmax.f32 %v1913_v19, 0.0  ;;  %v1917_v23 = vadd.f32 %v1916_v22, %v3903_v2  ;;  %v1918_v25 = vpop.f32.mrb[39].mxu0  ;;  %2389 = vmatmul.mubr.bf16.vlgmr.msra.gmra.mrb[84].mxu0 %v2189_v11 }
 0x339   : > { %v2066_v27 = vmax.f32 %v1915_v21, 0.0  ;;  %v1919_v28 = vadd.f32 %v1918_v25, %v3905_v3 }
 0x33a   : > { %2129 = vst [vmem:[%s3913_s12 + $0x20] sm:$0xff] %v2065_v24  ;;  %v2067_v29 = vmax.f32 %v1917_v23, 0.0 }
 0x33b   : > { %2130 = vst [vmem:[%s3913_s12 + $0x28] sm:$0xff] %v2066_v27  ;;  %v2068_v26 = vmax.f32 %v1919_v28, 0.0 }
 0x33c   : > { %2131 = vst [vmem:[%s3913_s12 + $0x30] sm:$0xff] %v2067_v29  ;;  %v2191_v30 = vpack.c.bf16 %v2067_v29, %v2065_v24 }
 0x33d   : > { %2132 = vst [vmem:[%s3913_s12 + $0x38] sm:$0xff] %v2068_v26  ;;  %v2192_v31 = vpack.c.bf16 %v2068_v26, %v2066_v27  ;;  %v1922_v32 = vpop.f32.mrb[40].mxu0 }
 0x33e   : > { %v1923_v33 = vadd.f32 %v1922_v32, %v3903_v2  ;;  %v1924_v34 = vpop.f32.mrb[41].mxu0 }
 0x33f   : > { %v1925_v35 = vadd.f32 %v1924_v34, %v3905_v3  ;;  %v1926_v36 = vpop.f32.mrb[42].mxu0  ;;  %2396 = vmatprep.mubr.bf16.mxu0 %v2192_v31 }
 0x340   : > { %v2069_v37 = vmax.f32 %v1923_v33, 0.0  ;;  %v1927_v38 = vadd.f32 %v1926_v36, %v3903_v2  ;;  %v1928_v39 = vpop.f32.mrb[43].mxu0  ;;  %2397 = vmatmul.mubr.bf16.gmra.mrb[88].mxu0 %v2191_v30 }
 0x341   : > { %v2070_v40 = vmax.f32 %v1925_v35, 0.0  ;;  %v1929_v41 = vadd.f32 %v1928_v39, %v3905_v3 }
 0x342   : > { %2133 = vst [vmem:[%s3913_s12 + $0x40] sm:$0xff] %v2069_v37  ;;  %v2071_v42 = vmax.f32 %v1927_v38, 0.0 }
 0x343   : > { %2134 = vst [vmem:[%s3913_s12 + $0x48] sm:$0xff] %v2070_v40  ;;  %v2072_v43 = vmax.f32 %v1929_v41, 0.0 }
 0x344   : > { %2135 = vst [vmem:[%s3913_s12 + $0x50] sm:$0xff] %v2071_v42  ;;  %v2193_v44 = vpack.c.bf16 %v2071_v42, %v2069_v37 }
 0x345   : > { %2136 = vst [vmem:[%s3913_s12 + $0x58] sm:$0xff] %v2072_v43  ;;  %v2194_v45 = vpack.c.bf16 %v2072_v43, %v2070_v40  ;;  %v1932_v46 = vpop.f32.mrb[44].mxu0 }
 0x346   : > { %v1933_v47 = vadd.f32 %v1932_v46, %v3903_v2  ;;  %v1934_v48 = vpop.f32.mrb[45].mxu0 }
 0x347   : > { %v1935_v49 = vadd.f32 %v1934_v48, %v3905_v3  ;;  %v1936_v50 = vpop.f32.mrb[46].mxu0  ;;  %2404 = vmatprep.mubr.bf16.mxu0 %v2194_v45 }
 0x348   : > { %v2073_v51 = vmax.f32 %v1933_v47, 0.0  ;;  %v1937_v52 = vadd.f32 %v1936_v50, %v3903_v2  ;;  %v1938_v53 = vpop.f32.mrb[47].mxu0  ;;  %2405 = vmatmul.mubr.bf16.gmra.mrb[92].mxu0 %v2193_v44 }
 0x349   : > { %v2074_v54 = vmax.f32 %v1935_v49, 0.0  ;;  %v1939_v55 = vadd.f32 %v1938_v53, %v3905_v3 }
 0x34a   : > { %2137 = vst [vmem:[%s3913_s12 + $0x60] sm:$0xff] %v2073_v51  ;;  %v2075_v56 = vmax.f32 %v1937_v52, 0.0 }
 0x34b   : > { %2138 = vst [vmem:[%s3913_s12 + $0x68] sm:$0xff] %v2074_v54  ;;  %v2076_v57 = vmax.f32 %v1939_v55, 0.0 }
 0x34c   : > { %2139 = vst [vmem:[%s3913_s12 + $0x70] sm:$0xff] %v2075_v56  ;;  %v2195_v58 = vpack.c.bf16 %v2075_v56, %v2073_v51 }
 0x34d   : > { %2140 = vst [vmem:[%s3913_s12 + $0x78] sm:$0xff] %v2076_v57  ;;  %v2196_v59 = vpack.c.bf16 %v2076_v57, %v2074_v54  ;;  %v1942_v60 = vpop.f32.mrb[48].mxu0 }
 0x34e   : > { %v1943_v61 = vadd.f32 %v1942_v60, %v3903_v2  ;;  %v1944_v62 = vpop.f32.mrb[49].mxu0 }
 0x34f   : > { %v1945_v63 = vadd.f32 %v1944_v62, %v3905_v3  ;;  %v1946_v0 = vpop.f32.mrb[50].mxu0  ;;  %2412 = vmatprep.mubr.bf16.mxu0 %v2196_v59 }
 0x350   : > { %v2077_v1 = vmax.f32 %v1943_v61, 0.0  ;;  %v1947_v4 = vadd.f32 %v1946_v0, %v3903_v2  ;;  %v1948_v5 = vpop.f32.mrb[51].mxu0  ;;  %2413 = vmatmul.mubr.bf16.gmra.mrb[96].mxu0 %v2195_v58 }
 0x351   : > { %v2078_v6 = vmax.f32 %v1945_v63, 0.0  ;;  %v1949_v7 = vadd.f32 %v1948_v5, %v3905_v3 }
 0x352   : > { %2141 = vst [vmem:[%s3913_s12 + $0x80] sm:$0xff] %v2077_v1  ;;  %v2079_v8 = vmax.f32 %v1947_v4, 0.0 }
 0x353   : > { %2142 = vst [vmem:[%s3913_s12 + $0x88] sm:$0xff] %v2078_v6  ;;  %v2080_v9 = vmax.f32 %v1949_v7, 0.0 }
 0x354   : > { %2143 = vst [vmem:[%s3913_s12 + $0x90] sm:$0xff] %v2079_v8  ;;  %v2197_v10 = vpack.c.bf16 %v2079_v8, %v2077_v1 }
 0x355   : > { %2144 = vst [vmem:[%s3913_s12 + $0x98] sm:$0xff] %v2080_v9  ;;  %v2198_v12 = vpack.c.bf16 %v2080_v9, %v2078_v6  ;;  %v1952_v13 = vpop.f32.mrb[52].mxu0 }
 0x356   : > { %v1953_v14 = vadd.f32 %v1952_v13, %v3903_v2  ;;  %v1954_v15 = vpop.f32.mrb[53].mxu0 }
 0x357   : > { %v1955_v16 = vadd.f32 %v1954_v15, %v3905_v3  ;;  %v1956_v11 = vpop.f32.mrb[54].mxu0  ;;  %2420 = vmatprep.mubr.bf16.mxu0 %v2198_v12 }
 0x358   : > { %v2081_v17 = vmax.f32 %v1953_v14, 0.0  ;;  %v1957_v18 = vadd.f32 %v1956_v11, %v3903_v2  ;;  %v1958_v19 = vpop.f32.mrb[55].mxu0  ;;  %2421 = vmatmul.mubr.bf16.gmra.mrb[100].mxu0 %v2197_v10 }
 0x359   : > { %v2082_v20 = vmax.f32 %v1955_v16, 0.0  ;;  %v1959_v21 = vadd.f32 %v1958_v19, %v3905_v3 }
 0x35a   : > { %2145 = vst [vmem:[%s3913_s12 + $0xa0] sm:$0xff] %v2081_v17  ;;  %v2083_v22 = vmax.f32 %v1957_v18, 0.0 }
 0x35b   : > { %2146 = vst [vmem:[%s3913_s12 + $0xa8] sm:$0xff] %v2082_v20  ;;  %v2084_v24 = vmax.f32 %v1959_v21, 0.0 }
 0x35c   : > { %2147 = vst [vmem:[%s3913_s12 + $0xb0] sm:$0xff] %v2083_v22  ;;  %v2199_v23 = vpack.c.bf16 %v2083_v22, %v2081_v17 }
 0x35d   : > { %2148 = vst [vmem:[%s3913_s12 + $0xb8] sm:$0xff] %v2084_v24  ;;  %v2200_v25 = vpack.c.bf16 %v2084_v24, %v2082_v20  ;;  %v1962_v27 = vpop.f32.mrb[56].mxu0 }
 0x35e   : > { %v1963_v28 = vadd.f32 %v1962_v27, %v3903_v2  ;;  %v1964_v29 = vpop.f32.mrb[57].mxu0 }
 0x35f   : > { %v1965_v26 = vadd.f32 %v1964_v29, %v3905_v3  ;;  %v1966_v30 = vpop.f32.mrb[58].mxu0  ;;  %2428 = vmatprep.mubr.bf16.mxu0 %v2200_v25 }
 0x360   : > { %v2085_v31 = vmax.f32 %v1963_v28, 0.0  ;;  %v1967_v32 = vadd.f32 %v1966_v30, %v3903_v2  ;;  %v1968_v33 = vpop.f32.mrb[59].mxu0  ;;  %2429 = vmatmul.mubr.bf16.gmra.mrb[104].mxu0 %v2199_v23 }
 0x361   : > { %v2086_v34 = vmax.f32 %v1965_v26, 0.0  ;;  %v1969_v35 = vadd.f32 %v1968_v33, %v3905_v3 }
 0x362   : > { %2149 = vst [vmem:[%s3913_s12 + $0xc0] sm:$0xff] %v2085_v31  ;;  %v2087_v36 = vmax.f32 %v1967_v32, 0.0 }
 0x363   : > { %2150 = vst [vmem:[%s3913_s12 + $0xc8] sm:$0xff] %v2086_v34  ;;  %v2088_v37 = vmax.f32 %v1969_v35, 0.0 }
 0x364   : > { %2151 = vst [vmem:[%s3913_s12 + $0xd0] sm:$0xff] %v2087_v36  ;;  %v2201_v38 = vpack.c.bf16 %v2087_v36, %v2085_v31 }
 0x365   : > { %2152 = vst [vmem:[%s3913_s12 + $0xd8] sm:$0xff] %v2088_v37  ;;  %v2202_v39 = vpack.c.bf16 %v2088_v37, %v2086_v34  ;;  %v1972_v40 = vpop.f32.mrb[60].mxu0 }
 0x366   : > { %v1973_v41 = vadd.f32 %v1972_v40, %v3903_v2  ;;  %v1974_v42 = vpop.f32.mrb[61].mxu0 }
 0x367   : > { %v1975_v43 = vadd.f32 %v1974_v42, %v3905_v3  ;;  %v1976_v44 = vpop.f32.mrb[62].mxu0  ;;  %2436 = vmatprep.mubr.bf16.mxu0 %v2202_v39 }
 0x368   : > { %v2089_v45 = vmax.f32 %v1973_v41, 0.0  ;;  %v1977_v46 = vadd.f32 %v1976_v44, %v3903_v2  ;;  %v1978_v47 = vpop.f32.mrb[63].mxu0  ;;  %2437 = vmatmul.mubr.bf16.gmra.mrb[108].mxu0 %v2201_v38 }
 0x369   : > { %v2090_v48 = vmax.f32 %v1975_v43, 0.0  ;;  %v1979_v49 = vadd.f32 %v1978_v47, %v3905_v3 }
 0x36a   : > { %2153 = vst [vmem:[%s3913_s12 + $0xe0] sm:$0xff] %v2089_v45  ;;  %v2091_v50 = vmax.f32 %v1977_v46, 0.0 }
 0x36b   : > { %2154 = vst [vmem:[%s3913_s12 + $0xe8] sm:$0xff] %v2090_v48  ;;  %v2092_v51 = vmax.f32 %v1979_v49, 0.0 }
 0x36c   : > { %2155 = vst [vmem:[%s3913_s12 + $0xf0] sm:$0xff] %v2091_v50  ;;  %v2203_v52 = vpack.c.bf16 %v2091_v50, %v2089_v45 }
 0x36d   : > { %2156 = vst [vmem:[%s3913_s12 + $0xf8] sm:$0xff] %v2092_v51  ;;  %v2204_v53 = vpack.c.bf16 %v2092_v51, %v2090_v48  ;;  %v1982_v54 = vpop.f32.mrb[64].mxu0 }
 0x36e   : > { %v1983_v55 = vadd.f32 %v1982_v54, %v3903_v2  ;;  %v1984_v56 = vpop.f32.mrb[65].mxu0 }
 0x36f   : > { %v1985_v57 = vadd.f32 %v1984_v56, %v3905_v3  ;;  %v1986_v58 = vpop.f32.mrb[66].mxu0  ;;  %2444 = vmatprep.mubr.bf16.mxu0 %v2204_v53 }
 0x370   : > { %v2093_v59 = vmax.f32 %v1983_v55, 0.0  ;;  %v1987_v60 = vadd.f32 %v1986_v58, %v3903_v2  ;;  %v1988_v61 = vpop.f32.mrb[67].mxu0  ;;  %2445 = vmatmul.mubr.bf16.gmra.mrb[112].mxu0 %v2203_v52 }
 0x371   : > { %v2094_v62 = vmax.f32 %v1985_v57, 0.0  ;;  %v1989_v63 = vadd.f32 %v1988_v61, %v3905_v3 }
 0x372   : > { %2157 = vst [vmem:[%s3913_s12 + $0x100] sm:$0xff] %v2093_v59  ;;  %v2095_v0 = vmax.f32 %v1987_v60, 0.0 }
 0x373   : > { %2158 = vst [vmem:[%s3913_s12 + $0x108] sm:$0xff] %v2094_v62  ;;  %v2096_v1 = vmax.f32 %v1989_v63, 0.0 }
 0x374   : > { %2159 = vst [vmem:[%s3913_s12 + $0x110] sm:$0xff] %v2095_v0  ;;  %v2205_v4 = vpack.c.bf16 %v2095_v0, %v2093_v59 }
 0x375   : > { %2160 = vst [vmem:[%s3913_s12 + $0x118] sm:$0xff] %v2096_v1  ;;  %v2206_v5 = vpack.c.bf16 %v2096_v1, %v2094_v62  ;;  %v1992_v6 = vpop.f32.mrb[68].mxu0 }
 0x376   : > { %v1993_v7 = vadd.f32 %v1992_v6, %v3903_v2  ;;  %v1994_v8 = vpop.f32.mrb[69].mxu0 }
 0x377   : > { %v1995_v9 = vadd.f32 %v1994_v8, %v3905_v3  ;;  %v1996_v10 = vpop.f32.mrb[70].mxu0  ;;  %2452 = vmatprep.mubr.bf16.mxu0 %v2206_v5 }
 0x378   : > { %v2097_v12 = vmax.f32 %v1993_v7, 0.0  ;;  %v1997_v13 = vadd.f32 %v1996_v10, %v3903_v2  ;;  %v1998_v14 = vpop.f32.mrb[71].mxu0  ;;  %2453 = vmatmul.mubr.bf16.gmra.mrb[116].mxu0 %v2205_v4 }
 0x379   : > { %v2098_v15 = vmax.f32 %v1995_v9, 0.0  ;;  %v1999_v16 = vadd.f32 %v1998_v14, %v3905_v3 }
 0x37a   : > { %2161 = vst [vmem:[%s3913_s12 + $0x120] sm:$0xff] %v2097_v12  ;;  %v2099_v11 = vmax.f32 %v1997_v13, 0.0 }
 0x37b   : > { %2162 = vst [vmem:[%s3913_s12 + $0x128] sm:$0xff] %v2098_v15  ;;  %v2100_v17 = vmax.f32 %v1999_v16, 0.0 }
 0x37c   : > { %2163 = vst [vmem:[%s3913_s12 + $0x130] sm:$0xff] %v2099_v11  ;;  %v2207_v18 = vpack.c.bf16 %v2099_v11, %v2097_v12 }
 0x37d   : > { %2164 = vst [vmem:[%s3913_s12 + $0x138] sm:$0xff] %v2100_v17  ;;  %v2208_v19 = vpack.c.bf16 %v2100_v17, %v2098_v15  ;;  %v2002_v20 = vpop.f32.mrb[72].mxu0 }
 0x37e   : > { %v2003_v21 = vadd.f32 %v2002_v20, %v3903_v2  ;;  %v2004_v22 = vpop.f32.mrb[73].mxu0 }
 0x37f   : > { %v2005_v24 = vadd.f32 %v2004_v22, %v3905_v3  ;;  %v2006_v23 = vpop.f32.mrb[74].mxu0  ;;  %2460 = vmatprep.mubr.bf16.mxu0 %v2208_v19 }
 0x380   : > { %v2101_v25 = vmax.f32 %v2003_v21, 0.0  ;;  %v2007_v27 = vadd.f32 %v2006_v23, %v3903_v2  ;;  %v2008_v28 = vpop.f32.mrb[75].mxu0  ;;  %2461 = vmatmul.mubr.bf16.gmra.mrb[120].mxu0 %v2207_v18 }
 0x381   : > { %v2102_v29 = vmax.f32 %v2005_v24, 0.0  ;;  %v2009_v26 = vadd.f32 %v2008_v28, %v3905_v3 }
 0x382   : > { %2165 = vst [vmem:[%s3913_s12 + $0x140] sm:$0xff] %v2101_v25  ;;  %v2103_v30 = vmax.f32 %v2007_v27, 0.0 }
 0x383   : > { %2166 = vst [vmem:[%s3913_s12 + $0x148] sm:$0xff] %v2102_v29  ;;  %v2104_v31 = vmax.f32 %v2009_v26, 0.0 }
 0x384   : > { %2167 = vst [vmem:[%s3913_s12 + $0x150] sm:$0xff] %v2103_v30  ;;  %v2209_v32 = vpack.c.bf16 %v2103_v30, %v2101_v25 }
 0x385   : > { %2168 = vst [vmem:[%s3913_s12 + $0x158] sm:$0xff] %v2104_v31  ;;  %v2210_v33 = vpack.c.bf16 %v2104_v31, %v2102_v29  ;;  %v2012_v34 = vpop.f32.mrb[76].mxu0 }
 0x386   : > { %v2013_v35 = vadd.f32 %v2012_v34, %v3903_v2  ;;  %v2014_v36 = vpop.f32.mrb[77].mxu0 }
 0x387   : > { %v2015_v37 = vadd.f32 %v2014_v36, %v3905_v3  ;;  %v2016_v38 = vpop.f32.mrb[78].mxu0  ;;  %2468 = vmatprep.mubr.bf16.mxu0 %v2210_v33 }
 0x388   : > { %v2105_v39 = vmax.f32 %v2013_v35, 0.0  ;;  %v2017_v40 = vadd.f32 %v2016_v38, %v3903_v2  ;;  %v2018_v41 = vpop.f32.mrb[79].mxu0  ;;  %2469 = vmatmul.mubr.bf16.gmra.mrb[124].mxu0 %v2209_v32 }
 0x389   : > { %v2106_v42 = vmax.f32 %v2015_v37, 0.0  ;;  %v2019_v43 = vadd.f32 %v2018_v41, %v3905_v3 }
 0x38a   : > { %2169 = vst [vmem:[%s3913_s12 + $0x160] sm:$0xff] %v2105_v39  ;;  %v2107_v44 = vmax.f32 %v2017_v40, 0.0 }
 0x38b   : > { %2170 = vst [vmem:[%s3913_s12 + $0x168] sm:$0xff] %v2106_v42  ;;  %v2108_v45 = vmax.f32 %v2019_v43, 0.0 }
 0x38c   : > { %2171 = vst [vmem:[%s3913_s12 + $0x170] sm:$0xff] %v2107_v44  ;;  %v2211_v46 = vpack.c.bf16 %v2107_v44, %v2105_v39 }
 0x38d   : > { %2172 = vst [vmem:[%s3913_s12 + $0x178] sm:$0xff] %v2108_v45  ;;  %v2212_v47 = vpack.c.bf16 %v2108_v45, %v2106_v42  ;;  %v2022_v48 = vpop.f32.mrb[80].mxu0 }
 0x38e   : > { %v2023_v49 = vadd.f32 %v2022_v48, %v3903_v2  ;;  %v2024_v50 = vpop.f32.mrb[81].mxu0 }
 0x38f   : > { %v2025_v51 = vadd.f32 %v2024_v50, %v3905_v3  ;;  %v2026_v52 = vpop.f32.mrb[82].mxu0  ;;  %2476 = vmatprep.mubr.bf16.mxu0 %v2212_v47 }
 0x390   : > { %v2109_v53 = vmax.f32 %v2023_v49, 0.0  ;;  %v2027_v54 = vadd.f32 %v2026_v52, %v3903_v2  ;;  %v2028_v55 = vpop.f32.mrb[83].mxu0  ;;  %2477 = vmatmul.mubr.bf16.gmra.mrb[128].mxu0 %v2211_v46 }
 0x391   : > { %v2110_v56 = vmax.f32 %v2025_v51, 0.0  ;;  %v2029_v57 = vadd.f32 %v2028_v55, %v3905_v3 }
 0x392   : > { %2173 = vst [vmem:[%s3913_s12 + $0x180] sm:$0xff] %v2109_v53  ;;  %v2111_v58 = vmax.f32 %v2027_v54, 0.0 }
 0x393   : > { %2174 = vst [vmem:[%s3913_s12 + $0x188] sm:$0xff] %v2110_v56  ;;  %v2112_v59 = vmax.f32 %v2029_v57, 0.0 }
 0x394   : > { %2175 = vst [vmem:[%s3913_s12 + $0x190] sm:$0xff] %v2111_v58  ;;  %v2213_v60 = vpack.c.bf16 %v2111_v58, %v2109_v53 }
 0x395   : > { %2176 = vst [vmem:[%s3913_s12 + $0x198] sm:$0xff] %v2112_v59  ;;  %v2214_v61 = vpack.c.bf16 %v2112_v59, %v2110_v56  ;;  %v2032_v62 = vpop.f32.mrb[64].mxu1 }
 0x396   : > { %v2033_v63 = vadd.f32 %v2032_v62, %v3903_v2  ;;  %v2034_v0 = vpop.f32.mrb[65].mxu1 }
 0x397   : > { %v2035_v1 = vadd.f32 %v2034_v0, %v3905_v3  ;;  %v2036_v4 = vpop.f32.mrb[66].mxu1  ;;  %2484 = vmatprep.mubr.bf16.mxu0 %v2214_v61 }
 0x398   : > { %v2113_v5 = vmax.f32 %v2033_v63, 0.0  ;;  %v2037_v6 = vadd.f32 %v2036_v4, %v3903_v2  ;;  %v2038_v7 = vpop.f32.mrb[67].mxu1  ;;  %2485 = vmatmul.mubr.bf16.gmra.mrb[132].mxu0 %v2213_v60 }
 0x399   : > { %v2114_v8 = vmax.f32 %v2035_v1, 0.0  ;;  %v2039_v9 = vadd.f32 %v2038_v7, %v3905_v3 }
 0x39a   : > { %2177 = vst [vmem:[%s3913_s12 + $0x1a0] sm:$0xff] %v2113_v5  ;;  %v2115_v10 = vmax.f32 %v2037_v6, 0.0 }
 0x39b   : > { %2178 = vst [vmem:[%s3913_s12 + $0x1a8] sm:$0xff] %v2114_v8  ;;  %v2116_v12 = vmax.f32 %v2039_v9, 0.0 }
 0x39c   : > { %2179 = vst [vmem:[%s3913_s12 + $0x1b0] sm:$0xff] %v2115_v10  ;;  %v2215_v13 = vpack.c.bf16 %v2115_v10, %v2113_v5 }
 0x39d   : > { %2180 = vst [vmem:[%s3913_s12 + $0x1b8] sm:$0xff] %v2116_v12  ;;  %v2216_v14 = vpack.c.bf16 %v2116_v12, %v2114_v8  ;;  %v2042_v15 = vpop.f32.mrb[68].mxu1 }
 0x39e   : > { %v2043_v16 = vadd.f32 %v2042_v15, %v3903_v2  ;;  %v2044_v11 = vpop.f32.mrb[69].mxu1 }
 0x39f   : > { %v2045_v17 = vadd.f32 %v2044_v11, %v3905_v3  ;;  %v2046_v18 = vpop.f32.mrb[70].mxu1  ;;  %2492 = vmatprep.mubr.bf16.mxu0 %v2216_v14 }
 0x3a0   : > { %v2117_v19 = vmax.f32 %v2043_v16, 0.0  ;;  %v2047_v20 = vadd.f32 %v2046_v18, %v3903_v2  ;;  %v2048_v21 = vpop.f32.mrb[71].mxu1  ;;  %2493 = vmatmul.mubr.bf16.gmra.mrb[136].mxu0 %v2215_v13 }
 0x3a1   : > { %v2118_v22 = vmax.f32 %v2045_v17, 0.0  ;;  %v2049_v24 = vadd.f32 %v2048_v21, %v3905_v3 }
 0x3a2   : > { %2181 = vst [vmem:[%s3913_s12 + $0x1c0] sm:$0xff] %v2117_v19  ;;  %v2119_v23 = vmax.f32 %v2047_v20, 0.0 }
 0x3a3   : > { %2182 = vst [vmem:[%s3913_s12 + $0x1c8] sm:$0xff] %v2118_v22  ;;  %v2120_v25 = vmax.f32 %v2049_v24, 0.0 }
 0x3a4   : > { %2183 = vst [vmem:[%s3913_s12 + $0x1d0] sm:$0xff] %v2119_v23  ;;  %v2217_v27 = vpack.c.bf16 %v2119_v23, %v2117_v19 }
 0x3a5   : > { %2184 = vst [vmem:[%s3913_s12 + $0x1d8] sm:$0xff] %v2120_v25  ;;  %v2218_v28 = vpack.c.bf16 %v2120_v25, %v2118_v22  ;;  %v2052_v29 = vpop.f32.mrb[72].mxu1 }
 0x3a6   : > { %v2053_v26 = vadd.f32 %v2052_v29, %v3903_v2  ;;  %v2054_v30 = vpop.f32.mrb[73].mxu1 }
 0x3a7   : > { %v2055_v31 = vadd.f32 %v2054_v30, %v3905_v3  ;;  %v2056_v32 = vpop.f32.mrb[74].mxu1  ;;  %2500 = vmatprep.mubr.bf16.mxu0 %v2218_v28 }
 0x3a8   : > { %v2121_v33 = vmax.f32 %v2053_v26, 0.0  ;;  %v2057_v34 = vadd.f32 %v2056_v32, %v3903_v2  ;;  %v2058_v35 = vpop.f32.mrb[75].mxu1  ;;  %2501 = vmatmul.mubr.bf16.gmra.mrb[140].mxu0 %v2217_v27 }
 0x3a9   : > { %v2122_v36 = vmax.f32 %v2055_v31, 0.0  ;;  %v2059_v37 = vadd.f32 %v2058_v35, %v3905_v3  ;;  %v4052_v3 = vld [vmem:[%s4182_s9] ss:$0 sm:$0xff] }
 0x3aa   : > { %2185 = vst [vmem:[%s3913_s12 + $0x1e0] sm:$0xff] %v2121_v33  ;;  %v2123_v38 = vmax.f32 %v2057_v34, 0.0 }
 0x3ab   : > { %2186 = vst [vmem:[%s3913_s12 + $0x1e8] sm:$0xff] %v2122_v36  ;;  %v2124_v39 = vmax.f32 %v2059_v37, 0.0 }
 0x3ac   : > { %2187 = vst [vmem:[%s3913_s12 + $0x1f0] sm:$0xff] %v2123_v38  ;;  %v2219_v40 = vpack.c.bf16 %v2123_v38, %v2121_v33 }
 0x3ad   : > { %2188 = vst [vmem:[%s3913_s12 + $0x1f8] sm:$0xff] %v2124_v39  ;;  %v2220_v41 = vpack.c.bf16 %v2124_v39, %v2122_v36  ;;  %s3326_s12 = scalar_lea.vmem %s4047_s15, 8192 }
 0x3ae   : > { %p3327_p12 = scmp.ne.s32.totalorder %s4047_s15, %s3326_s12  ;;  %p3334_p2 = scmp.lt.s32.totalorder %s3332_s24, %s3326_s12 }
 0x3af   : > { %2508 = vmatprep.mubr.bf16.mxu0 %v2220_v41 }
 0x3b0   : > { %2509 = vmatmul.mubr.bf16.gmra.mrb[144].mxu0 %v2219_v40  ;;  %p3328_p13 = pnand %p3327_p12, %p3510_p4  ;;  %p3335_p3 = por %p3334_p2, %p3333_p1 }
 0x3b2   : > { %p3329_p0 = pneg %p3328_p13 }
 0x3b4   : > { %p3336_p5 = pnand %p3335_p3, %p3329_p0 }
 0x40b   : > { %v2909_v2 = vpop.f32.mrb[84].mxu0 }
 0x40c   : > { %v2910_v42 = vpop.f32.mrb[85].mxu0 }
 0x40d   : > { %v2911_v43 = vadd.f32 %v2910_v42, %v2909_v2  ;;  %v2912_v44 = vpop.f32.mrb[86].mxu0 }
 0x40e   : > { %3339 = shalt.err (!%p3336_p5)
}
 0x40f   : > { %s3340_s2 = scalar_lea.hbm %s4045_s26, 8192  ;;  %s3344_s14 = scalar_lea.hbm %s4184_s11, 16384 }
 0x410   : > { %p3341_p6 = scmp.ne.s32.totalorder %s4045_s26, %s3340_s2  ;;  %p3345_p10 = scmp.lt.u32.totalorder %s4045_s26, %s4184_s11 }
 0x411   : > { %p3346_p11 = scmp.lt.u32.totalorder %s3344_s14, %s3340_s2  ;;  %p3348_p13 = scmp.lt.u32.totalorder %s3340_s2, %s4045_s26 }
 0x412   : > { %p3342_p7 = pnand %p3341_p6, %p3510_p4 }
 0x413   : > { %p3347_p12 = por %p3346_p11, %p3345_p10 }
 0x414   : > { %p3343_p9 = pneg %p3342_p7 }
 0x415   : > { %p3349_p0 = por %p3348_p13, %p3347_p12 }
 0x417   : > { %p3350_p1 = pnand %p3349_p0, %p3343_p9 }
 0x419   : > { %3353 = shalt.err (!%p3350_p1)
}
 0x41a   : > { %s3408_s12 = smov 256   ;;  %s3409_s24 = smov 16   ;;  %v2913_v45 = vpop.f32.mrb[87].mxu0  ;;  %v2391_v46 = vadd.f32 %v2911_v43, %v4052_v3 }
 0x41b   : > { %3137 = dma.vmem_to_hbm [thread:$0]  (%p3510_p4), %s4047_s15, 8192, %s4045_s26, %s4056_s20, %s3408_s12, %s3408_s12, %s3409_s24   ;;  %v2914_v47 = vadd.f32 %v2913_v45, %v2912_v44  ;;  %v2915_v49 = vpop.f32.mrb[88].mxu0 }
 0x41c   : > { %s4195_s28 = sshll.u32 %s3533_s16, 8  ;;  %v2916_v50 = vpop.f32.mrb[89].mxu0 }
 0x41d   : > { %s4085_s13 = scalar_lea.vmem %s4183_s10, %s4195_s28  ;;  %v2394_v48 = vadd.f32 %v2914_v47, %v4052_v3  ;;  %v2917_v51 = vadd.f32 %v2916_v50, %v2915_v49  ;;  %v2918_v52 = vpop.f32.mrb[90].mxu0 }
 0x41e   : > { %2517 = vst [vmem:[%s4085_s13] sm:$0xff] %v2391_v46  ;;  %v2919_v53 = vpop.f32.mrb[91].mxu0 }
 0x41f   : > { %2518 = vst [vmem:[%s4085_s13 + $0x8] sm:$0xff] %v2394_v48  ;;  %v2399_v54 = vadd.f32 %v2917_v51, %v4052_v3  ;;  %v2920_v55 = vadd.f32 %v2919_v53, %v2918_v52  ;;  %v2921_v57 = vpop.f32.mrb[92].mxu0 }
 0x420   : > { %v2922_v58 = vpop.f32.mrb[93].mxu0 }
 0x421   : > { %2519 = vst [vmem:[%s4085_s13 + $0x10] sm:$0xff] %v2399_v54  ;;  %v2402_v56 = vadd.f32 %v2920_v55, %v4052_v3  ;;  %v2923_v59 = vadd.f32 %v2922_v58, %v2921_v57  ;;  %v2924_v60 = vpop.f32.mrb[94].mxu0 }
 0x422   : > { %v2925_v61 = vpop.f32.mrb[95].mxu0 }
 0x423   : > { %2520 = vst [vmem:[%s4085_s13 + $0x18] sm:$0xff] %v2402_v56  ;;  %v2407_v62 = vadd.f32 %v2923_v59, %v4052_v3  ;;  %v2926_v63 = vadd.f32 %v2925_v61, %v2924_v60  ;;  %v2927_v1 = vpop.f32.mrb[96].mxu0 }
 0x424   : > { %v2928_v4 = vpop.f32.mrb[97].mxu0 }
 0x425   : > { %2521 = vst [vmem:[%s4085_s13 + $0x20] sm:$0xff] %v2407_v62  ;;  %v2410_v0 = vadd.f32 %v2926_v63, %v4052_v3  ;;  %v2929_v5 = vadd.f32 %v2928_v4, %v2927_v1  ;;  %v2930_v6 = vpop.f32.mrb[98].mxu0 }
 0x426   : > { %v2931_v7 = vpop.f32.mrb[99].mxu0 }
 0x427   : > { %2522 = vst [vmem:[%s4085_s13 + $0x28] sm:$0xff] %v2410_v0  ;;  %v2415_v8 = vadd.f32 %v2929_v5, %v4052_v3  ;;  %v2932_v9 = vadd.f32 %v2931_v7, %v2930_v6 }
 0x429   : > { %2523 = vst [vmem:[%s4085_s13 + $0x30] sm:$0xff] %v2415_v8  ;;  %v2418_v10 = vadd.f32 %v2932_v9, %v4052_v3 }
 0x42b   : > { %2524 = vst [vmem:[%s4085_s13 + $0x38] sm:$0xff] %v2418_v10  ;;  %v2933_v12 = vpop.f32.mrb[100].mxu0 }
 0x42c   : > { %v2934_v13 = vpop.f32.mrb[101].mxu0 }
 0x42d   : > { %v2935_v14 = vadd.f32 %v2934_v13, %v2933_v12  ;;  %v2936_v15 = vpop.f32.mrb[102].mxu0 }
 0x42e   : > { %v2937_v16 = vpop.f32.mrb[103].mxu0 }
 0x42f   : > { %v2423_v11 = vadd.f32 %v2935_v14, %v4052_v3  ;;  %v2938_v17 = vadd.f32 %v2937_v16, %v2936_v15 }
 0x431   : > { %2525 = vst [vmem:[%s4085_s13 + $0x40] sm:$0xff] %v2423_v11  ;;  %v2426_v18 = vadd.f32 %v2938_v17, %v4052_v3 }
 0x433   : > { %2526 = vst [vmem:[%s4085_s13 + $0x48] sm:$0xff] %v2426_v18  ;;  %v2939_v19 = vpop.f32.mrb[104].mxu0 }
 0x434   : > { %v2940_v20 = vpop.f32.mrb[105].mxu0 }
 0x435   : > { %v2941_v21 = vadd.f32 %v2940_v20, %v2939_v19  ;;  %v2942_v22 = vpop.f32.mrb[106].mxu0 }
 0x436   : > { %v2943_v24 = vpop.f32.mrb[107].mxu0 }
 0x437   : > { %v2431_v23 = vadd.f32 %v2941_v21, %v4052_v3  ;;  %v2944_v25 = vadd.f32 %v2943_v24, %v2942_v22 }
 0x439   : > { %2527 = vst [vmem:[%s4085_s13 + $0x50] sm:$0xff] %v2431_v23  ;;  %v2434_v27 = vadd.f32 %v2944_v25, %v4052_v3 }
 0x43b   : > { %2528 = vst [vmem:[%s4085_s13 + $0x58] sm:$0xff] %v2434_v27  ;;  %v2945_v28 = vpop.f32.mrb[108].mxu0 }
 0x43c   : > { %v2946_v29 = vpop.f32.mrb[109].mxu0 }
 0x43d   : > { %v2947_v26 = vadd.f32 %v2946_v29, %v2945_v28  ;;  %v2948_v30 = vpop.f32.mrb[110].mxu0 }
 0x43e   : > { %v2949_v31 = vpop.f32.mrb[111].mxu0 }
 0x43f   : > { %v2439_v32 = vadd.f32 %v2947_v26, %v4052_v3  ;;  %v2950_v33 = vadd.f32 %v2949_v31, %v2948_v30 }
 0x441   : > { %2529 = vst [vmem:[%s4085_s13 + $0x60] sm:$0xff] %v2439_v32  ;;  %v2442_v34 = vadd.f32 %v2950_v33, %v4052_v3 }
 0x443   : > { %2530 = vst [vmem:[%s4085_s13 + $0x68] sm:$0xff] %v2442_v34  ;;  %v2951_v35 = vpop.f32.mrb[112].mxu0 }
 0x444   : > { %v2952_v36 = vpop.f32.mrb[113].mxu0 }
 0x445   : > { %v2953_v37 = vadd.f32 %v2952_v36, %v2951_v35  ;;  %v2954_v38 = vpop.f32.mrb[114].mxu0 }
 0x446   : > { %v2955_v39 = vpop.f32.mrb[115].mxu0 }
 0x447   : > { %v2447_v40 = vadd.f32 %v2953_v37, %v4052_v3  ;;  %v2956_v41 = vadd.f32 %v2955_v39, %v2954_v38 }
 0x449   : > { %2531 = vst [vmem:[%s4085_s13 + $0x70] sm:$0xff] %v2447_v40  ;;  %v2450_v2 = vadd.f32 %v2956_v41, %v4052_v3 }
 0x44b   : > { %2532 = vst [vmem:[%s4085_s13 + $0x78] sm:$0xff] %v2450_v2  ;;  %v2957_v42 = vpop.f32.mrb[116].mxu0 }
 0x44c   : > { %v2958_v43 = vpop.f32.mrb[117].mxu0 }
 0x44d   : > { %v2959_v44 = vadd.f32 %v2958_v43, %v2957_v42  ;;  %v2960_v45 = vpop.f32.mrb[118].mxu0 }
 0x44e   : > { %v2961_v46 = vpop.f32.mrb[119].mxu0 }
 0x44f   : > { %v2455_v47 = vadd.f32 %v2959_v44, %v4052_v3  ;;  %v2962_v48 = vadd.f32 %v2961_v46, %v2960_v45 }
 0x451   : > { %2533 = vst [vmem:[%s4085_s13 + $0x80] sm:$0xff] %v2455_v47  ;;  %v2458_v49 = vadd.f32 %v2962_v48, %v4052_v3 }
 0x453   : > { %2534 = vst [vmem:[%s4085_s13 + $0x88] sm:$0xff] %v2458_v49  ;;  %v2963_v50 = vpop.f32.mrb[120].mxu0 }
 0x454   : > { %v2964_v51 = vpop.f32.mrb[121].mxu0 }
 0x455   : > { %v2965_v52 = vadd.f32 %v2964_v51, %v2963_v50  ;;  %v2966_v53 = vpop.f32.mrb[122].mxu0 }
 0x456   : > { %v2967_v54 = vpop.f32.mrb[123].mxu0 }
 0x457   : > { %v2463_v55 = vadd.f32 %v2965_v52, %v4052_v3  ;;  %v2968_v56 = vadd.f32 %v2967_v54, %v2966_v53 }
 0x459   : > { %2535 = vst [vmem:[%s4085_s13 + $0x90] sm:$0xff] %v2463_v55  ;;  %v2466_v57 = vadd.f32 %v2968_v56, %v4052_v3 }
 0x45b   : > { %2536 = vst [vmem:[%s4085_s13 + $0x98] sm:$0xff] %v2466_v57  ;;  %v2969_v58 = vpop.f32.mrb[124].mxu0 }
 0x45c   : > { %v2970_v59 = vpop.f32.mrb[125].mxu0 }
 0x45d   : > { %v2971_v60 = vadd.f32 %v2970_v59, %v2969_v58  ;;  %v2972_v61 = vpop.f32.mrb[126].mxu0 }
 0x45e   : > { %v2973_v62 = vpop.f32.mrb[127].mxu0 }
 0x45f   : > { %v2471_v63 = vadd.f32 %v2971_v60, %v4052_v3  ;;  %v2974_v0 = vadd.f32 %v2973_v62, %v2972_v61 }
 0x461   : > { %2537 = vst [vmem:[%s4085_s13 + $0xa0] sm:$0xff] %v2471_v63  ;;  %v2474_v1 = vadd.f32 %v2974_v0, %v4052_v3 }
 0x463   : > { %2538 = vst [vmem:[%s4085_s13 + $0xa8] sm:$0xff] %v2474_v1  ;;  %v2975_v4 = vpop.f32.mrb[128].mxu0 }
 0x464   : > { %v2976_v5 = vpop.f32.mrb[129].mxu0 }
 0x465   : > { %v2977_v6 = vadd.f32 %v2976_v5, %v2975_v4  ;;  %v2978_v7 = vpop.f32.mrb[130].mxu0 }
 0x466   : > { %v2979_v8 = vpop.f32.mrb[131].mxu0 }
 0x467   : > { %v2479_v9 = vadd.f32 %v2977_v6, %v4052_v3  ;;  %v2980_v10 = vadd.f32 %v2979_v8, %v2978_v7 }
 0x469   : > { %2539 = vst [vmem:[%s4085_s13 + $0xb0] sm:$0xff] %v2479_v9  ;;  %v2482_v12 = vadd.f32 %v2980_v10, %v4052_v3 }
 0x46b   : > { %2540 = vst [vmem:[%s4085_s13 + $0xb8] sm:$0xff] %v2482_v12  ;;  %v2981_v13 = vpop.f32.mrb[132].mxu0 }
 0x46c   : > { %v2982_v14 = vpop.f32.mrb[133].mxu0 }
 0x46d   : > { %v2983_v15 = vadd.f32 %v2982_v14, %v2981_v13  ;;  %v2984_v16 = vpop.f32.mrb[134].mxu0 }
 0x46e   : > { %v2985_v11 = vpop.f32.mrb[135].mxu0 }
 0x46f   : > { %v2487_v17 = vadd.f32 %v2983_v15, %v4052_v3  ;;  %v2986_v18 = vadd.f32 %v2985_v11, %v2984_v16 }
 0x471   : > { %2541 = vst [vmem:[%s4085_s13 + $0xc0] sm:$0xff] %v2487_v17  ;;  %v2490_v19 = vadd.f32 %v2986_v18, %v4052_v3 }
 0x473   : > { %2542 = vst [vmem:[%s4085_s13 + $0xc8] sm:$0xff] %v2490_v19  ;;  %v2987_v20 = vpop.f32.mrb[136].mxu0 }
 0x474   : > { %v2988_v21 = vpop.f32.mrb[137].mxu0 }
 0x475   : > { %v2989_v22 = vadd.f32 %v2988_v21, %v2987_v20  ;;  %v2990_v24 = vpop.f32.mrb[138].mxu0 }
 0x476   : > { %v2991_v23 = vpop.f32.mrb[139].mxu0 }
 0x477   : > { %v2495_v25 = vadd.f32 %v2989_v22, %v4052_v3  ;;  %v2992_v27 = vadd.f32 %v2991_v23, %v2990_v24 }
 0x479   : > { %2543 = vst [vmem:[%s4085_s13 + $0xd0] sm:$0xff] %v2495_v25  ;;  %v2498_v28 = vadd.f32 %v2992_v27, %v4052_v3 }
 0x47b   : > { %2544 = vst [vmem:[%s4085_s13 + $0xd8] sm:$0xff] %v2498_v28  ;;  %v2993_v29 = vpop.f32.mrb[140].mxu0 }
 0x47c   : > { %v2994_v26 = vpop.f32.mrb[141].mxu0 }
 0x47d   : > { %v2995_v30 = vadd.f32 %v2994_v26, %v2993_v29  ;;  %v2996_v31 = vpop.f32.mrb[142].mxu0 }
 0x47e   : > { %v2997_v32 = vpop.f32.mrb[143].mxu0 }
 0x47f   : > { %v2503_v33 = vadd.f32 %v2995_v30, %v4052_v3  ;;  %v2998_v34 = vadd.f32 %v2997_v32, %v2996_v31 }
 0x481   : > { %2545 = vst [vmem:[%s4085_s13 + $0xe0] sm:$0xff] %v2503_v33  ;;  %v2506_v35 = vadd.f32 %v2998_v34, %v4052_v3 }
 0x483   : > { %2546 = vst [vmem:[%s4085_s13 + $0xe8] sm:$0xff] %v2506_v35  ;;  %v2999_v36 = vpop.f32.mrb[144].mxu0 }
 0x484   : > { %v3000_v37 = vpop.f32.mrb[145].mxu0 }
 0x485   : > { %v3001_v38 = vadd.f32 %v3000_v37, %v2999_v36  ;;  %v3002_v39 = vpop.f32.mrb[146].mxu0 }
 0x486   : > { %v3003_v40 = vpop.f32.mrb[147].mxu0 }
 0x487   : > { %v2511_v41 = vadd.f32 %v3001_v38, %v4052_v3  ;;  %v3004_v2 = vadd.f32 %v3003_v40, %v3002_v39 }
 0x489   : > { %2547 = vst [vmem:[%s4085_s13 + $0xf0] sm:$0xff] %v2511_v41  ;;  %v2514_v42 = vadd.f32 %v3004_v2, %v4052_v3 }
 0x48b   : > { %2548 = vst [vmem:[%s4085_s13 + $0xf8] sm:$0xff] %v2514_v42 }
 0x48c PF: > { %p3143_p4 = scmp.ge.s32.totalorder %s3404_s22, 2  ;;  %s2606_s0 = sand.u32 1, %s3384_s17  }
 0x48d   : > { %s2607_s27 = scalar_lea.sflag [#allocation3], %s2606_s0 }
 0x48e   : > { %p3140_p2 = pnand %p3143_p4, %p3517_p8 }
 0x490   : > { %3379 = dma.done.wait (!%p3140_p2), %s2607_s27, 8192  }
 0x491   : > { %3381 = vsyncadd (!%p3140_p2), %s2607_s27, 4294959104  ;;  %s25_s22 = sadd.s32 1, %s3404_s22   ;;  %s4196_s17 = smov %s3388_s18 }
 0x492   : > { %p22_p3 = scmp.ge.s32.totalorder %s25_s22, 4   ;;  %s4197_s18 = smov %s3392_s19 }
 0x493   : > { %s4198_s19 = smov %s3523_s30  ;;  %s4199_s20 = smov %s3400_s21 }
 0x494   : > { %s4200_s21 = smov %s4202_s25  ;;  %24 = sbr.rel (!%p22_p3) target bundleno = 8 (0x8), region = 110 }
 0x49b   :  { %2612 = vsyncpa [#allocation3], 1 }
 0x49c   :  { %2614 = vsyncpa [#allocation3 + $0x1], 1 }

</bundles_post_ra>
